<compile_context>
chip_gen: v7x
topology: tpu7x:2x2x1
jax: 0.10.0
libtpu: 0.0.40
codegen_flags: <defaults>
</compile_context>

<pallas_src>
import jax
import jax.numpy as jnp
from jax.experimental import pallas as pl
from jax.experimental.pallas import tpu as pltpu

IN_CHANNELS = 256
OUT_CHANNELS = 64
D = 44                       # depth bins
D_PAD = 48                   # depth rows padded to a sublane-tile boundary
C_OUT_PAD = D_PAD + OUT_CHANNELS   # 112 fused (padded) conv output rows


def _make_kernel(cams_per_step):
    def kernel(x_ref, w_ref, b_ref, depth_ref, feat_ref):
        """One grid step = `cams_per_step` cameras, x slab in native NCHW order.

        Single fused 1x1-conv matmul per camera:
          (112, C_in) @ (C_in, HW) + bias -> rows [0:44]   = depth logits
                                             rows [48:112] = features
        H*W stays on the lane axis -> all stores are lane-dense.
        """
        w = w_ref[...]                     # (112, C_in) bf16
        b = b_ref[...]                     # (112, 1)    f32
        for i in range(cams_per_step):     # short static loop -> fully unrolled
            y = jnp.dot(w, x_ref[i], preferred_element_type=jnp.float32) + b

            # Depth head: softmax over the depth-bin (sublane) axis.
            logits = y[:D, :]                                    # (44, HW)
            m = jnp.max(logits, axis=0, keepdims=True)           # XLU reduce
            e = jnp.exp(logits - m)                              # EUP
            s = jnp.sum(e, axis=0, keepdims=True)
            inv = pl.reciprocal(s, approx=False)                 # exact: kernel is DMA-bound
            depth_ref[i] = (e * inv).astype(depth_ref.dtype)

            # Feature head: rows 48:112 (sublane-aligned slice, no shuffles).
            feat_ref[i] = y[D_PAD:, :].astype(feat_ref.dtype)

    return kernel


def lss_view_transformer(x_nchw, w, b):
    """x_nchw: (N, C_in, H, W); w: (D+C_out, C_in); b: (D+C_out,).

    Returns (depth, feat) with the module's output shapes:
      depth (1, 6, 44, 16, 44) f32, feat (1, 6, 16, 44, 64) f32.
    """
    N, C, H, W = x_nchw.shape
    assert C == IN_CHANNELS
    HW = H * W

    # Native NCHW slab: free reshape, then (no-op if already bf16) operand cast.
    x3 = x_nchw.reshape(N, C, HW).astype(jnp.bfloat16)

    # Fused, sublane-aligned weight/bias: rows [0:44] depth, [48:112] feat.
    zpad_w = jnp.zeros((D_PAD - D, C), w.dtype)
    zpad_b = jnp.zeros((D_PAD - D,), b.dtype)
    w_pad = jnp.concatenate([w[:D], zpad_w, w[D:D + OUT_CHANNELS]], axis=0)
    b_pad = jnp.concatenate([b[:D], zpad_b, b[D:D + OUT_CHANNELS]], axis=0)
    w_pad = w_pad.astype(jnp.bfloat16)                       # 57 KB, negligible
    b_pad = b_pad.reshape(C_OUT_PAD, 1).astype(jnp.float32)  # kept f32 for accuracy

    # 3 cameras per grid step: 2 steps total -> 1 step per TensorCore on v7x,
    # two ~2 MB double-buffered steps on the single core of v5e/v6e.
    cams = 3 if N % 3 == 0 else (2 if N % 2 == 0 else 1)
    grid = (N // cams,)

    depth_n, feat_n = pl.pallas_call(
        _make_kernel(cams),
        out_shape=(jax.ShapeDtypeStruct((N, D, HW), jnp.float32),
                   jax.ShapeDtypeStruct((N, OUT_CHANNELS, HW), jnp.float32)),
        grid_spec=pltpu.PrefetchScalarGridSpec(
            num_scalar_prefetch=0,
            grid=grid,
            in_specs=[
                pl.BlockSpec((cams, C, HW), lambda n: (n, 0, 0)),   # x slab (NCHW)
                pl.BlockSpec((C_OUT_PAD, C), lambda n: (0, 0)),     # fused weight
                pl.BlockSpec((C_OUT_PAD, 1), lambda n: (0, 0)),     # fused bias
            ],
            out_specs=[
                pl.BlockSpec((cams, D, HW), lambda n: (n, 0, 0)),
                pl.BlockSpec((cams, OUT_CHANNELS, HW), lambda n: (n, 0, 0)),
            ],
        ),
        # "parallel" shards the camera axis across v7x's two TensorCores
        # (no-op on single-core v5e/v6e).
        # TODO(synk): confirm with an xprof profile that both v7x TCs are active;
        # fall back to pltpu.CORE_PARALLEL on a leading size-2 axis if not.
        compiler_params=pltpu.CompilerParams(
            dimension_semantics=("parallel",)),
    )(x3, w_pad, b_pad)

    # depth is already NCHW order -> pure reshape (no data movement).
    depth = depth_n.reshape(1, N, D, H, W)
    # The module spec demands channel-last feat; keep this small permute in XLA
    # (a real pipeline fuses it into the consumer; moving it into the kernel
    # would force masked 64-wide stores).
    feat = jnp.transpose(feat_n, (0, 2, 1)).reshape(1, N, H, W, OUT_CHANNELS)
    return depth, feat


def _reference(x_f32, w_f32, b_f32):
    """Pure-JAX f32 reference of the PyTorch forward (for verification)."""
    y = jnp.einsum('nchw,oc->nohw', x_f32, w_f32,
                   precision=jax.lax.Precision.HIGHEST) + b_f32[None, :, None, None]
    depth_digit = y[:, :D, ...]
    tran_feat = y[:, D:D + OUT_CHANNELS, ...]
    depth = jax.nn.softmax(depth_digit, axis=1).reshape(1, 6, D, 16, 44)
    feat = jnp.transpose(tran_feat, (0, 2, 3, 1)).reshape(1, 6, 16, 44, OUT_CHANNELS)
    return depth, feat


if __name__ == "__main__":
    # Shapes are pinned by the module's hard-coded reshapes:
    #   x: (6, 256, 16, 44)  [N=6 cameras, C_in=256, H=16, W=44]
    key = jax.random.PRNGKey(0)
    kx, kw, kb = jax.random.split(key, 3)

    N, C, H, W = 6, IN_CHANNELS, 16, 44
    c_out = D + OUT_CHANNELS

    # Activations arrive from a bf16 backbone; weights are the f32 Conv2d params.
    x = jax.random.normal(kx, (N, C, H, W), dtype=jnp.float32).astype(jnp.bfloat16)
    w = jax.random.normal(kw, (c_out, C), dtype=jnp.float32) * (1.0 / jnp.sqrt(C))
    b = jax.random.normal(kb, (c_out,), dtype=jnp.float32) * 0.01

    depth, feat = jax.jit(lss_view_transformer)(x, w, b)
    jax.block_until_ready((depth, feat))

    assert depth.shape == (1, 6, 44, 16, 44) and depth.dtype == jnp.float32
    assert feat.shape == (1, 6, 16, 44, 64) and feat.dtype == jnp.float32

    # Reference on the exact same (bf16-rounded) operands in full f32 math, so
    # the only kernel/reference differences are MXU accumulation order and the
    # reciprocal rounding -> tight tolerances hold.
    depth_ref, feat_ref = _reference(x.astype(jnp.float32),
                                     w.astype(jnp.bfloat16).astype(jnp.float32),
                                     b)
    assert jnp.allclose(depth, depth_ref, atol=1e-3, rtol=1e-3)
    assert jnp.allclose(feat, feat_ref, atol=1e-3, rtol=1e-3)

    print("KERNEL_OK")
</pallas_src>

<mosaic_0001>
module attributes {stable_mosaic.version = 11 : i64} {
  func.func @kernel(%arg0: i32, %arg1: memref<3x256x704xbf16, #tpu.memory_space<vmem>>, %arg2: memref<112x256xbf16, #tpu.memory_space<vmem>>, %arg3: memref<112x1xf32, #tpu.memory_space<vmem>>, %arg4: memref<3x44x704xf32, #tpu.memory_space<vmem>>, %arg5: memref<3x64x704xf32, #tpu.memory_space<vmem>>) attributes {dimension_semantics = [#tpu.dimension_semantics<parallel>], iteration_bounds = array<i64: 2>, scalar_prefetch = 0 : i64, scratch_operands = 0 : i64, tpu.core_type = #tpu.core_type<tc>, window_params = [{transform_indices = @transform_0, window_bounds = array<i64: 3, 256, 704>}, {pipeline_mode = #tpu.pipeline_mode<synchronous>, transform_indices = @transform_1, window_bounds = array<i64: 112, 256>}, {pipeline_mode = #tpu.pipeline_mode<synchronous>, transform_indices = @transform_2, window_bounds = array<i64: 112, 1>}, {transform_indices = @transform_3, window_bounds = array<i64: 3, 44, 704>}, {transform_indices = @transform_4, window_bounds = array<i64: 3, 64, 704>}]} {
    %c0 = arith.constant 0 : index
    %c0_0 = arith.constant 0 : index
    %0 = vector.load %arg2[%c0, %c0_0] : memref<112x256xbf16, #tpu.memory_space<vmem>>, vector<112x256xbf16>
    %c0_1 = arith.constant 0 : index
    %c0_2 = arith.constant 0 : index
    %1 = vector.load %arg3[%c0_1, %c0_2] : memref<112x1xf32, #tpu.memory_space<vmem>>, vector<112x1xf32>
    %c0_3 = arith.constant 0 : index
    %c0_4 = arith.constant 0 : index
    %c0_5 = arith.constant 0 : index
    %2 = vector.load %arg1[%c0_3, %c0_4, %c0_5] : memref<3x256x704xbf16, #tpu.memory_space<vmem>>, vector<1x256x704xbf16>
    %3 = vector.shape_cast %2 : vector<1x256x704xbf16> to vector<256x704xbf16>
    %cst = arith.constant dense<0.000000e+00> : vector<112x704xf32>
    %4 = tpu.matmul %0, %3, %cst {dimension_numbers = #tpu.dot_dimension_numbers<[1], [0], [0], [1], [0, 0, 1, 1], [], []>} : vector<112x256xbf16>, vector<256x704xbf16>, vector<112x704xf32> -> vector<112x704xf32>
    %5 = vector.broadcast %1 : vector<112x1xf32> to vector<112x704xf32>
    %6 = arith.addf %4, %5 : vector<112x704xf32>
    %7 = vector.extract_strided_slice %6 {offsets = [0, 0], sizes = [44, 704], strides = [1, 1]} : vector<112x704xf32> to vector<44x704xf32>
    %cst_6 = arith.constant dense<0xFF800000> : vector<704xf32>
    %8 = vector.multi_reduction <maximumf>, %7, %cst_6 [0] : vector<44x704xf32> to vector<704xf32>
    %9 = vector.shape_cast %8 : vector<704xf32> to vector<1x704xf32>
    %10 = vector.broadcast %9 : vector<1x704xf32> to vector<44x704xf32>
    %11 = arith.subf %7, %10 : vector<44x704xf32>
    %12 = math.exp %11 : vector<44x704xf32>
    %cst_7 = arith.constant dense<0.000000e+00> : vector<704xf32>
    %13 = vector.multi_reduction <add>, %12, %cst_7 [0] : vector<44x704xf32> to vector<704xf32>
    %14 = vector.shape_cast %13 : vector<704xf32> to vector<1x704xf32>
    %15 = tpu.reciprocal %14 : vector<1x704xf32> -> vector<1x704xf32>
    %16 = vector.broadcast %15 : vector<1x704xf32> to vector<44x704xf32>
    %17 = arith.mulf %12, %16 : vector<44x704xf32>
    %c0_8 = arith.constant 0 : index
    %c0_9 = arith.constant 0 : index
    %c0_10 = arith.constant 0 : index
    %18 = vector.load %arg4[%c0_8, %c0_9, %c0_10] : memref<3x44x704xf32, #tpu.memory_space<vmem>>, vector<1x44x704xf32>
    %19 = vector.shape_cast %18 : vector<1x44x704xf32> to vector<44x704xf32>
    %20 = vector.shape_cast %17 : vector<44x704xf32> to vector<1x44x704xf32>
    tpu.vector_store %arg4[%c0_8, %c0_9, %c0_10], %20 {strides = array<i32>} : memref<3x44x704xf32, #tpu.memory_space<vmem>>, vector<1x44x704xf32>,
    %21 = vector.extract_strided_slice %6 {offsets = [48, 0], sizes = [64, 704], strides = [1, 1]} : vector<112x704xf32> to vector<64x704xf32>
    %c0_11 = arith.constant 0 : index
    %c0_12 = arith.constant 0 : index
    %c0_13 = arith.constant 0 : index
    %22 = vector.load %arg5[%c0_11, %c0_12, %c0_13] : memref<3x64x704xf32, #tpu.memory_space<vmem>>, vector<1x64x704xf32>
    %23 = vector.shape_cast %22 : vector<1x64x704xf32> to vector<64x704xf32>
    %24 = vector.shape_cast %21 : vector<64x704xf32> to vector<1x64x704xf32>
    tpu.vector_store %arg5[%c0_11, %c0_12, %c0_13], %24 {strides = array<i32>} : memref<3x64x704xf32, #tpu.memory_space<vmem>>, vector<1x64x704xf32>,
    %c1 = arith.constant 1 : index
    %c0_14 = arith.constant 0 : index
    %c0_15 = arith.constant 0 : index
    %25 = vector.load %arg1[%c1, %c0_14, %c0_15] : memref<3x256x704xbf16, #tpu.memory_space<vmem>>, vector<1x256x704xbf16>
    %26 = vector.shape_cast %25 : vector<1x256x704xbf16> to vector<256x704xbf16>
    %cst_16 = arith.constant dense<0.000000e+00> : vector<112x704xf32>
    %27 = tpu.matmul %0, %26, %cst_16 {dimension_numbers = #tpu.dot_dimension_numbers<[1], [0], [0], [1], [0, 0, 1, 1], [], []>} : vector<112x256xbf16>, vector<256x704xbf16>, vector<112x704xf32> -> vector<112x704xf32>
    %28 = vector.broadcast %1 : vector<112x1xf32> to vector<112x704xf32>
    %29 = arith.addf %27, %28 : vector<112x704xf32>
    %30 = vector.extract_strided_slice %29 {offsets = [0, 0], sizes = [44, 704], strides = [1, 1]} : vector<112x704xf32> to vector<44x704xf32>
    %cst_17 = arith.constant dense<0xFF800000> : vector<704xf32>
    %31 = vector.multi_reduction <maximumf>, %30, %cst_17 [0] : vector<44x704xf32> to vector<704xf32>
    %32 = vector.shape_cast %31 : vector<704xf32> to vector<1x704xf32>
    %33 = vector.broadcast %32 : vector<1x704xf32> to vector<44x704xf32>
    %34 = arith.subf %30, %33 : vector<44x704xf32>
    %35 = math.exp %34 : vector<44x704xf32>
    %cst_18 = arith.constant dense<0.000000e+00> : vector<704xf32>
    %36 = vector.multi_reduction <add>, %35, %cst_18 [0] : vector<44x704xf32> to vector<704xf32>
    %37 = vector.shape_cast %36 : vector<704xf32> to vector<1x704xf32>
    %38 = tpu.reciprocal %37 : vector<1x704xf32> -> vector<1x704xf32>
    %39 = vector.broadcast %38 : vector<1x704xf32> to vector<44x704xf32>
    %40 = arith.mulf %35, %39 : vector<44x704xf32>
    %c1_19 = arith.constant 1 : index
    %c0_20 = arith.constant 0 : index
    %c0_21 = arith.constant 0 : index
    %41 = vector.load %arg4[%c1_19, %c0_20, %c0_21] : memref<3x44x704xf32, #tpu.memory_space<vmem>>, vector<1x44x704xf32>
    %42 = vector.shape_cast %41 : vector<1x44x704xf32> to vector<44x704xf32>
    %43 = vector.shape_cast %40 : vector<44x704xf32> to vector<1x44x704xf32>
    tpu.vector_store %arg4[%c1_19, %c0_20, %c0_21], %43 {strides = array<i32>} : memref<3x44x704xf32, #tpu.memory_space<vmem>>, vector<1x44x704xf32>,
    %44 = vector.extract_strided_slice %29 {offsets = [48, 0], sizes = [64, 704], strides = [1, 1]} : vector<112x704xf32> to vector<64x704xf32>
    %c1_22 = arith.constant 1 : index
    %c0_23 = arith.constant 0 : index
    %c0_24 = arith.constant 0 : index
    %45 = vector.load %arg5[%c1_22, %c0_23, %c0_24] : memref<3x64x704xf32, #tpu.memory_space<vmem>>, vector<1x64x704xf32>
    %46 = vector.shape_cast %45 : vector<1x64x704xf32> to vector<64x704xf32>
    %47 = vector.shape_cast %44 : vector<64x704xf32> to vector<1x64x704xf32>
    tpu.vector_store %arg5[%c1_22, %c0_23, %c0_24], %47 {strides = array<i32>} : memref<3x64x704xf32, #tpu.memory_space<vmem>>, vector<1x64x704xf32>,
    %c2 = arith.constant 2 : index
    %c0_25 = arith.constant 0 : index
    %c0_26 = arith.constant 0 : index
    %48 = vector.load %arg1[%c2, %c0_25, %c0_26] : memref<3x256x704xbf16, #tpu.memory_space<vmem>>, vector<1x256x704xbf16>
    %49 = vector.shape_cast %48 : vector<1x256x704xbf16> to vector<256x704xbf16>
    %cst_27 = arith.constant dense<0.000000e+00> : vector<112x704xf32>
    %50 = tpu.matmul %0, %49, %cst_27 {dimension_numbers = #tpu.dot_dimension_numbers<[1], [0], [0], [1], [0, 0, 1, 1], [], []>} : vector<112x256xbf16>, vector<256x704xbf16>, vector<112x704xf32> -> vector<112x704xf32>
    %51 = vector.broadcast %1 : vector<112x1xf32> to vector<112x704xf32>
    %52 = arith.addf %50, %51 : vector<112x704xf32>
    %53 = vector.extract_strided_slice %52 {offsets = [0, 0], sizes = [44, 704], strides = [1, 1]} : vector<112x704xf32> to vector<44x704xf32>
    %cst_28 = arith.constant dense<0xFF800000> : vector<704xf32>
    %54 = vector.multi_reduction <maximumf>, %53, %cst_28 [0] : vector<44x704xf32> to vector<704xf32>
    %55 = vector.shape_cast %54 : vector<704xf32> to vector<1x704xf32>
    %56 = vector.broadcast %55 : vector<1x704xf32> to vector<44x704xf32>
    %57 = arith.subf %53, %56 : vector<44x704xf32>
    %58 = math.exp %57 : vector<44x704xf32>
    %cst_29 = arith.constant dense<0.000000e+00> : vector<704xf32>
    %59 = vector.multi_reduction <add>, %58, %cst_29 [0] : vector<44x704xf32> to vector<704xf32>
    %60 = vector.shape_cast %59 : vector<704xf32> to vector<1x704xf32>
    %61 = tpu.reciprocal %60 : vector<1x704xf32> -> vector<1x704xf32>
    %62 = vector.broadcast %61 : vector<1x704xf32> to vector<44x704xf32>
    %63 = arith.mulf %58, %62 : vector<44x704xf32>
    %c2_30 = arith.constant 2 : index
    %c0_31 = arith.constant 0 : index
    %c0_32 = arith.constant 0 : index
    %64 = vector.load %arg4[%c2_30, %c0_31, %c0_32] : memref<3x44x704xf32, #tpu.memory_space<vmem>>, vector<1x44x704xf32>
    %65 = vector.shape_cast %64 : vector<1x44x704xf32> to vector<44x704xf32>
    %66 = vector.shape_cast %63 : vector<44x704xf32> to vector<1x44x704xf32>
    tpu.vector_store %arg4[%c2_30, %c0_31, %c0_32], %66 {strides = array<i32>} : memref<3x44x704xf32, #tpu.memory_space<vmem>>, vector<1x44x704xf32>,
    %67 = vector.extract_strided_slice %52 {offsets = [48, 0], sizes = [64, 704], strides = [1, 1]} : vector<112x704xf32> to vector<64x704xf32>
    %c2_33 = arith.constant 2 : index
    %c0_34 = arith.constant 0 : index
    %c0_35 = arith.constant 0 : index
    %68 = vector.load %arg5[%c2_33, %c0_34, %c0_35] : memref<3x64x704xf32, #tpu.memory_space<vmem>>, vector<1x64x704xf32>
    %69 = vector.shape_cast %68 : vector<1x64x704xf32> to vector<64x704xf32>
    %70 = vector.shape_cast %67 : vector<64x704xf32> to vector<1x64x704xf32>
    tpu.vector_store %arg5[%c2_33, %c0_34, %c0_35], %70 {strides = array<i32>} : memref<3x64x704xf32, #tpu.memory_space<vmem>>, vector<1x64x704xf32>,
    return
  }
  func.func @transform_0(%arg0: i32) -> (i32, i32, i32) {
    %c0_i32 = arith.constant 0 : i32
    %c0_i32_0 = arith.constant 0 : i32
    %c0_i32_1 = arith.constant 0 : i32
    return %arg0, %c0_i32, %c0_i32_0 : i32, i32, i32
  }
  func.func @transform_1(%arg0: i32) -> (i32, i32) {
    %c0_i32 = arith.constant 0 : i32
    %c0_i32_0 = arith.constant 0 : i32
    %c0_i32_1 = arith.constant 0 : i32
    return %c0_i32, %c0_i32_0 : i32, i32
  }
  func.func @transform_2(%arg0: i32) -> (i32, i32) {
    %c0_i32 = arith.constant 0 : i32
    %c0_i32_0 = arith.constant 0 : i32
    %c0_i32_1 = arith.constant 0 : i32
    return %c0_i32, %c0_i32_0 : i32, i32
  }
  func.func @transform_3(%arg0: i32) -> (i32, i32, i32) {
    %c0_i32 = arith.constant 0 : i32
    %c0_i32_0 = arith.constant 0 : i32
    %c0_i32_1 = arith.constant 0 : i32
    return %arg0, %c0_i32, %c0_i32_0 : i32, i32, i32
  }
  func.func @transform_4(%arg0: i32) -> (i32, i32, i32) {
    %c0_i32 = arith.constant 0 : i32
    %c0_i32_0 = arith.constant 0 : i32
    %c0_i32_1 = arith.constant 0 : i32
    return %arg0, %c0_i32, %c0_i32_0 : i32, i32, i32
  }
}

</mosaic_0001>

<bundles_post_ra>
// kernel: lss_view_transformer.1
= control target key start
LH: loop header
LB: loop body
LE: loop exit
PB: predicated region body
PF: predicated region fallthrough
CT: control target
= control target key end

     0   :  { %s5786_s15 = smov 0   ;;  %s8091_s0 = inlined_call_operand.vmem [shape: bf16[6,256,704], index: 0, kind: input, shape index: {}]   ;;  %s8092_s1 = inlined_call_operand.vmem [shape: bf16[112,256], index: 1, kind: input, shape index: {}]   ;;  %s8093_s2 = inlined_call_operand.vmem [shape: f32[112,1], index: 2, kind: input, shape index: {}]   ;;  %s8094_s3 = inlined_call_operand.vmem [shape: f32[6,44,704], index: 3, kind: output, shape index: {0}]   ;;  %s8095_s4 = inlined_call_operand.vmem [shape: f32[6,64,704], index: 4, kind: output, shape index: {1}]  }
   0x1 LB: > { %s4312_s16 = sadd.s32 4294967295, %s5758_s15   ;;  %p4316_p0 = scmp.ge.s32.totalorder %s5758_s15, 1  ;;  %s5758_s15 = sphi %s5786_s15, %s15_s15  }
   0x2   : > { %p167_p1 = scmp.lt.s32.totalorder %s5758_s15, 3 }
   0x4   : > { %p168_p2 = pnand %p4316_p0, %p167_p1 }
   0x6   : > { %171 = sbr.rel (%p168_p2) target bundleno = 662 (0x296), region = 32 }
   0xd   : > { %s201_s17 = smul.u32 3, %s4312_s16  ;;  %v5797_v0 = vld [vmem:[%s8092_s1 + $0x4] ss:$8 sps:$4 sm:$0xff]   ;;  %v5760_v27 = vmov 0   ;;  %vm1279_vm0 = vcmask 1043456   ;;  %vm1336_vm1 = vcmask 523264  }
   0xe   : > { %998 = vmatprep.mubr.bf16.mxu0 %v5797_v0  ;;  %1101 = vmatprep.mubr.bf16.mxu1 %v5797_v0  ;;  %vm1346_vm2 = vcmask 519168  }
   0xf   : > { %p202_p3 = scmp.lt.s32.totalorder %s201_s17, 5  ;;  %5028 = vset.pattern.permute.xlu0 %v5760_v27  ;;  %5029 = vset.pattern.permute.xlu1 %v5760_v27 }
  0x11   : > { %s8276_s17 = smov (!%p202_p3, %s201_s17), 5 }
  0x12   : > { %s5016_s20 = smul.u32 768, %s8276_s17 }
  0x13   : > { %s5018_s5 = smul.u32 384, %s8276_s17 }
  0x14   : > { %s5807_s23 = scalar_lea.vmem %s8091_s0, %s5016_s20  ;;  %s5017_s22 = smul.u32 288, %s8276_s17 }
  0x15   : > { %v5030_v1 = vld [vmem:[%s5807_s23 + $0x4] ss:$24 sps:$4 sm:$0xff]   ;;  %v5034_v3 = vld [vmem:[%s5807_s23] ss:$24 sps:$4 sm:$0xff]   ;;  %v5036_v5 = vld [vmem:[%s5807_s23 + $0x34] ss:$24 sps:$4 sm:$0xff]   ;;  %s6483_s10 = scalar_lea.vmem %s8095_s4, %s5018_s5 }
  0x16   : > { %v5032_v2 = vld [vmem:[%s5807_s23 + $0xc] ss:$24 sps:$4 sm:$0xff]   ;;  %966 = vmatprep.subr.bf16.mxu0 %v5030_v1  ;;  %v5035_v4 = vld [vmem:[%s5807_s23 + $0x8] ss:$24 sps:$4 sm:$0xff]   ;;  %v5038_v6 = vld [vmem:[%s5807_s23 + $0x3c] ss:$24 sps:$4 sm:$0xff]   ;;  %s6863_s25 = scalar_lea.vmem %s8094_s3, %s5017_s22 }
  0x17   : > { %1069 = vmatprep.subr.bf16.mxu1 %v5032_v2  ;;  %967 = vmatpush1.bf16.msra.mxu0 %v5034_v3  ;;  %v5040_v7 = vld [vmem:[%s5807_s23 + $0x30] ss:$24 sps:$4 sm:$0xff]   ;;  %v5042_v9 = vld [vmem:[%s5807_s23 + $0x64] ss:$24 sps:$4 sm:$0xff]   ;;  %v5046_v11 = vld [vmem:[%s5807_s23 + $0x60] ss:$24 sps:$4 sm:$0xff]  }
  0x18   : > { %1070 = vmatpush1.bf16.msra.mxu1 %v5035_v4  ;;  %968 = vmatprep.subr.bf16.mxu0 %v5036_v5  ;;  %v5041_v8 = vld [vmem:[%s5807_s23 + $0x38] ss:$24 sps:$4 sm:$0xff]   ;;  %v5044_v10 = vld [vmem:[%s5807_s23 + $0x6c] ss:$24 sps:$4 sm:$0xff]   ;;  %v5047_v12 = vld [vmem:[%s5807_s23 + $0x68] ss:$24 sps:$4 sm:$0xff]  }
  0x19   : > { %1071 = vmatprep.subr.bf16.mxu1 %v5038_v6  ;;  %v5048_v13 = vld [vmem:[%s5807_s23 + $0x94] ss:$24 sps:$4 sm:$0xff]   ;;  %v5052_v15 = vld [vmem:[%s5807_s23 + $0x90] ss:$24 sps:$4 sm:$0xff]   ;;  %v5054_v17 = vld [vmem:[%s5807_s23 + $0xc4] ss:$24 sps:$4 sm:$0xff]  }
  0x1a   : > { %v5050_v14 = vld [vmem:[%s5807_s23 + $0x9c] ss:$24 sps:$4 sm:$0xff]   ;;  %v5053_v16 = vld [vmem:[%s5807_s23 + $0x98] ss:$24 sps:$4 sm:$0xff]   ;;  %v5056_v18 = vld [vmem:[%s5807_s23 + $0xcc] ss:$24 sps:$4 sm:$0xff]  }
  0x1b   : > { %969 = vmatpush1.bf16.msra.mxu0 %v5040_v7  ;;  %v5058_v19 = vld [vmem:[%s5807_s23 + $0xc0] ss:$24 sps:$4 sm:$0xff]   ;;  %v5060_v21 = vld [vmem:[%s5807_s23 + $0xf4] ss:$24 sps:$4 sm:$0xff]   ;;  %v5064_v23 = vld [vmem:[%s5807_s23 + $0xf0] ss:$24 sps:$4 sm:$0xff]  }
  0x1c   : > { %1072 = vmatpush1.bf16.msra.mxu1 %v5041_v8  ;;  %970 = vmatprep.subr.bf16.mxu0 %v5042_v9  ;;  %v5059_v20 = vld [vmem:[%s5807_s23 + $0xc8] ss:$24 sps:$4 sm:$0xff]   ;;  %v5062_v22 = vld [vmem:[%s5807_s23 + $0xfc] ss:$24 sps:$4 sm:$0xff]   ;;  %v5065_v24 = vld [vmem:[%s5807_s23 + $0xf8] ss:$24 sps:$4 sm:$0xff]  }
  0x1d   : > { %1073 = vmatprep.subr.bf16.mxu1 %v5044_v10  ;;  %v5066_v25 = vld [vmem:[%s5807_s23 + $0x124] ss:$24 sps:$4 sm:$0xff]   ;;  %v5070_v28 = vld [vmem:[%s5807_s23 + $0x120] ss:$24 sps:$4 sm:$0xff]   ;;  %v5072_v30 = vld [vmem:[%s5807_s23 + $0x154] ss:$24 sps:$4 sm:$0xff]  }
  0x1e   : > { %v5068_v26 = vld [vmem:[%s5807_s23 + $0x12c] ss:$24 sps:$4 sm:$0xff]   ;;  %v5071_v29 = vld [vmem:[%s5807_s23 + $0x128] ss:$24 sps:$4 sm:$0xff]   ;;  %v5074_v31 = vld [vmem:[%s5807_s23 + $0x15c] ss:$24 sps:$4 sm:$0xff]  }
  0x1f   : > { %971 = vmatpush1.bf16.msra.mxu0 %v5046_v11  ;;  %v5076_v32 = vld [vmem:[%s5807_s23 + $0x150] ss:$24 sps:$4 sm:$0xff]   ;;  %v5078_v34 = vld [vmem:[%s5807_s23 + $0x184] ss:$24 sps:$4 sm:$0xff]   ;;  %v5082_v36 = vld [vmem:[%s5807_s23 + $0x180] ss:$24 sps:$4 sm:$0xff]  }
  0x20   : > { %1074 = vmatpush1.bf16.msra.mxu1 %v5047_v12  ;;  %972 = vmatprep.subr.bf16.mxu0 %v5048_v13  ;;  %v5077_v33 = vld [vmem:[%s5807_s23 + $0x158] ss:$24 sps:$4 sm:$0xff]   ;;  %v5080_v35 = vld [vmem:[%s5807_s23 + $0x18c] ss:$24 sps:$4 sm:$0xff]   ;;  %v5083_v37 = vld [vmem:[%s5807_s23 + $0x188] ss:$24 sps:$4 sm:$0xff]  }
  0x21   : > { %1075 = vmatprep.subr.bf16.mxu1 %v5050_v14  ;;  %v5084_v38 = vld [vmem:[%s5807_s23 + $0x1b4] ss:$24 sps:$4 sm:$0xff]   ;;  %v5088_v40 = vld [vmem:[%s5807_s23 + $0x1b0] ss:$24 sps:$4 sm:$0xff]   ;;  %v5090_v42 = vld [vmem:[%s5807_s23 + $0x1e4] ss:$24 sps:$4 sm:$0xff]  }
  0x22   : > { %v5086_v39 = vld [vmem:[%s5807_s23 + $0x1bc] ss:$24 sps:$4 sm:$0xff]   ;;  %v5089_v41 = vld [vmem:[%s5807_s23 + $0x1b8] ss:$24 sps:$4 sm:$0xff]   ;;  %v5092_v43 = vld [vmem:[%s5807_s23 + $0x1ec] ss:$24 sps:$4 sm:$0xff]  }
  0x23   : > { %973 = vmatpush1.bf16.msra.mxu0 %v5052_v15  ;;  %v5094_v44 = vld [vmem:[%s5807_s23 + $0x1e0] ss:$24 sps:$4 sm:$0xff]   ;;  %v5096_v46 = vld [vmem:[%s5807_s23 + $0x214] ss:$24 sps:$4 sm:$0xff]   ;;  %v5100_v48 = vld [vmem:[%s5807_s23 + $0x210] ss:$24 sps:$4 sm:$0xff]  }
  0x24   : > { %1076 = vmatpush1.bf16.msra.mxu1 %v5053_v16  ;;  %974 = vmatprep.subr.bf16.mxu0 %v5054_v17  ;;  %v5095_v45 = vld [vmem:[%s5807_s23 + $0x1e8] ss:$24 sps:$4 sm:$0xff]   ;;  %v5098_v47 = vld [vmem:[%s5807_s23 + $0x21c] ss:$24 sps:$4 sm:$0xff]   ;;  %v5101_v49 = vld [vmem:[%s5807_s23 + $0x218] ss:$24 sps:$4 sm:$0xff]  }
  0x25   : > { %1077 = vmatprep.subr.bf16.mxu1 %v5056_v18  ;;  %v5102_v50 = vld [vmem:[%s5807_s23 + $0x244] ss:$24 sps:$4 sm:$0xff]   ;;  %v5106_v52 = vld [vmem:[%s5807_s23 + $0x240] ss:$24 sps:$4 sm:$0xff]   ;;  %v5108_v54 = vld [vmem:[%s5807_s23 + $0x274] ss:$24 sps:$4 sm:$0xff]  }
  0x26   : > { %v5104_v51 = vld [vmem:[%s5807_s23 + $0x24c] ss:$24 sps:$4 sm:$0xff]   ;;  %v5107_v53 = vld [vmem:[%s5807_s23 + $0x248] ss:$24 sps:$4 sm:$0xff]   ;;  %v5110_v55 = vld [vmem:[%s5807_s23 + $0x27c] ss:$24 sps:$4 sm:$0xff]  }
  0x27   : > { %975 = vmatpush1.bf16.msra.mxu0 %v5058_v19  ;;  %v5112_v56 = vld [vmem:[%s5807_s23 + $0x270] ss:$24 sps:$4 sm:$0xff]   ;;  %v5114_v58 = vld [vmem:[%s5807_s23 + $0x2a4] ss:$24 sps:$4 sm:$0xff]   ;;  %v5118_v60 = vld [vmem:[%s5807_s23 + $0x2a0] ss:$24 sps:$4 sm:$0xff]  }
  0x28   : > { %1078 = vmatpush1.bf16.msra.mxu1 %v5059_v20  ;;  %976 = vmatprep.subr.bf16.mxu0 %v5060_v21  ;;  %v5113_v57 = vld [vmem:[%s5807_s23 + $0x278] ss:$24 sps:$4 sm:$0xff]   ;;  %v5116_v59 = vld [vmem:[%s5807_s23 + $0x2ac] ss:$24 sps:$4 sm:$0xff]   ;;  %v5119_v61 = vld [vmem:[%s5807_s23 + $0x2a8] ss:$24 sps:$4 sm:$0xff]  }
  0x29   : > { %1079 = vmatprep.subr.bf16.mxu1 %v5062_v22  ;;  %v5120_v62 = vld [vmem:[%s5807_s23 + $0x2d4] ss:$24 sps:$4 sm:$0xff]   ;;  %v5124_v1 = vld [vmem:[%s5807_s23 + $0x2d0] ss:$24 sps:$4 sm:$0xff]   ;;  %v5134_v4 = vld [vmem:[%s5807_s23 + $0x304] ss:$24 sps:$4 sm:$0xff]  }
  0x2a   : > { %v5122_v63 = vld [vmem:[%s5807_s23 + $0x2dc] ss:$24 sps:$4 sm:$0xff]   ;;  %v5125_v2 = vld [vmem:[%s5807_s23 + $0x2d8] ss:$24 sps:$4 sm:$0xff]   ;;  %v5878_v5 = vld [vmem:[%s8092_s1] ss:$8 sps:$4 sm:$0xff]  }
  0x2b   : > { %977 = vmatpush1.bf16.msra.mxu0 %v5064_v23  ;;  %v5131_v3 = vld [vmem:[%s5807_s23 + $0x14] ss:$24 sps:$4 sm:$0xff]   ;;  %v5129_v6 = vld [vmem:[%s5807_s23 + $0x10] ss:$24 sps:$4 sm:$0xff]   ;;  %v5132_v7 = vld [vmem:[%s5807_s23 + $0x300] ss:$24 sps:$4 sm:$0xff]  }
  0x2c   : > { %1080 = vmatpush1.bf16.msra.mxu1 %v5065_v24  ;;  %978 = vmatprep.subr.bf16.mxu0 %v5066_v25  ;;  %v5137_v8 = vld [vmem:[%s5807_s23 + $0x44] ss:$24 sps:$4 sm:$0xff]   ;;  %v5140_v9 = vld [vmem:[%s5807_s23 + $0x334] ss:$24 sps:$4 sm:$0xff]   ;;  %v5135_v11 = vld [vmem:[%s5807_s23 + $0x40] ss:$24 sps:$4 sm:$0xff]  }
  0x2d   : > { %1081 = vmatprep.subr.bf16.mxu1 %v5068_v26  ;;  %v5887_v10 = vld [vmem:[%s8092_s1 + $0x14] ss:$8 sps:$4 sm:$0xff]   ;;  %v5138_v12 = vld [vmem:[%s5807_s23 + $0x330] ss:$24 sps:$4 sm:$0xff]   ;;  %v5147_v17 = vld [vmem:[%s5807_s23 + $0x360] ss:$24 sps:$4 sm:$0xff]  }
  0x2e   : > { %v5146_v13 = vld [vmem:[%s5807_s23 + $0x74] ss:$24 sps:$4 sm:$0xff]   ;;  %v5149_v14 = vld [vmem:[%s5807_s23 + $0x364] ss:$24 sps:$4 sm:$0xff]   ;;  %v5900_v15 = vld [vmem:[%s8092_s1 + $0x10] ss:$8 sps:$4 sm:$0xff]  }
  0x2f   : > { %979 = vmatpush1.bf16.msra.mxu0 %v5070_v28  ;;  %v5144_v16 = vld [vmem:[%s5807_s23 + $0x70] ss:$24 sps:$4 sm:$0xff]   ;;  %v5152_v18 = vld [vmem:[%s5807_s23 + $0xa4] ss:$24 sps:$4 sm:$0xff]   ;;  %v5155_v19 = vld [vmem:[%s5807_s23 + $0x394] ss:$24 sps:$4 sm:$0xff]  }
  0x30   : > { %1082 = vmatpush1.bf16.msra.mxu1 %v5071_v29  ;;  %980 = vmatprep.subr.bf16.mxu0 %v5072_v30  ;;  %v5909_v20 = vld [vmem:[%s8092_s1 + $0x24] ss:$8 sps:$4 sm:$0xff]   ;;  %v5150_v21 = vld [vmem:[%s5807_s23 + $0xa0] ss:$24 sps:$4 sm:$0xff]   ;;  %v5153_v22 = vld [vmem:[%s5807_s23 + $0x390] ss:$24 sps:$4 sm:$0xff]  }
  0x31   : > { %1083 = vmatprep.subr.bf16.mxu1 %v5074_v31  ;;  %v5161_v23 = vld [vmem:[%s5807_s23 + $0xd4] ss:$24 sps:$4 sm:$0xff]   ;;  %v5164_v24 = vld [vmem:[%s5807_s23 + $0x3c4] ss:$24 sps:$4 sm:$0xff]   ;;  %v5922_v25 = vld [vmem:[%s8092_s1 + $0x20] ss:$8 sps:$4 sm:$0xff]  }
  0x32   : > { %v5159_v26 = vld [vmem:[%s5807_s23 + $0xd0] ss:$24 sps:$4 sm:$0xff]   ;;  %v5162_v27 = vld [vmem:[%s5807_s23 + $0x3c0] ss:$24 sps:$4 sm:$0xff]   ;;  %v5167_v28 = vld [vmem:[%s5807_s23 + $0x104] ss:$24 sps:$4 sm:$0xff]  }
  0x33   : > { %981 = vmatpush1.bf16.msra.mxu0 %v5076_v32  ;;  %v5170_v29 = vld [vmem:[%s5807_s23 + $0x3f4] ss:$24 sps:$4 sm:$0xff]   ;;  %v5165_v31 = vld [vmem:[%s5807_s23 + $0x100] ss:$24 sps:$4 sm:$0xff]   ;;  %v5168_v32 = vld [vmem:[%s5807_s23 + $0x3f0] ss:$24 sps:$4 sm:$0xff]  }
  0x34   : > { %1084 = vmatpush1.bf16.msra.mxu1 %v5077_v33  ;;  %982 = vmatprep.subr.bf16.mxu0 %v5078_v34  ;;  %v5931_v30 = vld [vmem:[%s8092_s1 + $0x34] ss:$8 sps:$4 sm:$0xff]  }
  0x35   : > { %1085 = vmatprep.subr.bf16.mxu1 %v5080_v35  ;;  %v5173_v33 = vld [vmem:[%s5807_s23 + $0x134] ss:$24 sps:$4 sm:$0xff]   ;;  %v5176_v34 = vld [vmem:[%s5807_s23 + $0x424] ss:$24 sps:$4 sm:$0xff]   ;;  %v5943_v35 = vld [vmem:[%s8092_s1 + $0x30] ss:$8 sps:$4 sm:$0xff]  }
  0x37   : > { %983 = vmatpush1.bf16.msra.mxu0 %v5082_v36  ;;  %v5171_v36 = vld [vmem:[%s5807_s23 + $0x130] ss:$24 sps:$4 sm:$0xff]  }
  0x38   : > { %1086 = vmatpush1.bf16.msra.mxu1 %v5083_v37  ;;  %984 = vmatprep.subr.bf16.mxu0 %v5084_v38  ;;  %v5174_v37 = vld [vmem:[%s5807_s23 + $0x420] ss:$24 sps:$4 sm:$0xff]   ;;  %v5179_v38 = vld [vmem:[%s5807_s23 + $0x164] ss:$24 sps:$4 sm:$0xff]  }
  0x39   : > { %1087 = vmatprep.subr.bf16.mxu1 %v5086_v39  ;;  %v5182_v39 = vld [vmem:[%s5807_s23 + $0x454] ss:$24 sps:$4 sm:$0xff]  }
  0x3b   : > { %985 = vmatpush1.bf16.msra.mxu0 %v5088_v40  ;;  %v5953_v40 = vld [vmem:[%s8092_s1 + $0x44] ss:$8 sps:$4 sm:$0xff]  }
  0x3c   : > { %1088 = vmatpush1.bf16.msra.mxu1 %v5089_v41  ;;  %986 = vmatprep.subr.bf16.mxu0 %v5090_v42  ;;  %v5177_v41 = vld [vmem:[%s5807_s23 + $0x160] ss:$24 sps:$4 sm:$0xff]   ;;  %v5180_v42 = vld [vmem:[%s5807_s23 + $0x450] ss:$24 sps:$4 sm:$0xff]  }
  0x3d   : > { %1089 = vmatprep.subr.bf16.mxu1 %v5092_v43  ;;  %v5188_v43 = vld [vmem:[%s5807_s23 + $0x194] ss:$24 sps:$4 sm:$0xff]  }
  0x3f   : > { %987 = vmatpush1.bf16.msra.mxu0 %v5094_v44  ;;  %v5191_v44 = vld [vmem:[%s5807_s23 + $0x484] ss:$24 sps:$4 sm:$0xff]  }
  0x40   : > { %1090 = vmatpush1.bf16.msra.mxu1 %v5095_v45  ;;  %988 = vmatprep.subr.bf16.mxu0 %v5096_v46  ;;  %v5965_v45 = vld [vmem:[%s8092_s1 + $0x40] ss:$8 sps:$4 sm:$0xff]  }
  0x41   : > { %1091 = vmatprep.subr.bf16.mxu1 %v5098_v47  ;;  %v5186_v46 = vld [vmem:[%s5807_s23 + $0x190] ss:$24 sps:$4 sm:$0xff]   ;;  %v5189_v47 = vld [vmem:[%s5807_s23 + $0x480] ss:$24 sps:$4 sm:$0xff]  }
  0x43   : > { %989 = vmatpush1.bf16.msra.mxu0 %v5100_v48  ;;  %v5194_v48 = vld [vmem:[%s5807_s23 + $0x1c4] ss:$24 sps:$4 sm:$0xff]  }
  0x44   : > { %1092 = vmatpush1.bf16.msra.mxu1 %v5101_v49  ;;  %990 = vmatprep.subr.bf16.mxu0 %v5102_v50  ;;  %v5197_v49 = vld [vmem:[%s5807_s23 + $0x4b4] ss:$24 sps:$4 sm:$0xff]  }
  0x45   : > { %1093 = vmatprep.subr.bf16.mxu1 %v5104_v51  ;;  %v5975_v50 = vld [vmem:[%s8092_s1 + $0x54] ss:$8 sps:$4 sm:$0xff]   ;;  %v5192_v51 = vld [vmem:[%s5807_s23 + $0x1c0] ss:$24 sps:$4 sm:$0xff]  }
  0x47   : > { %991 = vmatpush1.bf16.msra.mxu0 %v5106_v52  ;;  %v5195_v52 = vld [vmem:[%s5807_s23 + $0x4b0] ss:$24 sps:$4 sm:$0xff]  }
  0x48   : > { %1094 = vmatpush1.bf16.msra.mxu1 %v5107_v53  ;;  %992 = vmatprep.subr.bf16.mxu0 %v5108_v54  ;;  %v236_v53 = vld [vmem:[%s8093_s2] sm:$0xff]  ;;  %v5203_v54 = vld [vmem:[%s5807_s23 + $0x1f4] ss:$24 sps:$4 sm:$0xff]  }
  0x49   : > { %1095 = vmatprep.subr.bf16.mxu1 %v5110_v55  ;;  %v5206_v55 = vld [vmem:[%s5807_s23 + $0x4e4] ss:$24 sps:$4 sm:$0xff]   ;;  %348 = vperm.xlu0 %5028, %v236_v53   ;;  %v5272_v53 = vld [vmem:[%s5807_s23 + $0x3d4] ss:$24 sps:$4 sm:$0xff]  }
  0x4b   : > { %993 = vmatpush1.bf16.msra.mxu0 %v5112_v56  ;;  %v5990_v56 = vld [vmem:[%s8092_s1 + $0x50] ss:$8 sps:$4 sm:$0xff]  }
  0x4c   : > { %1096 = vmatpush1.bf16.msra.mxu1 %v5113_v57  ;;  %994 = vmatprep.subr.bf16.mxu0 %v5114_v58  ;;  %v5201_v57 = vld [vmem:[%s5807_s23 + $0x1f0] ss:$24 sps:$4 sm:$0xff]   ;;  %v5204_v58 = vld [vmem:[%s5807_s23 + $0x4e0] ss:$24 sps:$4 sm:$0xff]  }
  0x4d   : > { %1097 = vmatprep.subr.bf16.mxu1 %v5116_v59  ;;  %v5209_v59 = vld [vmem:[%s5807_s23 + $0x224] ss:$24 sps:$4 sm:$0xff]  }
  0x4f   : > { %995 = vmatpush1.bf16.msra.mxu0 %v5118_v60  ;;  %v5212_v60 = vld [vmem:[%s5807_s23 + $0x514] ss:$24 sps:$4 sm:$0xff]  }
  0x50   : > { %1098 = vmatpush1.bf16.msra.mxu1 %v5119_v61  ;;  %996 = vmatprep.subr.bf16.mxu0 %v5120_v62  ;;  %v238_v61 = vld [vmem:[%s8093_s2 + $0x10] sm:$0xff]  ;;  %v5207_v62 = vld [vmem:[%s5807_s23 + $0x220] ss:$24 sps:$4 sm:$0xff]  }
  0x51   : > { %1099 = vmatprep.subr.bf16.mxu1 %v5122_v63  ;;  %v6004_v63 = vld [vmem:[%s8092_s1 + $0x64] ss:$8 sps:$4 sm:$0xff]   ;;  %358 = vperm.xlu1 %5029, %v238_v61  }
  0x52   : > { %v248_v61 = vld [vmem:[%s8093_s2 + $0x60] sm:$0xff] }
  0x53   : > { %997 = vmatpush1.bf16.msra.mxu0 %v5124_v1  ;;  %v5210_v1 = vld [vmem:[%s5807_s23 + $0x510] ss:$24 sps:$4 sm:$0xff]  }
  0x54   : > { %1100 = vmatpush1.bf16.msra.mxu1 %v5125_v2  ;;  %1172 = vmatprep.subr.bf16.mxu0 %v5131_v3  ;;  %v237_v2 = vld [vmem:[%s8093_s2 + $0x8] sm:$0xff]  ;;  %v239_v3 = vld [vmem:[%s8093_s2 + $0x18] sm:$0xff] }
  0x55   : > { %2243 = vmatprep.subr.bf16.mxu1 %v5134_v4  ;;  %v5218_v4 = vld [vmem:[%s5807_s23 + $0x254] ss:$24 sps:$4 sm:$0xff]   ;;  %353 = vperm.xlu0 %5028, %v237_v2  }
  0x56   : > { %999 = vmatmul.mubr.bf16.vlgmr.msra.gmra.mrb[0].mxu0 %v5878_v5  ;;  %363 = vperm.xlu1 %5029, %v239_v3   ;;  %v5287_v2 = vld [vmem:[%s5807_s23 + $0x45c] ss:$24 sps:$4 sm:$0xff]  }
  0x57   : > { %1102 = vmatmul.mubr.bf16.vlgmr.msra.gmra.mrb[0].mxu1 %v5878_v5  ;;  %1173 = vmatpush1.bf16.msra.mxu0 %v5129_v6  ;;  %v5221_v6 = vld [vmem:[%s5807_s23 + $0x544] ss:$24 sps:$4 sm:$0xff]  }
  0x58   : > { %2244 = vmatpush1.bf16.msra.mxu1 %v5132_v7  ;;  %1174 = vmatprep.subr.bf16.mxu0 %v5137_v8  ;;  %v6022_v7 = vld [vmem:[%s8092_s1 + $0x60] ss:$8 sps:$4 sm:$0xff]   ;;  %v5290_v3 = vld [vmem:[%s5807_s23 + $0x464] ss:$24 sps:$4 sm:$0xff]  }
  0x59   : > { %2245 = vmatprep.subr.bf16.mxu1 %v5140_v9  ;;  %1008 = vmatprep.mubr.bf16.mxu0 %v5887_v10  ;;  %v5216_v8 = vld [vmem:[%s5807_s23 + $0x250] ss:$24 sps:$4 sm:$0xff]   ;;  %v5219_v9 = vld [vmem:[%s5807_s23 + $0x540] ss:$24 sps:$4 sm:$0xff]  }
  0x5a   : > { %1111 = vmatprep.mubr.bf16.mxu1 %v5887_v10 }
  0x5b   : > { %1175 = vmatpush1.bf16.msra.mxu0 %v5135_v11  ;;  %v5224_v11 = vld [vmem:[%s5807_s23 + $0x284] ss:$24 sps:$4 sm:$0xff]  }
  0x5c   : > { %2246 = vmatpush1.bf16.msra.mxu1 %v5138_v12  ;;  %1176 = vmatprep.subr.bf16.mxu0 %v5146_v13  ;;  %v5227_v12 = vld [vmem:[%s5807_s23 + $0x574] ss:$24 sps:$4 sm:$0xff]   ;;  %v5222_v13 = vld [vmem:[%s5807_s23 + $0x280] ss:$24 sps:$4 sm:$0xff]  }
  0x5d   : > { %2247 = vmatprep.subr.bf16.mxu1 %v5149_v14  ;;  %v5225_v14 = vld [vmem:[%s5807_s23 + $0x570] ss:$24 sps:$4 sm:$0xff]  }
  0x5e   : > { %1009 = vmatmul.mubr.bf16.gmra.mrb[4].mxu0 %v5900_v15 }
  0x5f   : > { %1112 = vmatmul.mubr.bf16.gmra.mrb[4].mxu1 %v5900_v15  ;;  %1177 = vmatpush1.bf16.msra.mxu0 %v5144_v16  ;;  %v5233_v16 = vld [vmem:[%s5807_s23 + $0x2b4] ss:$24 sps:$4 sm:$0xff]  }
  0x60   : > { %2248 = vmatpush1.bf16.msra.mxu1 %v5147_v17  ;;  %1178 = vmatprep.subr.bf16.mxu0 %v5152_v18  ;;  %v240_v17 = vld [vmem:[%s8093_s2 + $0x20] sm:$0xff]  ;;  %v241_v18 = vld [vmem:[%s8093_s2 + $0x28] sm:$0xff] }
  0x61   : > { %2249 = vmatprep.subr.bf16.mxu1 %v5155_v19  ;;  %1018 = vmatprep.mubr.bf16.mxu0 %v5909_v20  ;;  %v5236_v19 = vld [vmem:[%s5807_s23 + $0x5a4] ss:$24 sps:$4 sm:$0xff]  }
  0x62   : > { %1121 = vmatprep.mubr.bf16.mxu1 %v5909_v20  ;;  %368 = vperm.xlu0 %5028, %v240_v17   ;;  %v5308_v17 = vld [vmem:[%s5807_s23 + $0x4f4] ss:$24 sps:$4 sm:$0xff]  }
  0x63   : > { %1179 = vmatpush1.bf16.msra.mxu0 %v5150_v21  ;;  %v5231_v21 = vld [vmem:[%s5807_s23 + $0x2b0] ss:$24 sps:$4 sm:$0xff]   ;;  %373 = vperm.xlu1 %5029, %v241_v18  }
  0x64   : > { %2250 = vmatpush1.bf16.msra.mxu1 %v5153_v22  ;;  %1180 = vmatprep.subr.bf16.mxu0 %v5161_v23  ;;  %v5234_v22 = vld [vmem:[%s5807_s23 + $0x5a0] ss:$24 sps:$4 sm:$0xff]   ;;  %v5239_v23 = vld [vmem:[%s5807_s23 + $0x2e4] ss:$24 sps:$4 sm:$0xff]  }
  0x65   : > { %2251 = vmatprep.subr.bf16.mxu1 %v5164_v24  ;;  %v5242_v24 = vld [vmem:[%s5807_s23 + $0x5d4] ss:$24 sps:$4 sm:$0xff]   ;;  %v5303_v18 = vld [vmem:[%s5807_s23 + $0x4e8] ss:$24 sps:$4 sm:$0xff]  }
  0x66   : > { %1019 = vmatmul.mubr.bf16.gmra.mrb[8].mxu0 %v5922_v25 }
  0x67   : > { %1122 = vmatmul.mubr.bf16.gmra.mrb[8].mxu1 %v5922_v25  ;;  %1181 = vmatpush1.bf16.msra.mxu0 %v5159_v26  ;;  %v5237_v26 = vld [vmem:[%s5807_s23 + $0x2e0] ss:$24 sps:$4 sm:$0xff]  }
  0x68   : > { %2252 = vmatpush1.bf16.msra.mxu1 %v5162_v27  ;;  %1182 = vmatprep.subr.bf16.mxu0 %v5167_v28  ;;  %v5240_v27 = vld [vmem:[%s5807_s23 + $0x5d0] ss:$24 sps:$4 sm:$0xff]   ;;  %v5248_v28 = vld [vmem:[%s5807_s23 + $0x314] ss:$24 sps:$4 sm:$0xff]  }
  0x69   : > { %2253 = vmatprep.subr.bf16.mxu1 %v5170_v29  ;;  %1028 = vmatprep.mubr.bf16.mxu0 %v5931_v30  ;;  %v243_v29 = vld [vmem:[%s8093_s2 + $0x38] sm:$0xff] }
  0x6a   : > { %1131 = vmatprep.mubr.bf16.mxu1 %v5931_v30  ;;  %383 = vperm.xlu1 %5029, %v243_v29   ;;  %v5323_v29 = vld [vmem:[%s5807_s23 + $0x57c] ss:$24 sps:$4 sm:$0xff]  }
  0x6b   : > { %1183 = vmatpush1.bf16.msra.mxu0 %v5165_v31  ;;  %v242_v31 = vld [vmem:[%s8093_s2 + $0x30] sm:$0xff] }
  0x6c   : > { %2254 = vmatpush1.bf16.msra.mxu1 %v5168_v32  ;;  %1184 = vmatprep.subr.bf16.mxu0 %v5173_v33  ;;  %v5243_v32 = vld [vmem:[%s5807_s23 + $0x308] ss:$24 sps:$4 sm:$0xff]  }
  0x6d   : > { %2255 = vmatprep.subr.bf16.mxu1 %v5176_v34  ;;  %378 = vperm.xlu0 %5028, %v242_v31   ;;  %v5246_v33 = vld [vmem:[%s5807_s23 + $0x310] ss:$24 sps:$4 sm:$0xff]   ;;  %v5251_v34 = vld [vmem:[%s5807_s23 + $0x33c] ss:$24 sps:$4 sm:$0xff]  }
  0x6e   : > { %1029 = vmatmul.mubr.bf16.gmra.mrb[12].mxu0 %v5943_v35  ;;  %v5326_v31 = vld [vmem:[%s5807_s23 + $0x584] ss:$24 sps:$4 sm:$0xff]  }
  0x6f   : > { %1132 = vmatmul.mubr.bf16.gmra.mrb[12].mxu1 %v5943_v35  ;;  %1185 = vmatpush1.bf16.msra.mxu0 %v5171_v36  ;;  %v5254_v36 = vld [vmem:[%s5807_s23 + $0x344] ss:$24 sps:$4 sm:$0xff]  }
  0x70   : > { %2256 = vmatpush1.bf16.msra.mxu1 %v5174_v37  ;;  %1186 = vmatprep.subr.bf16.mxu0 %v5179_v38  ;;  %v5249_v37 = vld [vmem:[%s5807_s23 + $0x338] ss:$24 sps:$4 sm:$0xff]  }
  0x71   : > { %2257 = vmatprep.subr.bf16.mxu1 %v5182_v39  ;;  %1038 = vmatprep.mubr.bf16.mxu0 %v5953_v40  ;;  %v5252_v38 = vld [vmem:[%s5807_s23 + $0x340] ss:$24 sps:$4 sm:$0xff]   ;;  %v5257_v39 = vld [vmem:[%s5807_s23 + $0x36c] ss:$24 sps:$4 sm:$0xff]  }
  0x72   : > { %1141 = vmatprep.mubr.bf16.mxu1 %v5953_v40 }
  0x73   : > { %1187 = vmatpush1.bf16.msra.mxu0 %v5177_v41  ;;  %v245_v41 = vld [vmem:[%s8093_s2 + $0x48] sm:$0xff] }
  0x74   : > { %2258 = vmatpush1.bf16.msra.mxu1 %v5180_v42  ;;  %1188 = vmatprep.subr.bf16.mxu0 %v5188_v43  ;;  %v244_v42 = vld [vmem:[%s8093_s2 + $0x40] sm:$0xff] }
  0x75   : > { %2259 = vmatprep.subr.bf16.mxu1 %v5191_v44  ;;  %393 = vperm.xlu1 %5029, %v245_v41   ;;  %v5255_v43 = vld [vmem:[%s5807_s23 + $0x368] ss:$24 sps:$4 sm:$0xff]   ;;  %v5335_v41 = vld [vmem:[%s5807_s23 + $0x5dc] ss:$24 sps:$4 sm:$0xff]  }
  0x76   : > { %1039 = vmatmul.mubr.bf16.gmra.mrb[16].mxu0 %v5965_v45  ;;  %388 = vperm.xlu0 %5028, %v244_v42   ;;  %v5258_v44 = vld [vmem:[%s5807_s23 + $0x370] ss:$24 sps:$4 sm:$0xff]   ;;  %v5338_v42 = vld [vmem:[%s5807_s23 + $0x5e4] ss:$24 sps:$4 sm:$0xff]  }
  0x77   : > { %1142 = vmatmul.mubr.bf16.gmra.mrb[16].mxu1 %v5965_v45  ;;  %1189 = vmatpush1.bf16.msra.mxu0 %v5186_v46  ;;  %v5263_v46 = vld [vmem:[%s5807_s23 + $0x39c] ss:$24 sps:$4 sm:$0xff]  }
  0x78   : > { %2260 = vmatpush1.bf16.msra.mxu1 %v5189_v47  ;;  %1190 = vmatprep.subr.bf16.mxu0 %v5194_v48  ;;  %v5266_v47 = vld [vmem:[%s5807_s23 + $0x3a4] ss:$24 sps:$4 sm:$0xff]   ;;  %v5261_v48 = vld [vmem:[%s5807_s23 + $0x398] ss:$24 sps:$4 sm:$0xff]  }
  0x79   : > { %2261 = vmatprep.subr.bf16.mxu1 %v5197_v49  ;;  %1048 = vmatprep.mubr.bf16.mxu0 %v5975_v50  ;;  %v5264_v49 = vld [vmem:[%s5807_s23 + $0x3a0] ss:$24 sps:$4 sm:$0xff]  }
  0x7a   : > { %1151 = vmatprep.mubr.bf16.mxu1 %v5975_v50 }
  0x7b   : > { %1191 = vmatpush1.bf16.msra.mxu0 %v5192_v51  ;;  %v246_v51 = vld [vmem:[%s8093_s2 + $0x50] sm:$0xff] }
  0x7c   : > { %2262 = vmatpush1.bf16.msra.mxu1 %v5195_v52  ;;  %1192 = vmatprep.subr.bf16.mxu0 %v5203_v54  ;;  %v5269_v52 = vld [vmem:[%s5807_s23 + $0x3cc] ss:$24 sps:$4 sm:$0xff]   ;;  %v5270_v54 = vld [vmem:[%s5807_s23 + $0x3d0] ss:$24 sps:$4 sm:$0xff]  }
  0x7d   : > { %2263 = vmatprep.subr.bf16.mxu1 %v5206_v55  ;;  %398 = vperm.xlu0 %5028, %v246_v51   ;;  %v5275_v55 = vld [vmem:[%s5807_s23 + $0x3fc] ss:$24 sps:$4 sm:$0xff]   ;;  %v6178_v51 = vld [vmem:[%s8092_s1] ss:$8 sps:$4 sm:$0xff]  }
  0x7e   : > { %1049 = vmatmul.mubr.bf16.gmra.mrb[20].mxu0 %v5990_v56 }
  0x7f   : > { %1152 = vmatmul.mubr.bf16.gmra.mrb[20].mxu1 %v5990_v56  ;;  %1193 = vmatpush1.bf16.msra.mxu0 %v5201_v57  ;;  %v5278_v57 = vld [vmem:[%s5807_s23 + $0x404] ss:$24 sps:$4 sm:$0xff]  }
  0x80   : > { %2264 = vmatpush1.bf16.msra.mxu1 %v5204_v58  ;;  %1194 = vmatprep.subr.bf16.mxu0 %v5209_v59  ;;  %v5273_v58 = vld [vmem:[%s5807_s23 + $0x3f8] ss:$24 sps:$4 sm:$0xff]  }
  0x81   : > { %2265 = vmatprep.subr.bf16.mxu1 %v5212_v60  ;;  %1058 = vmatprep.mubr.bf16.mxu0 %v6004_v63  ;;  %v5276_v59 = vld [vmem:[%s5807_s23 + $0x400] ss:$24 sps:$4 sm:$0xff]   ;;  %v249_v60 = vld [vmem:[%s8093_s2 + $0x68] sm:$0xff] }
  0x82   : > { %1161 = vmatprep.mubr.bf16.mxu1 %v6004_v63  ;;  %408 = vperm.xlu0 %5028, %v248_v61   ;;  %v5357_v61 = vld [vmem:[%s5807_s23 + $0x690] ss:$24 sps:$4 sm:$0xff]  }
  0x83   : > { %1195 = vmatpush1.bf16.msra.mxu0 %v5207_v62  ;;  %v5284_v62 = vld [vmem:[%s5807_s23 + $0x434] ss:$24 sps:$4 sm:$0xff]  }
  0x84   : > { %2266 = vmatpush1.bf16.msra.mxu1 %v5210_v1  ;;  %1196 = vmatprep.subr.bf16.mxu0 %v5218_v4  ;;  %v5282_v1 = vld [vmem:[%s5807_s23 + $0x430] ss:$24 sps:$4 sm:$0xff]  }
  0x85   : > { %2267 = vmatprep.subr.bf16.mxu1 %v5221_v6  ;;  %v5285_v4 = vld [vmem:[%s5807_s23 + $0x458] ss:$24 sps:$4 sm:$0xff]   ;;  %v5293_v6 = vld [vmem:[%s5807_s23 + $0x48c] ss:$24 sps:$4 sm:$0xff]  }
  0x86   : > { %1059 = vmatmul.mubr.bf16.gmra.mrb[24].mxu0 %v6022_v7 }
  0x87   : > { %1162 = vmatmul.mubr.bf16.gmra.mrb[24].mxu1 %v6022_v7  ;;  %1197 = vmatpush1.bf16.msra.mxu0 %v5216_v8  ;;  %v5296_v8 = vld [vmem:[%s5807_s23 + $0x494] ss:$24 sps:$4 sm:$0xff]  }
  0x88   : > { %2268 = vmatpush1.bf16.msra.mxu1 %v5219_v9  ;;  %1198 = vmatprep.subr.bf16.mxu0 %v5224_v11  ;;  %v5291_v9 = vld [vmem:[%s5807_s23 + $0x488] ss:$24 sps:$4 sm:$0xff]   ;;  %v5299_v11 = vld [vmem:[%s5807_s23 + $0x4bc] ss:$24 sps:$4 sm:$0xff]  }
  0x89   : > { %2269 = vmatprep.subr.bf16.mxu1 %v5227_v12  ;;  %1204 = vmatprep.mubr.bf16.mxu0 %v5797_v0  ;;  %v5302_v12 = vld [vmem:[%s5807_s23 + $0x4c4] ss:$24 sps:$4 sm:$0xff]  }
  0x8a   : > { %2275 = vmatprep.mubr.bf16.mxu1 %v5797_v0  ;;  %v5245_v0 = vld [vmem:[%s5807_s23 + $0x30c] ss:$24 sps:$4 sm:$0xff]  }
  0x8b   : > { %1199 = vmatpush1.bf16.msra.mxu0 %v5222_v13  ;;  %v5297_v13 = vld [vmem:[%s5807_s23 + $0x4b8] ss:$24 sps:$4 sm:$0xff]  }
  0x8c   : > { %2270 = vmatpush1.bf16.msra.mxu1 %v5225_v14  ;;  %1200 = vmatprep.subr.bf16.mxu0 %v5233_v16  ;;  %v5300_v14 = vld [vmem:[%s5807_s23 + $0x4c0] ss:$24 sps:$4 sm:$0xff]   ;;  %v5305_v16 = vld [vmem:[%s5807_s23 + $0x4ec] ss:$24 sps:$4 sm:$0xff]  }
  0x8d   : > { %2271 = vmatprep.subr.bf16.mxu1 %v5236_v19  ;;  %v5306_v19 = vld [vmem:[%s5807_s23 + $0x4f0] ss:$24 sps:$4 sm:$0xff]  }
  0x8f   : > { %1201 = vmatpush1.bf16.msra.mxu0 %v5231_v21  ;;  %v5311_v21 = vld [vmem:[%s5807_s23 + $0x51c] ss:$24 sps:$4 sm:$0xff]  }
  0x90   : > { %2272 = vmatpush1.bf16.msra.mxu1 %v5234_v22  ;;  %1202 = vmatprep.subr.bf16.mxu0 %v5239_v23  ;;  %v5314_v22 = vld [vmem:[%s5807_s23 + $0x524] ss:$24 sps:$4 sm:$0xff]   ;;  %v5309_v23 = vld [vmem:[%s5807_s23 + $0x518] ss:$24 sps:$4 sm:$0xff]  }
  0x91   : > { %2273 = vmatprep.subr.bf16.mxu1 %v5242_v24  ;;  %v5312_v24 = vld [vmem:[%s5807_s23 + $0x520] ss:$24 sps:$4 sm:$0xff]  }
  0x93   : > { %1203 = vmatpush1.bf16.msra.mxu0 %v5237_v26  ;;  %v5317_v26 = vld [vmem:[%s5807_s23 + $0x54c] ss:$24 sps:$4 sm:$0xff]  }
  0x94   : > { %2274 = vmatpush1.bf16.msra.mxu1 %v5240_v27  ;;  %2346 = vmatprep.subr.bf16.mxu0 %v5245_v0  ;;  %v5320_v27 = vld [vmem:[%s5807_s23 + $0x554] ss:$24 sps:$4 sm:$0xff]   ;;  %v5315_v0 = vld [vmem:[%s5807_s23 + $0x548] ss:$24 sps:$4 sm:$0xff]  }
  0x95   : > { %2449 = vmatprep.subr.bf16.mxu1 %v5248_v28  ;;  %v5318_v28 = vld [vmem:[%s5807_s23 + $0x550] ss:$24 sps:$4 sm:$0xff]  }
  0x96   : > { %1205 = vmatmul.mubr.bf16.vlgmr.msra.gmra.mrb[28].mxu0 %v5878_v5 }
  0x97   : > { %2276 = vmatmul.mubr.bf16.vlgmr.msra.gmra.mrb[28].mxu1 %v5878_v5  ;;  %2347 = vmatpush1.bf16.msra.mxu0 %v5243_v32  ;;  %v5260_v5 = vld [vmem:[%s5807_s23 + $0x374] ss:$24 sps:$4 sm:$0xff]   ;;  %v5321_v32 = vld [vmem:[%s5807_s23 + $0x578] ss:$24 sps:$4 sm:$0xff]  }
  0x98   : > { %2450 = vmatpush1.bf16.msra.mxu1 %v5246_v33  ;;  %2348 = vmatprep.subr.bf16.mxu0 %v5251_v34  ;;  %v5324_v33 = vld [vmem:[%s5807_s23 + $0x580] ss:$24 sps:$4 sm:$0xff]   ;;  %v5329_v34 = vld [vmem:[%s5807_s23 + $0x5ac] ss:$24 sps:$4 sm:$0xff]  }
  0x99   : > { %2451 = vmatprep.subr.bf16.mxu1 %v5254_v36  ;;  %1214 = vmatprep.mubr.bf16.mxu0 %v5887_v10  ;;  %v5332_v36 = vld [vmem:[%s5807_s23 + $0x5b4] ss:$24 sps:$4 sm:$0xff]  }
  0x9a   : > { %2285 = vmatprep.mubr.bf16.mxu1 %v5887_v10  ;;  %v247_v10 = vld [vmem:[%s8093_s2 + $0x58] sm:$0xff] }
  0x9b   : > { %2349 = vmatpush1.bf16.msra.mxu0 %v5249_v37  ;;  %403 = vperm.xlu1 %5029, %v247_v10   ;;  %v6159_v37 = vld [vmem:[%s8092_s1 + $0x4] ss:$8 sps:$4 sm:$0xff]   ;;  %v5350_v10 = vld [vmem:[%s5807_s23 + $0x63c] ss:$24 sps:$4 sm:$0xff]  }
  0x9c   : > { %2452 = vmatpush1.bf16.msra.mxu1 %v5252_v38  ;;  %2350 = vmatprep.subr.bf16.mxu0 %v5257_v39  ;;  %v5327_v38 = vld [vmem:[%s5807_s23 + $0x5a8] ss:$24 sps:$4 sm:$0xff]  }
  0x9d   : > { %2453 = vmatprep.subr.bf16.mxu1 %v5260_v5  ;;  %v5330_v39 = vld [vmem:[%s5807_s23 + $0x5b0] ss:$24 sps:$4 sm:$0xff]  }
  0x9e   : > { %1215 = vmatmul.mubr.bf16.gmra.mrb[32].mxu0 %v5900_v15  ;;  %v5333_v5 = vld [vmem:[%s5807_s23 + $0x5d8] ss:$24 sps:$4 sm:$0xff]  }
  0x9f   : > { %2286 = vmatmul.mubr.bf16.gmra.mrb[32].mxu1 %v5900_v15  ;;  %2351 = vmatpush1.bf16.msra.mxu0 %v5255_v43  ;;  %v5267_v15 = vld [vmem:[%s5807_s23 + $0x3c8] ss:$24 sps:$4 sm:$0xff]  }
  0xa0   : > { %2454 = vmatpush1.bf16.msra.mxu1 %v5258_v44  ;;  %2352 = vmatprep.subr.bf16.mxu0 %v5263_v46  ;;  %v5336_v43 = vld [vmem:[%s5807_s23 + $0x5e0] ss:$24 sps:$4 sm:$0xff]   ;;  %v5341_v44 = vld [vmem:[%s5807_s23 + $0x604] ss:$24 sps:$4 sm:$0xff]  }
  0xa1   : > { %2455 = vmatprep.subr.bf16.mxu1 %v5266_v47  ;;  %1224 = vmatprep.mubr.bf16.mxu0 %v5909_v20  ;;  %v5344_v46 = vld [vmem:[%s5807_s23 + $0x60c] ss:$24 sps:$4 sm:$0xff]   ;;  %v5339_v47 = vld [vmem:[%s5807_s23 + $0x600] ss:$24 sps:$4 sm:$0xff]  }
  0xa2   : > { %2295 = vmatprep.mubr.bf16.mxu1 %v5909_v20  ;;  %v5281_v20 = vld [vmem:[%s5807_s23 + $0x42c] ss:$24 sps:$4 sm:$0xff]   ;;  %413 = vperm.xlu1 %5029, %v249_v60   ;;  %v6200_v60 = vld [vmem:[%s8092_s1 + $0x10] ss:$8 sps:$4 sm:$0xff]  }
  0xa3   : > { %2353 = vmatpush1.bf16.msra.mxu0 %v5261_v48  ;;  %v5342_v48 = vld [vmem:[%s5807_s23 + $0x608] ss:$24 sps:$4 sm:$0xff]  }
  0xa4   : > { %2456 = vmatpush1.bf16.msra.mxu1 %v5264_v49  ;;  %2354 = vmatprep.subr.bf16.mxu0 %v5269_v52  ;;  %v5347_v49 = vld [vmem:[%s5807_s23 + $0x634] ss:$24 sps:$4 sm:$0xff]   ;;  %v5345_v52 = vld [vmem:[%s5807_s23 + $0x630] ss:$24 sps:$4 sm:$0xff]  }
  0xa5   : > { %2457 = vmatprep.subr.bf16.mxu1 %v5272_v53  ;;  %v5348_v53 = vld [vmem:[%s5807_s23 + $0x638] ss:$24 sps:$4 sm:$0xff]  }
  0xa6   : > { %1225 = vmatmul.mubr.bf16.gmra.mrb[36].mxu0 %v5922_v25 }
  0xa7   : > { %2296 = vmatmul.mubr.bf16.gmra.mrb[36].mxu1 %v5922_v25  ;;  %2355 = vmatpush1.bf16.msra.mxu0 %v5267_v15  ;;  %v5279_v25 = vld [vmem:[%s5807_s23 + $0x428] ss:$24 sps:$4 sm:$0xff]   ;;  %v5353_v15 = vld [vmem:[%s5807_s23 + $0x664] ss:$24 sps:$4 sm:$0xff]  }
  0xa8   : > { %2458 = vmatpush1.bf16.msra.mxu1 %v5270_v54  ;;  %2356 = vmatprep.subr.bf16.mxu0 %v5275_v55  ;;  %v5356_v54 = vld [vmem:[%s5807_s23 + $0x66c] ss:$24 sps:$4 sm:$0xff]   ;;  %v6189_v55 = vld [vmem:[%s8092_s1 + $0x14] ss:$8 sps:$4 sm:$0xff]  }
  0xa9   : > { %2459 = vmatprep.subr.bf16.mxu1 %v5278_v57  ;;  %1234 = vmatprep.mubr.bf16.mxu0 %v5931_v30  ;;  %v5351_v57 = vld [vmem:[%s5807_s23 + $0x660] ss:$24 sps:$4 sm:$0xff]  }
  0xaa   : > { %2305 = vmatprep.mubr.bf16.mxu1 %v5931_v30  ;;  %v5288_v30 = vld [vmem:[%s5807_s23 + $0x460] ss:$24 sps:$4 sm:$0xff]  }
  0xab   : > { %2357 = vmatpush1.bf16.msra.mxu0 %v5273_v58  ;;  %v5354_v58 = vld [vmem:[%s5807_s23 + $0x668] ss:$24 sps:$4 sm:$0xff]  }
  0xac   : > { %2460 = vmatpush1.bf16.msra.mxu1 %v5276_v59  ;;  %2358 = vmatprep.subr.bf16.mxu0 %v5281_v20  ;;  %v5359_v59 = vld [vmem:[%s5807_s23 + $0x694] ss:$24 sps:$4 sm:$0xff]  }
  0xad   : > { %2461 = vmatprep.subr.bf16.mxu1 %v5284_v62  ;;  %v5362_v20 = vld [vmem:[%s5807_s23 + $0x69c] ss:$24 sps:$4 sm:$0xff]   ;;  %v5360_v62 = vld [vmem:[%s5807_s23 + $0x698] ss:$24 sps:$4 sm:$0xff]  }
  0xae   : > { %1235 = vmatmul.mubr.bf16.gmra.mrb[40].mxu0 %v5943_v35 }
  0xaf   : > { %2306 = vmatmul.mubr.bf16.gmra.mrb[40].mxu1 %v5943_v35  ;;  %2359 = vmatpush1.bf16.msra.mxu0 %v5279_v25  ;;  %v5294_v35 = vld [vmem:[%s5807_s23 + $0x490] ss:$24 sps:$4 sm:$0xff]   ;;  %v5365_v25 = vld [vmem:[%s5807_s23 + $0x6c4] ss:$24 sps:$4 sm:$0xff]  }
  0xb0   : > { %2462 = vmatpush1.bf16.msra.mxu1 %v5282_v1  ;;  %2360 = vmatprep.subr.bf16.mxu0 %v5287_v2  ;;  %v5368_v1 = vld [vmem:[%s5807_s23 + $0x6cc] ss:$24 sps:$4 sm:$0xff]  }
  0xb1   : > { %2463 = vmatprep.subr.bf16.mxu1 %v5290_v3  ;;  %1244 = vmatprep.mubr.bf16.mxu0 %v5953_v40  ;;  %v6211_v2 = vld [vmem:[%s8092_s1 + $0x24] ss:$8 sps:$4 sm:$0xff]   ;;  %v5363_v3 = vld [vmem:[%s5807_s23 + $0x6c0] ss:$24 sps:$4 sm:$0xff]  }
  0xb2   : > { %2315 = vmatprep.mubr.bf16.mxu1 %v5953_v40 }
  0xb3   : > { %2361 = vmatpush1.bf16.msra.mxu0 %v5285_v4  ;;  %v5366_v4 = vld [vmem:[%s5807_s23 + $0x6c8] ss:$24 sps:$4 sm:$0xff]  }
  0xb4   : > { %2464 = vmatpush1.bf16.msra.mxu1 %v5288_v30  ;;  %2362 = vmatprep.subr.bf16.mxu0 %v5293_v6  ;;  %v5371_v30 = vld [vmem:[%s5807_s23 + $0x6f4] ss:$24 sps:$4 sm:$0xff]  }
  0xb5   : > { %2465 = vmatprep.subr.bf16.mxu1 %v5296_v8  ;;  %v5374_v6 = vld [vmem:[%s5807_s23 + $0x6fc] ss:$24 sps:$4 sm:$0xff]   ;;  %v6222_v8 = vld [vmem:[%s8092_s1 + $0x20] ss:$8 sps:$4 sm:$0xff]  }
  0xb6   : > { %1245 = vmatmul.mubr.bf16.gmra.mrb[44].mxu0 %v5965_v45 }
  0xb7   : > { %2316 = vmatmul.mubr.bf16.gmra.mrb[44].mxu1 %v5965_v45  ;;  %2363 = vmatpush1.bf16.msra.mxu0 %v5291_v9  ;;  %v5369_v9 = vld [vmem:[%s5807_s23 + $0x6f0] ss:$24 sps:$4 sm:$0xff]  }
  0xb8   : > { %2466 = vmatpush1.bf16.msra.mxu1 %v5294_v35  ;;  %2364 = vmatprep.subr.bf16.mxu0 %v5299_v11  ;;  %v5372_v35 = vld [vmem:[%s5807_s23 + $0x6f8] ss:$24 sps:$4 sm:$0xff]   ;;  %v5377_v11 = vld [vmem:[%s5807_s23 + $0x724] ss:$24 sps:$4 sm:$0xff]  }
  0xb9   : > { %2467 = vmatprep.subr.bf16.mxu1 %v5302_v12  ;;  %1254 = vmatprep.mubr.bf16.mxu0 %v5975_v50  ;;  %v5380_v12 = vld [vmem:[%s5807_s23 + $0x72c] ss:$24 sps:$4 sm:$0xff]  }
  0xba   : > { %2325 = vmatprep.mubr.bf16.mxu1 %v5975_v50 }
  0xbb   : > { %2365 = vmatpush1.bf16.msra.mxu0 %v5297_v13  ;;  %v6233_v13 = vld [vmem:[%s8092_s1 + $0x34] ss:$8 sps:$4 sm:$0xff]  }
  0xbc   : > { %2468 = vmatpush1.bf16.msra.mxu1 %v5300_v14  ;;  %2366 = vmatprep.subr.bf16.mxu0 %v5305_v16  ;;  %v5375_v14 = vld [vmem:[%s5807_s23 + $0x720] ss:$24 sps:$4 sm:$0xff]  }
  0xbd   : > { %2469 = vmatprep.subr.bf16.mxu1 %v5308_v17  ;;  %v5378_v16 = vld [vmem:[%s5807_s23 + $0x728] ss:$24 sps:$4 sm:$0xff]   ;;  %v5383_v17 = vld [vmem:[%s5807_s23 + $0x754] ss:$24 sps:$4 sm:$0xff]  }
  0xbe   : > { %1255 = vmatmul.mubr.bf16.gmra.mrb[48].mxu0 %v5990_v56 }
  0xbf   : > { %2326 = vmatmul.mubr.bf16.gmra.mrb[48].mxu1 %v5990_v56  ;;  %2367 = vmatpush1.bf16.msra.mxu0 %v5303_v18  ;;  %v5386_v18 = vld [vmem:[%s5807_s23 + $0x75c] ss:$24 sps:$4 sm:$0xff]  }
  0xc0   : > { %2470 = vmatpush1.bf16.msra.mxu1 %v5306_v19  ;;  %2368 = vmatprep.subr.bf16.mxu0 %v5311_v21  ;;  %v6244_v19 = vld [vmem:[%s8092_s1 + $0x30] ss:$8 sps:$4 sm:$0xff]  }
  0xc1   : > { %2471 = vmatprep.subr.bf16.mxu1 %v5314_v22  ;;  %1264 = vmatprep.mubr.bf16.mxu0 %v6004_v63  ;;  %v5381_v21 = vld [vmem:[%s5807_s23 + $0x750] ss:$24 sps:$4 sm:$0xff]  }
  0xc2   : > { %2335 = vmatprep.mubr.bf16.mxu1 %v6004_v63  ;;  %v5384_v22 = vld [vmem:[%s5807_s23 + $0x758] ss:$24 sps:$4 sm:$0xff]  }
  0xc3   : > { %2369 = vmatpush1.bf16.msra.mxu0 %v5309_v23  ;;  %v5389_v23 = vld [vmem:[%s5807_s23 + $0x784] ss:$24 sps:$4 sm:$0xff]  }
  0xc4   : > { %2472 = vmatpush1.bf16.msra.mxu1 %v5312_v24  ;;  %2370 = vmatprep.subr.bf16.mxu0 %v5317_v26  ;;  %v5392_v24 = vld [vmem:[%s5807_s23 + $0x78c] ss:$24 sps:$4 sm:$0xff]   ;;  %v5387_v26 = vld [vmem:[%s5807_s23 + $0x780] ss:$24 sps:$4 sm:$0xff]  }
  0xc5   : > { %2473 = vmatprep.subr.bf16.mxu1 %v5320_v27  ;;  %v5390_v27 = vld [vmem:[%s5807_s23 + $0x788] ss:$24 sps:$4 sm:$0xff]  }
  0xc6   : > { %1265 = vmatmul.mubr.bf16.gmra.mrb[52].mxu0 %v6022_v7 }
  0xc7   : > { %2336 = vmatmul.mubr.bf16.gmra.mrb[52].mxu1 %v6022_v7  ;;  %2371 = vmatpush1.bf16.msra.mxu0 %v5315_v0  ;;  %v5395_v0 = vld [vmem:[%s5807_s23 + $0x7b4] ss:$24 sps:$4 sm:$0xff]  }
  0xc8   : > { %2474 = vmatpush1.bf16.msra.mxu1 %v5318_v28  ;;  %2372 = vmatprep.subr.bf16.mxu0 %v5323_v29  ;;  %v5398_v28 = vld [vmem:[%s5807_s23 + $0x7bc] ss:$24 sps:$4 sm:$0xff]   ;;  %v5396_v29 = vld [vmem:[%s5807_s23 + $0x7b8] ss:$24 sps:$4 sm:$0xff]  }
  0xc9   : > { %2475 = vmatprep.subr.bf16.mxu1 %v5326_v31  ;;  %2378 = vmatprep.mubr.bf16.mxu0 %v6159_v37  ;;  %v5401_v31 = vld [vmem:[%s5807_s23 + $0x7e4] ss:$24 sps:$4 sm:$0xff]  }
  0xca   : > { %2481 = vmatprep.mubr.bf16.mxu1 %v6159_v37 }
  0xcb   : > { %2373 = vmatpush1.bf16.msra.mxu0 %v5321_v32  ;;  %v5404_v32 = vld [vmem:[%s5807_s23 + $0x7ec] ss:$24 sps:$4 sm:$0xff]  }
  0xcc   : > { %2476 = vmatpush1.bf16.msra.mxu1 %v5324_v33  ;;  %2374 = vmatprep.subr.bf16.mxu0 %v5329_v34  ;;  %v5402_v33 = vld [vmem:[%s5807_s23 + $0x7e8] ss:$24 sps:$4 sm:$0xff]   ;;  %v5407_v34 = vld [vmem:[%s5807_s23 + $0x814] ss:$24 sps:$4 sm:$0xff]  }
  0xcd   : > { %2477 = vmatprep.subr.bf16.mxu1 %v5332_v36  ;;  %v5410_v36 = vld [vmem:[%s5807_s23 + $0x81c] ss:$24 sps:$4 sm:$0xff]  }
  0xcf   : > { %2375 = vmatpush1.bf16.msra.mxu0 %v5327_v38  ;;  %v5408_v38 = vld [vmem:[%s5807_s23 + $0x818] ss:$24 sps:$4 sm:$0xff]  }
  0xd0   : > { %2478 = vmatpush1.bf16.msra.mxu1 %v5330_v39  ;;  %2376 = vmatprep.subr.bf16.mxu0 %v5335_v41  ;;  %v5413_v39 = vld [vmem:[%s5807_s23 + $0x844] ss:$24 sps:$4 sm:$0xff]  }
  0xd1   : > { %2479 = vmatprep.subr.bf16.mxu1 %v5338_v42  ;;  %v5416_v41 = vld [vmem:[%s5807_s23 + $0x84c] ss:$24 sps:$4 sm:$0xff]   ;;  %v5414_v42 = vld [vmem:[%s5807_s23 + $0x848] ss:$24 sps:$4 sm:$0xff]  }
  0xd3   : > { %2377 = vmatpush1.bf16.msra.mxu0 %v5333_v5  ;;  %v5419_v5 = vld [vmem:[%s5807_s23 + $0x874] ss:$24 sps:$4 sm:$0xff]  }
  0xd4   : > { %2480 = vmatpush1.bf16.msra.mxu1 %v5336_v43  ;;  %3519 = vmatprep.subr.bf16.mxu0 %v5341_v44  ;;  %v5422_v43 = vld [vmem:[%s5807_s23 + $0x87c] ss:$24 sps:$4 sm:$0xff]   ;;  %v5420_v44 = vld [vmem:[%s5807_s23 + $0x878] ss:$24 sps:$4 sm:$0xff]  }
  0xd5   : > { %3622 = vmatprep.subr.bf16.mxu1 %v5344_v46  ;;  %v5425_v46 = vld [vmem:[%s5807_s23 + $0x8a4] ss:$24 sps:$4 sm:$0xff]  }
  0xd6   : > { %2379 = vmatmul.mubr.bf16.vlgmr.msra.gmra.mrb[56].mxu0 %v6178_v51 }
  0xd7   : > { %2482 = vmatmul.mubr.bf16.vlgmr.msra.gmra.mrb[56].mxu1 %v6178_v51  ;;  %3520 = vmatpush1.bf16.msra.mxu0 %v5339_v47  ;;  %v5428_v47 = vld [vmem:[%s5807_s23 + $0x8ac] ss:$24 sps:$4 sm:$0xff]  }
  0xd8   : > { %3623 = vmatpush1.bf16.msra.mxu1 %v5342_v48  ;;  %3521 = vmatprep.subr.bf16.mxu0 %v5347_v49  ;;  %v5426_v48 = vld [vmem:[%s5807_s23 + $0x8a8] ss:$24 sps:$4 sm:$0xff]   ;;  %v5431_v49 = vld [vmem:[%s5807_s23 + $0x8d4] ss:$24 sps:$4 sm:$0xff]  }
  0xd9   : > { %3624 = vmatprep.subr.bf16.mxu1 %v5350_v10  ;;  %2388 = vmatprep.mubr.bf16.mxu0 %v6189_v55  ;;  %v5434_v10 = vld [vmem:[%s5807_s23 + $0x8dc] ss:$24 sps:$4 sm:$0xff]  }
  0xda   : > { %2491 = vmatprep.mubr.bf16.mxu1 %v6189_v55 }
  0xdb   : > { %3522 = vmatpush1.bf16.msra.mxu0 %v5345_v52  ;;  %v5429_v52 = vld [vmem:[%s5807_s23 + $0x8d0] ss:$24 sps:$4 sm:$0xff]  }
  0xdc   : > { %3625 = vmatpush1.bf16.msra.mxu1 %v5348_v53  ;;  %3523 = vmatprep.subr.bf16.mxu0 %v5353_v15  ;;  %v5432_v53 = vld [vmem:[%s5807_s23 + $0x8d8] ss:$24 sps:$4 sm:$0xff]   ;;  %v5437_v15 = vld [vmem:[%s5807_s23 + $0x614] ss:$24 sps:$4 sm:$0xff]  }
  0xdd   : > { %3626 = vmatprep.subr.bf16.mxu1 %v5356_v54  ;;  %v5435_v54 = vld [vmem:[%s5807_s23 + $0x610] ss:$24 sps:$4 sm:$0xff]  }
  0xde   : > { %2389 = vmatmul.mubr.bf16.gmra.mrb[60].mxu0 %v6200_v60 }
  0xdf   : > { %2492 = vmatmul.mubr.bf16.gmra.mrb[60].mxu1 %v6200_v60  ;;  %3524 = vmatpush1.bf16.msra.mxu0 %v5351_v57  ;;  %v5440_v57 = vld [vmem:[%s5807_s23 + $0x644] ss:$24 sps:$4 sm:$0xff]  }
  0xe0   : > { %3627 = vmatpush1.bf16.msra.mxu1 %v5354_v58  ;;  %3525 = vmatprep.subr.bf16.mxu0 %v5359_v59  ;;  %v5438_v58 = vld [vmem:[%s5807_s23 + $0x640] ss:$24 sps:$4 sm:$0xff]   ;;  %v5443_v59 = vld [vmem:[%s5807_s23 + $0x674] ss:$24 sps:$4 sm:$0xff]  }
  0xe1   : > { %3628 = vmatprep.subr.bf16.mxu1 %v5362_v20  ;;  %2398 = vmatprep.mubr.bf16.mxu0 %v6211_v2  ;;  %v5441_v20 = vld [vmem:[%s5807_s23 + $0x670] ss:$24 sps:$4 sm:$0xff]  }
  0xe2   : > { %2501 = vmatprep.mubr.bf16.mxu1 %v6211_v2 }
  0xe3   : > { %3526 = vmatpush1.bf16.msra.mxu0 %v5357_v61  ;;  %v5446_v61 = vld [vmem:[%s5807_s23 + $0x6a4] ss:$24 sps:$4 sm:$0xff]  }
  0xe4   : > { %3629 = vmatpush1.bf16.msra.mxu1 %v5360_v62  ;;  %3527 = vmatprep.subr.bf16.mxu0 %v5365_v25  ;;  %v5444_v62 = vld [vmem:[%s5807_s23 + $0x6a0] ss:$24 sps:$4 sm:$0xff]   ;;  %v5449_v25 = vld [vmem:[%s5807_s23 + $0x6d4] ss:$24 sps:$4 sm:$0xff]  }
  0xe5   : > { %3630 = vmatprep.subr.bf16.mxu1 %v5368_v1  ;;  %v6313_v1 = vpop.permute.xlu0 %348 }
  0xe6   : > { %2399 = vmatmul.mubr.bf16.gmra.mrb[64].mxu0 %v6222_v8  ;;  %8169 = vst [vmem:[#allocation2_spill] sm:$0xff] %v6313_v1 }
  0xe7   : > { %2502 = vmatmul.mubr.bf16.gmra.mrb[64].mxu1 %v6222_v8  ;;  %3528 = vmatpush1.bf16.msra.mxu0 %v5363_v3  ;;  %v5447_v3 = vld [vmem:[%s5807_s23 + $0x6d0] ss:$24 sps:$4 sm:$0xff]  }
  0xe8   : > { %3631 = vmatpush1.bf16.msra.mxu1 %v5366_v4  ;;  %3529 = vmatprep.subr.bf16.mxu0 %v5371_v30  ;;  %v5452_v4 = vld [vmem:[%s5807_s23 + $0x704] ss:$24 sps:$4 sm:$0xff]   ;;  %v5450_v30 = vld [vmem:[%s5807_s23 + $0x700] ss:$24 sps:$4 sm:$0xff]  }
  0xe9   : > { %3632 = vmatprep.subr.bf16.mxu1 %v5374_v6  ;;  %2408 = vmatprep.mubr.bf16.mxu0 %v6233_v13  ;;  %v6320_v6 = vpop.permute.xlu0 %353 }
  0xea   : > { %2511 = vmatprep.mubr.bf16.mxu1 %v6233_v13  ;;  %8170 = vst [vmem:[#allocation3_spill] sm:$0xff] %v6320_v6 }
  0xeb   : > { %3530 = vmatpush1.bf16.msra.mxu0 %v5369_v9  ;;  %v5455_v9 = vld [vmem:[%s5807_s23 + $0x734] ss:$24 sps:$4 sm:$0xff]  }
  0xec   : > { %3633 = vmatpush1.bf16.msra.mxu1 %v5372_v35  ;;  %3531 = vmatprep.subr.bf16.mxu0 %v5377_v11  ;;  %v6323_v35 = vpop.permute.xlu1 %358 }
  0xed   : > { %3634 = vmatprep.subr.bf16.mxu1 %v5380_v12  ;;  %8171 = vst [vmem:[#allocation4_spill] sm:$0xff] %v6323_v35 }
  0xee   : > { %2409 = vmatmul.mubr.bf16.gmra.mrb[68].mxu0 %v6244_v19 }
  0xef   : > { %2512 = vmatmul.mubr.bf16.gmra.mrb[68].mxu1 %v6244_v19  ;;  %3532 = vmatpush1.bf16.msra.mxu0 %v5375_v14 }
  0xf0   : > { %3635 = vmatpush1.bf16.msra.mxu1 %v5378_v16  ;;  %3533 = vmatprep.subr.bf16.mxu0 %v5383_v17 }
  0xf1   : > { %3636 = vmatprep.subr.bf16.mxu1 %v5386_v18  ;;  %2418 = vmatprep.mubr.bf16.mxu0 %v5953_v40 }
  0xf2   : > { %2521 = vmatprep.mubr.bf16.mxu1 %v5953_v40  ;;  %v5393_v40 = vld [vmem:[%s5807_s23 + $0x7b0] ss:$24 sps:$4 sm:$0xff]  }
  0xf3   : > { %3534 = vmatpush1.bf16.msra.mxu0 %v5381_v21  ;;  %v5453_v21 = vld [vmem:[%s5807_s23 + $0x730] ss:$24 sps:$4 sm:$0xff]  }
  0xf4   : > { %3637 = vmatpush1.bf16.msra.mxu1 %v5384_v22  ;;  %3535 = vmatprep.subr.bf16.mxu0 %v5389_v23 }
  0xf5   : > { %3638 = vmatprep.subr.bf16.mxu1 %v5392_v24 }
  0xf6   : > { %2419 = vmatmul.mubr.bf16.gmra.mrb[72].mxu0 %v5965_v45 }
  0xf7   : > { %2522 = vmatmul.mubr.bf16.gmra.mrb[72].mxu1 %v5965_v45  ;;  %3536 = vmatpush1.bf16.msra.mxu0 %v5387_v26  ;;  %v5399_v45 = vld [vmem:[%s5807_s23 + $0x7e0] ss:$24 sps:$4 sm:$0xff]   ;;  %v5458_v26 = vld [vmem:[%s5807_s23 + $0x764] ss:$24 sps:$4 sm:$0xff]  }
  0xf8   : > { %3639 = vmatpush1.bf16.msra.mxu1 %v5390_v27  ;;  %3537 = vmatprep.subr.bf16.mxu0 %v5395_v0 }
  0xf9   : > { %3640 = vmatprep.subr.bf16.mxu1 %v5398_v28  ;;  %2428 = vmatprep.mubr.bf16.mxu0 %v5975_v50 }
  0xfa   : > { %2531 = vmatprep.mubr.bf16.mxu1 %v5975_v50  ;;  %v5405_v50 = vld [vmem:[%s5807_s23 + $0x810] ss:$24 sps:$4 sm:$0xff]  }
  0xfb   : > { %3538 = vmatpush1.bf16.msra.mxu0 %v5393_v40 }
  0xfc   : > { %3641 = vmatpush1.bf16.msra.mxu1 %v5396_v29  ;;  %3539 = vmatprep.subr.bf16.mxu0 %v5401_v31 }
  0xfd   : > { %3642 = vmatprep.subr.bf16.mxu1 %v5404_v32 }
  0xfe   : > { %2429 = vmatmul.mubr.bf16.gmra.mrb[76].mxu0 %v5990_v56 }
  0xff   : > { %2532 = vmatmul.mubr.bf16.gmra.mrb[76].mxu1 %v5990_v56  ;;  %3540 = vmatpush1.bf16.msra.mxu0 %v5399_v45  ;;  %v5411_v56 = vld [vmem:[%s5807_s23 + $0x840] ss:$24 sps:$4 sm:$0xff]  }
 0x100   : > { %3643 = vmatpush1.bf16.msra.mxu1 %v5402_v33  ;;  %3541 = vmatprep.subr.bf16.mxu0 %v5407_v34  ;;  %v5456_v33 = vld [vmem:[%s5807_s23 + $0x760] ss:$24 sps:$4 sm:$0xff]  }
 0x101   : > { %3644 = vmatprep.subr.bf16.mxu1 %v5410_v36  ;;  %2438 = vmatprep.mubr.bf16.mxu0 %v6004_v63  ;;  %v6364_v36 = vpop.permute.xlu1 %363 }
 0x102   : > { %2541 = vmatprep.mubr.bf16.mxu1 %v6004_v63  ;;  %v5417_v63 = vld [vmem:[%s5807_s23 + $0x870] ss:$24 sps:$4 sm:$0xff]   ;;  %8172 = vst [vmem:[#allocation5_spill] sm:$0xff] %v6364_v36 }
 0x103   : > { %3542 = vmatpush1.bf16.msra.mxu0 %v5405_v50  ;;  %v5461_v50 = vld [vmem:[%s5807_s23 + $0x794] ss:$24 sps:$4 sm:$0xff]  }
 0x104   : > { %3645 = vmatpush1.bf16.msra.mxu1 %v5408_v38  ;;  %3543 = vmatprep.subr.bf16.mxu0 %v5413_v39 }
 0x105   : > { %3646 = vmatprep.subr.bf16.mxu1 %v5416_v41 }
 0x106   : > { %2439 = vmatmul.mubr.bf16.gmra.mrb[80].mxu0 %v6022_v7 }
 0x107   : > { %2542 = vmatmul.mubr.bf16.gmra.mrb[80].mxu1 %v6022_v7  ;;  %3544 = vmatpush1.bf16.msra.mxu0 %v5411_v56  ;;  %v5423_v7 = vld [vmem:[%s5807_s23 + $0x8a0] ss:$24 sps:$4 sm:$0xff]  }
 0x108   : > { %3647 = vmatpush1.bf16.msra.mxu1 %v5414_v42  ;;  %3545 = vmatprep.subr.bf16.mxu0 %v5419_v5 }
 0x109   : > { %3648 = vmatprep.subr.bf16.mxu1 %v5422_v43  ;;  %3551 = vmatprep.mubr.bf16.mxu0 %v6159_v37 }
 0x10a   : > { %3654 = vmatprep.mubr.bf16.mxu1 %v6159_v37 }
 0x10b   : > { %3546 = vmatpush1.bf16.msra.mxu0 %v5417_v63 }
 0x10c   : > { %3649 = vmatpush1.bf16.msra.mxu1 %v5420_v44  ;;  %3547 = vmatprep.subr.bf16.mxu0 %v5425_v46  ;;  %v5459_v46 = vld [vmem:[%s5807_s23 + $0x790] ss:$24 sps:$4 sm:$0xff]  }
 0x10d   : > { %3650 = vmatprep.subr.bf16.mxu1 %v5428_v47 }
 0x10f   : > { %3548 = vmatpush1.bf16.msra.mxu0 %v5423_v7 }
 0x110   : > { %3651 = vmatpush1.bf16.msra.mxu1 %v5426_v48  ;;  %3549 = vmatprep.subr.bf16.mxu0 %v5431_v49 }
 0x111   : > { %3652 = vmatprep.subr.bf16.mxu1 %v5434_v10 }
 0x113   : > { %3550 = vmatpush1.bf16.msra.mxu0 %v5429_v52 }
 0x114   : > { %3653 = vmatpush1.bf16.msra.mxu1 %v5432_v53  ;;  %3725 = vmatprep.subr.bf16.mxu0 %v5437_v15  ;;  %v5464_v53 = vld [vmem:[%s5807_s23 + $0x7c4] ss:$24 sps:$4 sm:$0xff]  }
 0x115   : > { %4984 = vmatprep.subr.bf16.mxu1 %v5437_v15 }
 0x116   : > { %3552 = vmatmul.mubr.bf16.vlgmr.msra.gmra.mrb[84].mxu0 %v6178_v51 }
 0x117   : > { %3655 = vmatmul.mubr.bf16.vlgmr.msra.gmra.mrb[84].mxu1 %v6178_v51  ;;  %3726 = vmatpush1.bf16.msra.mxu0 %v5435_v54 }
 0x118   : > { %5000 = vmatpush1.bf16.msra.mxu1 %v5435_v54  ;;  %3727 = vmatprep.subr.bf16.mxu0 %v5440_v57 }
 0x119   : > { %4985 = vmatprep.subr.bf16.mxu1 %v5440_v57  ;;  %3561 = vmatprep.mubr.bf16.mxu0 %v6189_v55 }
 0x11a   : > { %3664 = vmatprep.mubr.bf16.mxu1 %v6189_v55 }
 0x11b   : > { %3728 = vmatpush1.bf16.msra.mxu0 %v5438_v58 }
 0x11c   : > { %5001 = vmatpush1.bf16.msra.mxu1 %v5438_v58  ;;  %3729 = vmatprep.subr.bf16.mxu0 %v5443_v59 }
 0x11d   : > { %4986 = vmatprep.subr.bf16.mxu1 %v5443_v59 }
 0x11e   : > { %3562 = vmatmul.mubr.bf16.gmra.mrb[88].mxu0 %v6200_v60 }
 0x11f   : > { %3665 = vmatmul.mubr.bf16.gmra.mrb[88].mxu1 %v6200_v60  ;;  %3730 = vmatpush1.bf16.msra.mxu0 %v5441_v20 }
 0x120   : > { %5002 = vmatpush1.bf16.msra.mxu1 %v5441_v20  ;;  %3731 = vmatprep.subr.bf16.mxu0 %v5446_v61 }
 0x121   : > { %4987 = vmatprep.subr.bf16.mxu1 %v5446_v61  ;;  %3571 = vmatprep.mubr.bf16.mxu0 %v6211_v2  ;;  %v6408_v61 = vld [vmem:[%s8092_s1 + $0x40] ss:$8 sps:$4 sm:$0xff]  }
 0x122   : > { %3674 = vmatprep.mubr.bf16.mxu1 %v6211_v2 }
 0x123   : > { %3732 = vmatpush1.bf16.msra.mxu0 %v5444_v62 }
 0x124   : > { %5003 = vmatpush1.bf16.msra.mxu1 %v5444_v62  ;;  %3733 = vmatprep.subr.bf16.mxu0 %v5449_v25 }
 0x125   : > { %4988 = vmatprep.subr.bf16.mxu1 %v5449_v25 }
 0x126   : > { %3572 = vmatmul.mubr.bf16.gmra.mrb[92].mxu0 %v6222_v8 }
 0x127   : > { %3675 = vmatmul.mubr.bf16.gmra.mrb[92].mxu1 %v6222_v8  ;;  %3734 = vmatpush1.bf16.msra.mxu0 %v5447_v3 }
 0x128   : > { %5004 = vmatpush1.bf16.msra.mxu1 %v5447_v3  ;;  %3735 = vmatprep.subr.bf16.mxu0 %v5452_v4  ;;  %v6414_v3 = vpop.permute.xlu0 %368 }
 0x129   : > { %4989 = vmatprep.subr.bf16.mxu1 %v5452_v4  ;;  %v1000_v11 = vpop.f32.mrb[0].mxu0  ;;  %3581 = vmatprep.mubr.bf16.mxu0 %v6233_v13  ;;  %8173 = vst [vmem:[#allocation6_spill] sm:$0xff] %v6414_v3  ;;  %v5462_v4 = vld [vmem:[%s5807_s23 + $0x7c0] ss:$24 sps:$4 sm:$0xff]  }
 0x12a   : > { %v1103_v12 = vpop.f32.mrb[0].mxu1  ;;  %3684 = vmatprep.mubr.bf16.mxu1 %v6233_v13  ;;  %v6328_v8 = vadd.f32 %v1000_v11, %v6313_v1  ;;  %v1002_v14 = vpop.f32.mrb[1].mxu0  ;;  %v5467_v11 = vld [vmem:[%s5807_s23 + $0x7f4] ss:$24 sps:$4 sm:$0xff]  }
 0x12b   : > { %v6331_v16 = vadd.f32 %v1103_v12, %v6313_v1  ;;  %v1105_v17 = vpop.f32.mrb[1].mxu1  ;;  %v1004_v18 = vpop.f32.mrb[2].mxu0  ;;  %3736 = vmatpush1.bf16.msra.mxu0 %v5450_v30  ;;  %v6345_v28 = vadd.f32 %v1002_v14, %v6313_v1 }
 0x12c   : > { %5005 = vmatpush1.bf16.msra.mxu1 %v5450_v30  ;;  %v6335_v22 = vadd.f32 %v1105_v17, %v6313_v1  ;;  %v1107_v23 = vpop.f32.mrb[2].mxu1  ;;  %v6338_v24 = vadd.f32 %v1004_v18, %v6320_v6  ;;  %v1006_v13 = vpop.f32.mrb[3].mxu0  ;;  %3737 = vmatprep.subr.bf16.mxu0 %v5455_v9  ;;  %v6424_v17 = vld [vmem:[%s8092_s1 + $0x54] ss:$8 sps:$4 sm:$0xff]  }
 0x12d   : > { %4990 = vmatprep.subr.bf16.mxu1 %v5455_v9  ;;  %v6342_v27 = vadd.f32 %v1107_v23, %v6320_v6  ;;  %v1109_v0 = vpop.f32.mrb[3].mxu1  ;;  %v6348_v40 = vadd.f32 %v1006_v13, %v6320_v6  ;;  %v6418_v9 = vpop.permute.xlu1 %373 }
 0x12e   : > { %v6351_v29 = vadd.f32 %v1109_v0, %v6320_v6  ;;  %v1275_v31 = vmax.f32 %v6328_v8, %v6338_v24  ;;  %3582 = vmatmul.mubr.bf16.gmra.mrb[96].mxu0 %v6244_v19  ;;  %8174 = vst [vmem:[#allocation7_spill] sm:$0xff] %v6418_v9 }
 0x12f   : > { %v1300_v32 = vmax.f32 %v6331_v16, %v6342_v27  ;;  %3685 = vmatmul.mubr.bf16.gmra.mrb[96].mxu1 %v6244_v19  ;;  %v1288_v45 = vmax.f32 %v6345_v28, %v6348_v40  ;;  %3738 = vmatpush1.bf16.msra.mxu0 %v5453_v21  ;;  %v6370_v19 = vld [vmem:[%s8092_s1 + $0x44] ss:$8 sps:$4 sm:$0xff]  }
 0x130   : > { %5006 = vmatpush1.bf16.msra.mxu1 %v5453_v21  ;;  %v1312_v34 = vmax.f32 %v6335_v22, %v6351_v29  ;;  %3739 = vmatprep.subr.bf16.mxu0 %v5458_v26 }
 0x131   : > { %4991 = vmatprep.subr.bf16.mxu1 %v5458_v26  ;;  %v1010_v38 = vpop.f32.mrb[4].mxu0  ;;  %3591 = vmatprep.mubr.bf16.mxu0 %v6370_v19 }
 0x132   : > { %v1113_v39 = vpop.f32.mrb[4].mxu1  ;;  %3694 = vmatprep.mubr.bf16.mxu1 %v6370_v19  ;;  %v6375_v41 = vadd.f32 %v1010_v38, %v6323_v35  ;;  %v1012_v56 = vpop.f32.mrb[5].mxu0 }
 0x133   : > { %v6378_v42 = vadd.f32 %v1113_v39, %v6323_v35  ;;  %v1115_v5 = vpop.f32.mrb[5].mxu1  ;;  %v6381_v43 = vadd.f32 %v1012_v56, %v6323_v35  ;;  %v1014_v63 = vpop.f32.mrb[6].mxu0  ;;  %3740 = vmatpush1.bf16.msra.mxu0 %v5456_v33 }
 0x134   : > { %5007 = vmatpush1.bf16.msra.mxu1 %v5456_v33  ;;  %v6384_v44 = vadd.f32 %v1115_v5, %v6323_v35  ;;  %v1117_v47 = vpop.f32.mrb[6].mxu1  ;;  %v1276_v7 = vmax.f32 %v1275_v31, %v6375_v41  ;;  %v6389_v48 = vadd.f32 %v1014_v63, %v6364_v36  ;;  %v1016_v49 = vpop.f32.mrb[7].mxu0  ;;  %3741 = vmatprep.subr.bf16.mxu0 %v5461_v50  ;;  %v5470_v5 = vld [vmem:[%s5807_s23 + $0x824] ss:$24 sps:$4 sm:$0xff]  }
 0x135   : > { %v1301_v10 = vmax.f32 %v1300_v32, %v6378_v42  ;;  %4992 = vmatprep.subr.bf16.mxu1 %v5461_v50  ;;  %v1119_v52 = vpop.f32.mrb[7].mxu1  ;;  %v1289_v15 = vmax.f32 %v1288_v45, %v6381_v43  ;;  %v6395_v54 = vadd.f32 %v1016_v49, %v6364_v36  ;;  %v6399_v58 = vadd.f32 %v1117_v47, %v6364_v36  ;;  %v5465_v45 = vld [vmem:[%s5807_s23 + $0x7f0] ss:$24 sps:$4 sm:$0xff]  }
 0x136   : > { %v1313_v57 = vmax.f32 %v1312_v34, %v6384_v44  ;;  %v1277_v59 = vmax.f32 %v1276_v7, %v6389_v48  ;;  %v6403_v20 = vadd.f32 %v1119_v52, %v6364_v36  ;;  %3592 = vmatmul.mubr.bf16.gmra.mrb[100].mxu0 %v6408_v61  ;;  %v6466_v52 = vld [vmem:[%s8092_s1 + $0x50] ss:$8 sps:$4 sm:$0xff]  }
 0x137   : > { %3695 = vmatmul.mubr.bf16.gmra.mrb[100].mxu1 %v6408_v61  ;;  %v1290_v62 = vmax.f32 %v1289_v15, %v6395_v54  ;;  %v1302_v25 = vmax.f32 %v1301_v10, %v6399_v58  ;;  %3742 = vmatpush1.bf16.msra.mxu0 %v5459_v46 }
 0x138   : > { %5008 = vmatpush1.bf16.msra.mxu1 %v5459_v46  ;;  %v1314_v30 = vmax.f32 %v1313_v57, %v6403_v20  ;;  %3743 = vmatprep.subr.bf16.mxu0 %v5464_v53 }
 0x139   : > { %4993 = vmatprep.subr.bf16.mxu1 %v5464_v53  ;;  %v1020_v12 = vpop.f32.mrb[8].mxu0  ;;  %3601 = vmatprep.mubr.bf16.mxu0 %v6424_v17 }
 0x13a   : > { %v1123_v14 = vpop.f32.mrb[8].mxu1  ;;  %3704 = vmatprep.mubr.bf16.mxu1 %v6424_v17  ;;  %v6429_v18 = vadd.f32 %v1020_v12, %v6414_v3  ;;  %v1022_v23 = vpop.f32.mrb[9].mxu0 }
 0x13b   : > { %v6432_v21 = vadd.f32 %v1123_v14, %v6414_v3  ;;  %v1125_v13 = vpop.f32.mrb[9].mxu1  ;;  %v6435_v26 = vadd.f32 %v1022_v23, %v6414_v3  ;;  %v1024_v31 = vpop.f32.mrb[10].mxu0  ;;  %3744 = vmatpush1.bf16.msra.mxu0 %v5462_v4 }
 0x13c   : > { %v6438_v0 = vadd.f32 %v1125_v13, %v6414_v3  ;;  %v1127_v32 = vpop.f32.mrb[10].mxu1  ;;  %5009 = vmatpush1.bf16.msra.mxu1 %v5462_v4  ;;  %v1278_v33 = vmax.f32 %v1277_v59, %v6429_v18  ;;  %v6444_v50 = vadd.f32 %v1024_v31, %v6418_v9  ;;  %v1026_v39 = vpop.f32.mrb[11].mxu0  ;;  %3745 = vmatprep.subr.bf16.mxu0 %v5467_v11  ;;  %v6488_v31 = vld [vmem:[%s8092_s1 + $0x64] ss:$8 sps:$4 sm:$0xff]  }
 0x13d   : > { %v1303_v34 = vmax.f32 %v1302_v25, %v6432_v21  ;;  %v6447_v38 = vadd.f32 %v1127_v32, %v6418_v9  ;;  %v1129_v56 = vpop.f32.mrb[11].mxu1  ;;  %v1291_v63 = vmax.f32 %v1290_v62, %v6435_v26  ;;  %v6453_v47 = vadd.f32 %v1026_v39, %v6418_v9  ;;  %4994 = vmatprep.subr.bf16.mxu1 %v5467_v11  ;;  %v5468_v62 = vld [vmem:[%s5807_s23 + $0x820] ss:$24 sps:$4 sm:$0xff]   ;;  %v6475_v25 = vpop.permute.xlu0 %378  ;;  %v5473_v11 = vld [vmem:[%s5807_s23 + $0x854] ss:$24 sps:$4 sm:$0xff]  }
 0x13e   : > { %v1315_v46 = vmax.f32 %v1314_v30, %v6438_v0  ;;  %v6456_v7 = vadd.f32 %v1129_v56, %v6418_v9  ;;  %v1280_v49 = vsel %vm1279_vm0, %v6444_v50, -inf  ;;  %3602 = vmatmul.mubr.bf16.gmra.mrb[104].mxu0 %v6466_v52  ;;  %8175 = vst [vmem:[#allocation8_spill] sm:$0xff] %v6475_v25  ;;  %v6478_v12 = vpop.permute.xlu1 %383 }
 0x13f   : > { %v1304_v10 = vsel %vm1279_vm0, %v6447_v38, -inf  ;;  %3705 = vmatmul.mubr.bf16.gmra.mrb[104].mxu1 %v6466_v52  ;;  %v1281_v53 = vmax.f32 %v1278_v33, %v1280_v49  ;;  %v1292_v57 = vsel %vm1279_vm0, %v6453_v47, -inf  ;;  %3746 = vmatpush1.bf16.msra.mxu0 %v5465_v45  ;;  %v5471_v49 = vld [vmem:[%s5807_s23 + $0x850] ss:$24 sps:$4 sm:$0xff]  }
 0x140   : > { %v1305_v15 = vmax.f32 %v1303_v34, %v1304_v10  ;;  %v1316_v59 = vsel %vm1279_vm0, %v6456_v7, -inf  ;;  %5010 = vmatpush1.bf16.msra.mxu1 %v5465_v45  ;;  %v1293_v4 = vmax.f32 %v1291_v63, %v1292_v57  ;;  %3747 = vmatprep.subr.bf16.mxu0 %v5470_v5 }
 0x141   : > { %v1317_v30 = vmax.f32 %v1315_v46, %v1316_v59  ;;  %4995 = vmatprep.subr.bf16.mxu1 %v5470_v5  ;;  %v1282_v14 = vrot.slane %v1281_v53, 4  ;;  %v1030_v13 = vpop.f32.mrb[12].mxu0  ;;  %3611 = vmatprep.mubr.bf16.mxu0 %v6488_v31 }
 0x142   : > { %v1306_v23 = vrot.slane %v1305_v15, 4  ;;  %3714 = vmatprep.mubr.bf16.mxu1 %v6488_v31  ;;  %v1133_v32 = vpop.f32.mrb[12].mxu1  ;;  %v1294_v45 = vrot.slane %v1293_v4, 4  ;;  %v1032_v34 = vpop.f32.mrb[13].mxu0  ;;  %v1031_v39 = vadd.f32 %v1030_v13, %v6475_v25 }
 0x143   : > { %v1318_v33 = vrot.slane %v1317_v30, 4  ;;  %v1134_v56 = vadd.f32 %v1133_v32, %v6475_v25  ;;  %v1135_v5 = vpop.f32.mrb[13].mxu1  ;;  %v1283_v63 = vmax.f32 %v1281_v53, %v1282_v14  ;;  %3748 = vmatpush1.bf16.msra.mxu0 %v5468_v62  ;;  %v1034_v10 = vpop.f32.mrb[14].mxu0  ;;  %v1033_v57 = vadd.f32 %v1032_v34, %v6475_v25  ;;  %v5476_v53 = vld [vmem:[%s5807_s23 + $0x884] ss:$24 sps:$4 sm:$0xff]  }
 0x144   : > { %v1307_v46 = vmax.f32 %v1305_v15, %v1306_v23  ;;  %5011 = vmatpush1.bf16.msra.mxu1 %v5468_v62  ;;  %v1137_v59 = vpop.f32.mrb[14].mxu1  ;;  %v1295_v9 = vmax.f32 %v1293_v4, %v1294_v45  ;;  %3749 = vmatprep.subr.bf16.mxu0 %v5473_v11  ;;  %v1035_v13 = vadd.f32 %v1034_v10, %v6478_v12  ;;  %v1036_v32 = vpop.f32.mrb[15].mxu0 }
 0x145   : > { %v1319_v3 = vmax.f32 %v1317_v30, %v1318_v33  ;;  %4996 = vmatprep.subr.bf16.mxu1 %v5473_v11  ;;  %1618 = vst [vmem:[%s6483_s10] sm:$0xff] %v1031_v39  ;;  %1620 = vst [vmem:[%s6483_s10 + $0x10] sm:$0xff] %v1134_v56  ;;  %v1139_v15 = vpop.f32.mrb[15].mxu1  ;;  %v1284_v14 = vrot.slane %v1283_v63, 2  ;;  %v1037_v23 = vadd.f32 %v1036_v32, %v6478_v12  ;;  %v6507_v11 = vld [vmem:[%s8092_s1 + $0x60] ss:$8 sps:$4 sm:$0xff]   ;;  %v6515_v10 = vpop.permute.xlu0 %388 }
 0x146   : > { %v1308_v62 = vrot.slane %v1307_v46, 2  ;;  %1619 = vst [vmem:[%s6483_s10 + $0x8] sm:$0xff] %v1033_v57  ;;  %v1136_v4 = vadd.f32 %v1135_v5, %v6475_v25  ;;  %v1296_v30 = vrot.slane %v1295_v9, 2  ;;  %1624 = vst [vmem:[%s6483_s10 + $0x30] sm:$0xff] %v1035_v13  ;;  %3612 = vmatmul.mubr.bf16.gmra.mrb[108].mxu0 %v6507_v11  ;;  %v1138_v33 = vadd.f32 %v1137_v59, %v6478_v12  ;;  %v5474_v5 = vld [vmem:[%s5807_s23 + $0x880] ss:$24 sps:$4 sm:$0xff]   ;;  %v6519_v25 = vpop.permute.xlu1 %393 }
 0x147   : > { %v1320_v45 = vrot.slane %v1319_v3, 2  ;;  %3715 = vmatmul.mubr.bf16.gmra.mrb[108].mxu1 %v6507_v11  ;;  %v1140_v34 = vadd.f32 %v1139_v15, %v6478_v12  ;;  %v1285_v39 = vmax.f32 %v1283_v63, %v1284_v14  ;;  %3750 = vmatpush1.bf16.msra.mxu0 %v5471_v49  ;;  %1625 = vst [vmem:[%s6483_s10 + $0x38] sm:$0xff] %v1037_v23  ;;  %v5479_v32 = vld [vmem:[%s5807_s23 + $0x8b4] ss:$24 sps:$4 sm:$0xff]  }
 0x148   : > { %v1309_v56 = vmax.f32 %v1307_v46, %v1308_v62  ;;  %5012 = vmatpush1.bf16.msra.mxu1 %v5471_v49  ;;  %1621 = vst [vmem:[%s6483_s10 + $0x18] sm:$0xff] %v1136_v4  ;;  %v1297_v57 = vmax.f32 %v1295_v9, %v1296_v30  ;;  %3751 = vmatprep.subr.bf16.mxu0 %v5476_v53  ;;  %1626 = vst [vmem:[%s6483_s10 + $0x40] sm:$0xff] %v1138_v33 }
 0x149   : > { %v1321_v13 = vmax.f32 %v1319_v3, %v1320_v45  ;;  %4997 = vmatprep.subr.bf16.mxu1 %v5476_v53  ;;  %1627 = vst [vmem:[%s6483_s10 + $0x48] sm:$0xff] %v1140_v34  ;;  %v1286_v59 = vrot.slane %v1285_v39, 1  ;;  %v1040_v46 = vpop.f32.mrb[16].mxu0  ;;  %3757 = vmatprep.mubr.bf16.mxu0 %v6159_v37  ;;  %v5477_v37 = vld [vmem:[%s5807_s23 + $0x8b0] ss:$24 sps:$4 sm:$0xff]  }
 0x14a   : > { %v1310_v63 = vrot.slane %v1309_v56, 1  ;;  %3797 = vmatprep.mubr.bf16.mxu1 %v6370_v19  ;;  %v1143_v49 = vpop.f32.mrb[16].mxu1  ;;  %v1298_v15 = vrot.slane %v1297_v57, 1  ;;  %v1042_v14 = vpop.f32.mrb[17].mxu0  ;;  %v1041_v3 = vadd.f32 %v1040_v46, %v6515_v10 }
 0x14b   : > { %v1144_v9 = vadd.f32 %v1143_v49, %v6515_v10  ;;  %v6527_v53 = vpop.f32.mrb[17].mxu1  ;;  %v1287_v62 = vmax.f32 %v1285_v39, %v1286_v59  ;;  %3752 = vmatpush1.bf16.msra.mxu0 %v5474_v5  ;;  %v1044_v4 = vpop.f32.mrb[18].mxu0  ;;  %v1043_v19 = vadd.f32 %v1042_v14, %v6515_v10  ;;  %v1322_v33 = vrot.slane %v1321_v13, 1 }
 0x14c   : > { %v6529_v23 = vmax.f32 %v1309_v56, %v1310_v63  ;;  %5013 = vmatpush1.bf16.msra.mxu1 %v5474_v5  ;;  %v6533_v30 = vpop.f32.mrb[18].mxu1  ;;  %v6535_v45 = vmax.f32 %v1297_v57, %v1298_v15  ;;  %3753 = vmatprep.subr.bf16.mxu0 %v5479_v32  ;;  %v1045_v34 = vadd.f32 %v1044_v4, %v6519_v25  ;;  %v6539_v39 = vpop.f32.mrb[19].mxu0  ;;  %v5482_v56 = vld [vmem:[%s5807_s23 + $0x8e4] ss:$24 sps:$4 sm:$0xff]  }
 0x14d   : > { %4998 = vmatprep.subr.bf16.mxu1 %v5479_v32  ;;  %1630 = vst [vmem:[%s6483_s10 + $0x60] sm:$0xff] %v1041_v3  ;;  %1632 = vst [vmem:[%s6483_s10 + $0x70] sm:$0xff] %v1144_v9  ;;  %v6543_v5 = vpop.f32.mrb[19].mxu1  ;;  %v1355_v59 = vsub.f32 %v6328_v8, %v1287_v62  ;;  %v1361_v63 = vsub.f32 %v6338_v24, %v1287_v62  ;;  %v1367_v57 = vsub.f32 %v6375_v41, %v1287_v62  ;;  %v5480_v3 = vld [vmem:[%s5807_s23 + $0x8e0] ss:$24 sps:$4 sm:$0xff]  }
 0x14e   : > { %v1373_v46 = vsub.f32 %v6389_v48, %v1287_v62  ;;  %1631 = vst [vmem:[%s6483_s10 + $0x68] sm:$0xff] %v1043_v19  ;;  %v1379_v32 = vsub.f32 %v6429_v18, %v1287_v62  ;;  %v1385_v49 = vsub.f32 %v6444_v50, %v1287_v62  ;;  %v1357_v15 = vsub.f32 %v6331_v16, %v6529_v23 }
 0x14f   : > { %v1363_v14 = vsub.f32 %v6342_v27, %v6529_v23  ;;  %1636 = vst [vmem:[%s6483_s10 + $0x90] sm:$0xff] %v1045_v34  ;;  %v1391_v8 = vmul.f32 1.442695, %v1355_v59  ;;  %v1403_v9 = vmul.f32 1.442695, %v1361_v63  ;;  %v1369_v41 = vsub.f32 %v6378_v42, %v6529_v23  ;;  %3754 = vmatpush1.bf16.msra.mxu0 %v5477_v37 }
 0x150   : > { %v1415_v24 = vmul.f32 1.442695, %v1367_v57  ;;  %5014 = vmatpush1.bf16.msra.mxu1 %v5477_v37  ;;  %v1427_v48 = vmul.f32 1.442695, %v1373_v46  ;;  %v1375_v18 = vsub.f32 %v6399_v58, %v6529_v23  ;;  %v6562_v50 = vmax.f32 %v1321_v13, %v1322_v33  ;;  %3755 = vmatprep.subr.bf16.mxu0 %v5482_v56 }
 0x151   : > { %4999 = vmatprep.subr.bf16.mxu1 %v5482_v56  ;;  %5483 = vpow2.f32 %v1391_v8  ;;  %v1439_v16 = vmul.f32 1.442695, %v1379_v32  ;;  %v1381_v27 = vsub.f32 %v6432_v21, %v6529_v23  ;;  %v1387_v62 = vsub.f32 %v6447_v38, %v6529_v23  ;;  %v6568_v4 = vpop.f32.mrb[20].mxu0 }
 0x152   : > { %v6570_v42 = vpop.f32.mrb[20].mxu1  ;;  %5485 = vpow2.f32 %v1403_v9  ;;  %v1451_v37 = vmul.f32 1.442695, %v1385_v49  ;;  %v1395_v19 = vmul.f32 1.442695, %v1357_v15  ;;  %v1356_v34 = vsub.f32 %v6345_v28, %v6535_v45  ;;  %v1052_v21 = vpop.f32.mrb[21].mxu0 }
 0x153   : > { %v1407_v58 = vmul.f32 1.442695, %v1363_v14  ;;  %5487 = vpow2.f32 %v1415_v24  ;;  %v1419_v13 = vmul.f32 1.442695, %v1369_v41  ;;  %v1431_v33 = vmul.f32 1.442695, %v1375_v18  ;;  %3756 = vmatpush1.bf16.msra.mxu0 %v5480_v3 }
 0x154   : > { %5015 = vmatpush1.bf16.msra.mxu1 %v5480_v3  ;;  %v6574_v56 = vpop.f32.mrb[21].mxu1  ;;  %5489 = vpow2.f32 %v1427_v48  ;;  %v1362_v38 = vsub.f32 %v6348_v40, %v6535_v45  ;;  %v1368_v23 = vsub.f32 %v6381_v43, %v6535_v45  ;;  %v1374_v59 = vsub.f32 %v6395_v54, %v6535_v45  ;;  %v1054_v63 = vpop.f32.mrb[22].mxu0 }
 0x155   : > { %v6582_v57 = vpop.f32.mrb[22].mxu1  ;;  %5491 = vpow2.f32 %v1439_v16  ;;  %v1443_v28 = vmul.f32 1.442695, %v1381_v27  ;;  %v1380_v46 = vsub.f32 %v6435_v26, %v6535_v45  ;;  %v1386_v32 = vsub.f32 %v6453_v47, %v6535_v45  ;;  %v1056_v49 = vpop.f32.mrb[23].mxu0 }
 0x156   : > { %v6588_v15 = vpop.f32.mrb[23].mxu1  ;;  %5493 = vpow2.f32 %v1451_v37  ;;  %v1455_v40 = vmul.f32 1.442695, %v1387_v62  ;;  %v1393_v43 = vmul.f32 1.442695, %v1356_v34  ;;  %3758 = vmatmul.mubr.bf16.vlgmr.msra.gmra.mrb[112].mxu0 %v6178_v51  ;;  %v6592_v54 = vpop.permute.xlu1 %403  ;;  %v1358_v47 = vsub.f32 %v6335_v22, %v6562_v50 }
 0x157   : > { %v1405_v14 = vmul.f32 1.442695, %v1362_v38  ;;  %3798 = vmatmul.mubr.bf16.vlgmr.msra.gmra.mrb[112].mxu1 %v6408_v61  ;;  %8176 = vst [vmem:[#allocation9_spill] sm:$0xff] %v6592_v54  ;;  %v6594_v3 = vpop.permute.xlu0 %398  ;;  %5495 = vpow2.f32 %v1395_v19  ;;  %v1417_v26 = vmul.f32 1.442695, %v1368_v23  ;;  %3767 = vmatprep.mubr.bf16.mxu0 %v6189_v55  ;;  %v1364_v51 = vsub.f32 %v6351_v29, %v6562_v50 }
 0x158   : > { %8177 = vst [vmem:[#allocation10_spill] sm:$0xff] %v6594_v3  ;;  %v1429_v8 = vmul.f32 1.442695, %v1374_v59  ;;  %3807 = vmatprep.mubr.bf16.mxu1 %v6424_v17  ;;  %5497 = vpow2.f32 %v1407_v58  ;;  %v1370_v61 = vsub.f32 %v6384_v44, %v6562_v50  ;;  %v1376_v45 = vsub.f32 %v6403_v20, %v6562_v50 }
 0x159   : > { %5499 = vpow2.f32 %v1419_v13  ;;  %v1441_v9 = vmul.f32 1.442695, %v1380_v46  ;;  %v1382_v24 = vsub.f32 %v6438_v0, %v6562_v50  ;;  %v1388_v55 = vsub.f32 %v6456_v7, %v6562_v50  ;;  %v1060_v22 = vpop.f32.mrb[24].mxu0  ;;  %v5749_v7 = vld [vmem:[%s8092_s1 + $0x20] ss:$8 sps:$4 sm:$0xff]  }
 0x15a   : > { %v6610_v17 = vpop.f32.mrb[24].mxu1  ;;  %5501 = vpow2.f32 %v1431_v33  ;;  %v1453_v41 = vmul.f32 1.442695, %v1386_v32  ;;  %v6612_v29 = vmul.f32 1.442695, %v1358_v47  ;;  %v6616_v44 = vpop.permute.xlu1 %413  ;;  %v1047_v27 = vadd.f32 %v6539_v39, %v6519_v25 }
 0x15b   : > { %v6614_v48 = vmul.f32 1.442695, %v1364_v51  ;;  %8178 = vst [vmem:[#allocation11_spill] sm:$0xff] %v6616_v44  ;;  %v6618_v20 = vpop.permute.xlu0 %408  ;;  %v6620_v18 = vpop.eup %5483  ;;  %5503 = vpow2.f32 %v1443_v28  ;;  %v6622_v0 = vmul.f32 1.442695, %v1370_v61  ;;  %v1055_v58 = vadd.f32 %v1054_v63, %v6592_v54 }
 0x15c   : > { %8179 = vst [vmem:[#allocation12_spill] sm:$0xff] %v6618_v20  ;;  %v6624_v16 = vmul.f32 1.442695, %v1376_v45  ;;  %v1062_v62 = vpop.f32.mrb[25].mxu0  ;;  %v1165_v37 = vpop.f32.mrb[25].mxu1  ;;  %5505 = vpow2.f32 %v1455_v40  ;;  %v1051_v13 = vadd.f32 %v6568_v4, %v6594_v3  ;;  %v1053_v33 = vadd.f32 %v1052_v21, %v6594_v3  ;;  %1637 = vst [vmem:[%s6483_s10 + $0x98] sm:$0xff] %v1047_v27 }
 0x15d   : > { %v6628_v19 = vpop.eup %5485  ;;  %v1064_v34 = vpop.f32.mrb[26].mxu0  ;;  %5507 = vpow2.f32 %v1393_v43  ;;  %v1057_v59 = vadd.f32 %v1056_v49, %v6592_v54  ;;  %1648 = vst [vmem:[%s6483_s10 + $0xf0] sm:$0xff] %v1055_v58  ;;  %v1061_v21 = vadd.f32 %v1060_v22, %v6618_v20  ;;  %v1063_v32 = vadd.f32 %v1062_v62, %v6618_v20 }
 0x15e   : > { %v1167_v38 = vpop.f32.mrb[26].mxu1  ;;  %v6634_v23 = vpop.eup %5487  ;;  %v1463_v39 = vadd.f32 %v6628_v19, %v6620_v18  ;;  %v1065_v63 = vadd.f32 %v1064_v34, %v6616_v44  ;;  %5509 = vpow2.f32 %v1405_v14  ;;  %1642 = vst [vmem:[%s6483_s10 + $0xc0] sm:$0xff] %v1051_v13  ;;  %1643 = vst [vmem:[%s6483_s10 + $0xc8] sm:$0xff] %v1053_v33  ;;  %3768 = vmatmul.mubr.bf16.gmra.mrb[116].mxu0 %v6200_v60  ;;  %v1457_v22 = vmul.f32 1.442695, %v1388_v55 }
 0x15f   : > { %v1066_v28 = vpop.f32.mrb[27].mxu0  ;;  %v1169_v4 = vpop.f32.mrb[27].mxu1  ;;  %3808 = vmatmul.mubr.bf16.gmra.mrb[116].mxu1 %v6466_v52  ;;  %5511 = vpow2.f32 %v1417_v26  ;;  %1649 = vst [vmem:[%s6483_s10 + $0xf8] sm:$0xff] %v1057_v59  ;;  %3777 = vmatprep.mubr.bf16.mxu0 %v6211_v2  ;;  %v1146_v60 = vadd.f32 %v6527_v53, %v6515_v10  ;;  %v1148_v52 = vadd.f32 %v6533_v30, %v6519_v25  ;;  %1654 = vst [vmem:[%s6483_s10 + $0x120] sm:$0xff] %v1061_v21 }
 0x160   : > { %v6641_v46 = vpop.eup %5489  ;;  %v1067_v49 = vadd.f32 %v1066_v28, %v6616_v44  ;;  %v1464_v43 = vadd.f32 %v6634_v23, %v1463_v39  ;;  %1660 = vst [vmem:[%s6483_s10 + $0x150] sm:$0xff] %v1065_v63  ;;  %3817 = vmatprep.mubr.bf16.mxu1 %v6488_v31  ;;  %5513 = vpow2.f32 %v1429_v8  ;;  %1655 = vst [vmem:[%s6483_s10 + $0x128] sm:$0xff] %v1063_v32  ;;  %v1445_v8 = vmul.f32 1.442695, %v1382_v24 }
 0x161   : > { %v6651_v40 = vpop.eup %5491  ;;  %v1150_v2 = vadd.f32 %v6543_v5, %v6519_v25  ;;  %v1154_v31 = vadd.f32 %v6570_v42, %v6594_v3  ;;  %v1156_v53 = vadd.f32 %v6574_v56, %v6594_v3  ;;  %5515 = vpow2.f32 %v1441_v9  ;;  %1633 = vst [vmem:[%s6483_s10 + $0x78] sm:$0xff] %v1146_v60  ;;  %1638 = vst [vmem:[%s6483_s10 + $0xa0] sm:$0xff] %v1148_v52 }
 0x162   : > { %v6662_v14 = vpop.eup %5493  ;;  %1661 = vst [vmem:[%s6483_s10 + $0x158] sm:$0xff] %v1067_v49  ;;  %v1465_v30 = vadd.f32 %v6641_v46, %v1464_v43  ;;  %v1158_v47 = vadd.f32 %v6582_v57, %v6592_v54  ;;  %5517 = vpow2.f32 %v1453_v41  ;;  %v1160_v5 = vadd.f32 %v6588_v15, %v6592_v54 }
 0x163   : > { %v6673_v26 = vpop.eup %5495  ;;  %1639 = vst [vmem:[%s6483_s10 + $0xa8] sm:$0xff] %v1150_v2  ;;  %1644 = vst [vmem:[%s6483_s10 + $0xd0] sm:$0xff] %v1154_v31  ;;  %v1164_v42 = vadd.f32 %v6610_v17, %v6618_v20  ;;  %v1166_v56 = vadd.f32 %v1165_v37, %v6618_v20  ;;  %5519 = vpow2.f32 %v6612_v29  ;;  %v1168_v9 = vadd.f32 %v1167_v38, %v6616_v44 }
 0x164   : > { %v6680_v51 = vpop.eup %5497  ;;  %1645 = vst [vmem:[%s6483_s10 + $0xd8] sm:$0xff] %v1156_v53  ;;  %v1466_v57 = vadd.f32 %v6651_v40, %v1465_v30  ;;  %1650 = vst [vmem:[%s6483_s10 + $0x100] sm:$0xff] %v1158_v47  ;;  %v1467_v15 = vsel %vm1279_vm0, %v6662_v14, 0.0  ;;  %5521 = vpow2.f32 %v6614_v48  ;;  %v1170_v17 = vadd.f32 %v1169_v4, %v6616_v44 }
 0x165   : > { %v6690_v61 = vpop.eup %5499  ;;  %v1487_v45 = vadd.f32 %v6680_v51, %v6673_v26  ;;  %1651 = vst [vmem:[%s6483_s10 + $0x108] sm:$0xff] %v1160_v5  ;;  %1656 = vst [vmem:[%s6483_s10 + $0x130] sm:$0xff] %v1164_v42  ;;  %5523 = vpow2.f32 %v6622_v0  ;;  %v5750_v0 = vld [vmem:[%s8092_s1 + $0x34] ss:$8 sps:$4 sm:$0xff]  }
 0x166   : > { %v6698_v24 = vpop.eup %5501  ;;  %1657 = vst [vmem:[%s6483_s10 + $0x138] sm:$0xff] %v1166_v56  ;;  %v1468_v29 = vadd.f32 %v1467_v15, %v1466_v57  ;;  %1662 = vst [vmem:[%s6483_s10 + $0x160] sm:$0xff] %v1168_v9  ;;  %5525 = vpow2.f32 %v6624_v16  ;;  %3778 = vmatmul.mubr.bf16.gmra.mrb[120].mxu0 %v5749_v7 }
 0x167   : > { %v6710_v41 = vpop.eup %5503  ;;  %v1488_v27 = vadd.f32 %v6690_v61, %v1487_v45  ;;  %3818 = vmatmul.mubr.bf16.gmra.mrb[120].mxu1 %v6507_v11  ;;  %1663 = vst [vmem:[%s6483_s10 + $0x168] sm:$0xff] %v1170_v17  ;;  %5527 = vpow2.f32 %v1445_v8  ;;  %3787 = vmatprep.mubr.bf16.mxu0 %v5750_v0 }
 0x168   : > { %v6715_v62 = vpop.eup %5505  ;;  %v1469_v55 = vrot.slane %v1468_v29, 4  ;;  %5529 = vpow2.f32 %v1457_v22  ;;  %v5751_v22 = vld [vmem:[%s8092_s1 + $0x30] ss:$8 sps:$4 sm:$0xff]  }
 0x169   : > { %v6723_v50 = vpop.eup %5507  ;;  %v1489_v48 = vadd.f32 %v6698_v24, %v1488_v27  ;;  %v1491_v37 = vsel %vm1279_vm0, %v6715_v62, 0.0  ;;  %v1206_v34 = vpop.f32.mrb[28].mxu0 }
 0x16a   : > { %v6729_v16 = vpop.eup %5509  ;;  %v1470_v11 = vadd.f32 %v1469_v55, %v1468_v29  ;;  %v2277_v38 = vpop.f32.mrb[28].mxu1  ;;  %v6741_v59 = vadd.f32 %v1206_v34, %v6313_v1 }
 0x16b   : > { %v6733_v58 = vpop.eup %5511  ;;  %v1490_v13 = vadd.f32 %v6710_v41, %v1489_v48  ;;  %v1475_v33 = vadd.f32 %v6729_v16, %v6723_v50  ;;  %v1208_v63 = vpop.f32.mrb[29].mxu0  ;;  %v6744_v28 = vadd.f32 %v2277_v38, %v6313_v1 }
 0x16c   : > { %v6738_v39 = vpop.eup %5513  ;;  %v2279_v4 = vpop.f32.mrb[29].mxu1  ;;  %v1471_v32 = vrot.slane %v1470_v11, 2  ;;  %v6752_v31 = vadd.f32 %v1208_v63, %v6313_v1 }
 0x16d   : > { %v6746_v21 = vpop.eup %5515  ;;  %v1492_v49 = vadd.f32 %v1491_v37, %v1490_v13  ;;  %v1476_v43 = vadd.f32 %v6733_v58, %v1475_v33  ;;  %v1210_v60 = vpop.f32.mrb[30].mxu0  ;;  %v6774_v17 = vadd.f32 %v2279_v4, %v6313_v1 }
 0x16e   : > { %v2281_v52 = vpop.f32.mrb[30].mxu1  ;;  %v6749_v2 = vpop.eup %5517  ;;  %8180 = vst [vmem:[#allocation13_spill] sm:$0xff] %v6752_v31  ;;  %v6755_v53 = vadd.f32 %v1210_v60, %v6320_v6  ;;  %v1472_v42 = vadd.f32 %v1471_v32, %v1470_v11  ;;  %3788 = vmatmul.mubr.bf16.gmra.mrb[124].mxu0 %v5751_v22  ;;  %v1337_v13 = vsel %vm1336_vm1, %v6752_v31, -inf }
 0x16f   : > { %v1212_v30 = vpop.f32.mrb[31].mxu0  ;;  %v6758_v8 = vadd.f32 %v2281_v52, %v6320_v6  ;;  %v2283_v47 = vpop.f32.mrb[31].mxu1  ;;  %v1493_v56 = vrot.slane %v1492_v49, 4  ;;  %v1477_v57 = vadd.f32 %v6738_v39, %v1476_v43  ;;  %8182 = vst [vmem:[#allocation15_spill] sm:$0xff] %v6774_v17  ;;  %v1479_v11 = vsel %vm1279_vm0, %v6749_v2, 0.0 }
 0x170   : > { %v6760_v5 = vpop.eup %5519  ;;  %v1324_v9 = vmax.f32 %v6741_v59, %v6755_v53  ;;  %v6768_v15 = vadd.f32 %v1212_v30, %v6320_v6  ;;  %v1473_v7 = vrot.slane %v1472_v42, 1  ;;  %v6792_v34 = vadd.f32 %v2283_v47, %v6320_v6 }
 0x171   : > { %v6763_v45 = vpop.eup %5521  ;;  %v2552_v29 = vmax.f32 %v6744_v28, %v6758_v8  ;;  %v1494_v55 = vadd.f32 %v1493_v56, %v1492_v49  ;;  %v1478_v48 = vadd.f32 %v6746_v21, %v1477_v57  ;;  %v1216_v43 = vpop.f32.mrb[32].mxu0 }
 0x172   : > { %8181 = vst [vmem:[#allocation14_spill] sm:$0xff] %v6768_v15  ;;  %v6778_v27 = vpop.eup %5523  ;;  %v1499_v0 = vadd.f32 %v6763_v45, %v6760_v5  ;;  %v1338_v33 = vsel %vm1336_vm1, %v6768_v15, -inf  ;;  %8183 = vst [vmem:[#allocation16_spill] sm:$0xff] %v6792_v34  ;;  %v1474_v63 = vadd.f32 %v1473_v7, %v1472_v42  ;;  %v2287_v60 = vpop.f32.mrb[32].mxu1  ;;  %v6800_v56 = vadd.f32 %v1216_v43, %v6323_v35 }
 0x173   : > { %v6783_v37 = vpop.eup %5525  ;;  %v1495_v4 = vrot.slane %v1494_v55, 2  ;;  %v1480_v32 = vadd.f32 %v1479_v11, %v1478_v48  ;;  %v1339_v30 = vmax.f32 %v1337_v13, %v1338_v33  ;;  %v1218_v57 = vpop.f32.mrb[33].mxu0  ;;  %v2564_v47 = vmax.f32 %v6774_v17, %v6792_v34 }
 0x174   : > { %v6794_v38 = vpop.eup %5527  ;;  %v1500_v49 = vadd.f32 %v6778_v27, %v1499_v0  ;;  %v6805_v22 = vadd.f32 %v2287_v60, %v6323_v35  ;;  %v2289_v42 = vpop.f32.mrb[33].mxu1  ;;  %5531 = vrcp.f32 %v1474_v63  ;;  %v1325_v33 = vmax.f32 %v1324_v9, %v6800_v56 }
 0x175   : > { %v6797_v52 = vpop.eup %5529  ;;  %v1496_v7 = vadd.f32 %v1495_v4, %v1494_v55  ;;  %v1481_v48 = vrot.slane %v1480_v32, 4  ;;  %v1220_v11 = vpop.f32.mrb[34].mxu0  ;;  %v6812_v43 = vadd.f32 %v1218_v57, %v6323_v35 }
 0x176   : > { %v1501_v0 = vadd.f32 %v6783_v37, %v1500_v49  ;;  %v2291_v6 = vpop.f32.mrb[34].mxu1  ;;  %v1503_v13 = vsel %vm1279_vm0, %v6797_v52, 0.0  ;;  %v6815_v1 = vadd.f32 %v1220_v11, %v6364_v36  ;;  %v1222_v60 = vpop.f32.mrb[35].mxu0  ;;  %v2553_v57 = vmax.f32 %v2552_v29, %v6805_v22 }
 0x177   : > { %8184 = vst [vmem:[#allocation17_spill] sm:$0xff] %v6812_v43  ;;  %v2293_v44 = vpop.f32.mrb[35].mxu1  ;;  %v1497_v63 = vrot.slane %v1496_v7, 1  ;;  %v1482_v55 = vadd.f32 %v1481_v48, %v1480_v32  ;;  %v6819_v49 = vadd.f32 %v1222_v60, %v6364_v36  ;;  %v1340_v34 = vsel %vm1336_vm1, %v6812_v43, -inf }
 0x178   : > { %v1502_v4 = vadd.f32 %v6794_v38, %v1501_v0  ;;  %v1326_v9 = vmax.f32 %v1325_v33, %v6815_v1  ;;  %v6826_v11 = vadd.f32 %v2289_v42, %v6323_v35  ;;  %v1341_v32 = vmax.f32 %v1339_v30, %v1340_v34 }
 0x179   : > { %8185 = vst [vmem:[#allocation18_spill] sm:$0xff] %v6819_v49  ;;  %v1498_v17 = vadd.f32 %v1497_v63, %v1496_v7  ;;  %v1483_v15 = vrot.slane %v1482_v55, 2  ;;  %v1342_v48 = vsel %vm1336_vm1, %v6819_v49, -inf  ;;  %v6832_v60 = vadd.f32 %v2291_v6, %v6364_v36  ;;  %v1226_v63 = vpop.f32.mrb[36].mxu0 }
 0x17a   : > { %8186 = vst [vmem:[#allocation19_spill] sm:$0xff] %v6826_v11  ;;  %v1504_v31 = vadd.f32 %v1503_v13, %v1502_v4  ;;  %v2565_v0 = vmax.f32 %v2564_v47, %v6826_v11  ;;  %v6835_v33 = vadd.f32 %v2293_v44, %v6364_v36  ;;  %v1343_v7 = vmax.f32 %v1341_v32, %v1342_v48  ;;  %v2297_v13 = vpop.f32.mrb[36].mxu1  ;;  %v8188_v4 = vld [vmem:[#allocation6_spill] sm:$0xff]  ;;  %v1228_v47 = vpop.f32.mrb[37].mxu0 }
 0x17b   : > { %5533 = vrcp.f32 %v1498_v17  ;;  %v1484_v29 = vadd.f32 %v1483_v15, %v1482_v55  ;;  %v2554_v34 = vmax.f32 %v2553_v57, %v6832_v60  ;;  %v6841_v35 = vadd.f32 %v1226_v63, %v8188_v4  ;;  %v2299_v44 = vpop.f32.mrb[37].mxu1  ;;  %v1230_v55 = vpop.f32.mrb[38].mxu0 }
 0x17c   : > { %8187 = vst [vmem:[#allocation20_spill] sm:$0xff] %v6835_v33  ;;  %v1505_v42 = vrot.slane %v1504_v31, 4  ;;  %v2566_v30 = vmax.f32 %v2565_v0, %v6835_v33  ;;  %v6844_v6 = vadd.f32 %v2297_v13, %v8188_v4  ;;  %v6847_v15 = vadd.f32 %v1228_v47, %v8188_v4  ;;  %v2301_v57 = vpop.f32.mrb[38].mxu1  ;;  %v8189_v0 = vld [vmem:[#allocation7_spill] sm:$0xff]  ;;  %v1232_v33 = vpop.f32.mrb[39].mxu0 }
 0x17d   : > { %v1485_v36 = vrot.slane %v1484_v29, 1  ;;  %v6850_v17 = vadd.f32 %v2299_v44, %v8188_v4  ;;  %v1327_v32 = vmax.f32 %v1326_v9, %v6841_v35  ;;  %v6855_v63 = vadd.f32 %v1230_v55, %v8189_v0 }
 0x17e   : > { %v1506_v11 = vadd.f32 %v1505_v42, %v1504_v31  ;;  %v2555_v48 = vmax.f32 %v2554_v34, %v6844_v6  ;;  %v6858_v13 = vadd.f32 %v2301_v57, %v8189_v0  ;;  %v2303_v31 = vpop.f32.mrb[39].mxu1  ;;  %v5532_v42 = vpop.eup %5531  ;;  %v1344_v47 = vsel %vm1336_vm1, %v6847_v15, -inf }
 0x17f   : > { %v1486_v9 = vadd.f32 %v1485_v36, %v1484_v29  ;;  %v2567_v44 = vmax.f32 %v2566_v30, %v6850_v17  ;;  %v1546_v55 = vmul.f32 %v5532_v42, %v6620_v18  ;;  %v1552_v57 = vmul.f32 %v5532_v42, %v6628_v19 }
 0x180   : > { %v1507_v34 = vrot.slane %v1506_v11, 2  ;;  %v1558_v4 = vmul.f32 %v5532_v42, %v6634_v23  ;;  %v1564_v49 = vmul.f32 %v5532_v42, %v6641_v46  ;;  %v1570_v43 = vmul.f32 %v5532_v42, %v6651_v40 }
 0x181   : > { %v1576_v36 = vmul.f32 %v5532_v42, %v6662_v14  ;;  %5535 = vrcp.f32 %v1486_v9  ;;  %1582 = vst [vmem:[%s6863_s25] sm:$0xff] %v1546_v55  ;;  %1588 = vst [vmem:[%s6863_s25 + $0x30] sm:$0xff] %v1552_v57  ;;  %v1345_v30 = vmax.f32 %v1343_v7, %v1344_v47  ;;  %v1328_v18 = vsel %vm1279_vm0, %v6855_v63, -inf }
 0x182   : > { %v1508_v29 = vadd.f32 %v1507_v34, %v1506_v11  ;;  %1594 = vst [vmem:[%s6863_s25 + $0x60] sm:$0xff] %v1558_v4  ;;  %1600 = vst [vmem:[%s6863_s25 + $0x90] sm:$0xff] %v1564_v49  ;;  %v2556_v19 = vsel %vm1279_vm0, %v6858_v13, -inf  ;;  %v6883_v23 = vadd.f32 %v1232_v33, %v8189_v0  ;;  %v1329_v40 = vmax.f32 %v1327_v32, %v1328_v18  ;;  %v1236_v11 = vpop.f32.mrb[40].mxu0  ;;  %v2307_v42 = vpop.f32.mrb[40].mxu1  ;;  %v8190_v4 = vld [vmem:[#allocation8_spill] sm:$0xff] }
 0x183   : > { %1606 = vst [vmem:[%s6863_s25 + $0xc0] sm:$0xff] %v1570_v43  ;;  %1612 = vst [vmem:[%s6863_s25 + $0xf0] sm:$0xf] %v1576_v36  ;;  %v2557_v14 = vmax.f32 %v2555_v48, %v2556_v19  ;;  %v6890_v7 = vadd.f32 %v2303_v31, %v8189_v0  ;;  %v1237_v9 = vadd.f32 %v1236_v11, %v8190_v4  ;;  %v1238_v34 = vpop.f32.mrb[41].mxu0  ;;  %v2309_v43 = vpop.f32.mrb[41].mxu1 }
 0x184   : > { %v1509_v46 = vrot.slane %v1508_v29, 1  ;;  %v1347_v49 = vsel %vm1346_vm2, %v6883_v23, -inf  ;;  %v2308_v33 = vadd.f32 %v2307_v42, %v8190_v4  ;;  %v1330_v32 = vrot.slane %v1329_v40, 4  ;;  %v1240_v36 = vpop.f32.mrb[42].mxu0  ;;  %v2311_v18 = vpop.f32.mrb[42].mxu1 }
 0x185   : > { %v5534_v47 = vpop.eup %5533  ;;  %v2558_v48 = vrot.slane %v2557_v14, 4  ;;  %v1348_v57 = vmax.f32 %v1345_v30, %v1347_v49  ;;  %1622 = vst [vmem:[%s6483_s10 + $0x20] sm:$0xff] %v1237_v9 }
 0x186   : > { %v1510_v55 = vadd.f32 %v1509_v46, %v1508_v29  ;;  %v1548_v31 = vmul.f32 %v5534_v47, %v6673_v26  ;;  %v1554_v19 = vmul.f32 %v5534_v47, %v6680_v51  ;;  %v1560_v11 = vmul.f32 %v5534_v47, %v6690_v61  ;;  %v1242_v29 = vpop.f32.mrb[43].mxu0  ;;  %4658 = vst [vmem:[%s6483_s10 + $0x180] sm:$0xff] %v2308_v33  ;;  %v2313_v46 = vpop.f32.mrb[43].mxu1 }
 0x187   : > { %v1566_v42 = vmul.f32 %v5534_v47, %v6698_v24  ;;  %v1572_v30 = vmul.f32 %v5534_v47, %v6710_v41  ;;  %v1578_v49 = vmul.f32 %v5534_v47, %v6715_v62  ;;  %v1331_v0 = vmax.f32 %v1329_v40, %v1330_v32 }
 0x188   : > { %5537 = vrcp.f32 %v1510_v55  ;;  %1584 = vst [vmem:[%s6863_s25 + $0x10] sm:$0xff] %v1548_v31  ;;  %1590 = vst [vmem:[%s6863_s25 + $0x40] sm:$0xff] %v1554_v19  ;;  %v2559_v26 = vmax.f32 %v2557_v14, %v2558_v48  ;;  %v1349_v51 = vrot.slane %v1348_v57, 4  ;;  %v2568_v61 = vsel %vm1279_vm0, %v6890_v7, -inf }
 0x189   : > { %1596 = vst [vmem:[%s6863_s25 + $0x70] sm:$0xff] %v1560_v11  ;;  %1602 = vst [vmem:[%s6863_s25 + $0xa0] sm:$0xff] %v1566_v42  ;;  %v1239_v24 = vadd.f32 %v1238_v34, %v8190_v4  ;;  %v1332_v41 = vrot.slane %v1331_v0, 2  ;;  %v2569_v62 = vmax.f32 %v2567_v44, %v2568_v61  ;;  %v1241_v40 = vadd.f32 %v1240_v36, %v6478_v12  ;;  %v1246_v44 = vpop.f32.mrb[44].mxu0 }
 0x18a   : > { %1608 = vst [vmem:[%s6863_s25 + $0xd0] sm:$0xff] %v1572_v30  ;;  %1614 = vst [vmem:[%s6863_s25 + $0x100] sm:$0xf] %v1578_v49  ;;  %v1243_v9 = vadd.f32 %v1242_v29, %v6478_v12  ;;  %v2560_v33 = vrot.slane %v2559_v26, 2  ;;  %v1350_v47 = vmax.f32 %v1348_v57, %v1349_v51  ;;  %v2310_v14 = vadd.f32 %v2309_v43, %v8190_v4  ;;  %v2317_v31 = vpop.f32.mrb[44].mxu1  ;;  %v1248_v19 = vpop.f32.mrb[45].mxu0 }
 0x18b   : > { %1623 = vst.msk [vmem:[%s6483_s10 + $0x28] sm:$0xff] %vm1336_vm1, %v1239_v24  ;;  %v2312_v55 = vadd.f32 %v2311_v18, %v6478_v12  ;;  %v5536_v34 = vpop.eup %5535  ;;  %v1333_v32 = vmax.f32 %v1331_v0, %v1332_v41  ;;  %v2570_v48 = vrot.slane %v2569_v62, 4  ;;  %1628 = vst [vmem:[%s6483_s10 + $0x50] sm:$0xff] %v1241_v40  ;;  %v2314_v36 = vadd.f32 %v2313_v46, %v6478_v12  ;;  %v2319_v11 = vpop.f32.mrb[45].mxu1 }
 0x18c   : > { %1629 = vst.msk [vmem:[%s6483_s10 + $0x58] sm:$0xff] %vm1336_vm1, %v1243_v9  ;;  %v1547_v57 = vmul.f32 %v5536_v34, %v6723_v50  ;;  %v1553_v43 = vmul.f32 %v5536_v34, %v6729_v16  ;;  %v1559_v18 = vmul.f32 %v5536_v34, %v6733_v58  ;;  %v1565_v0 = vmul.f32 %v5536_v34, %v6738_v39  ;;  %v1250_v30 = vpop.f32.mrb[46].mxu0  ;;  %v6930_v16 = vpop.f32.mrb[46].mxu1 }
 0x18d   : > { %4659 = vst [vmem:[%s6483_s10 + $0x188] sm:$0xff] %v2310_v14  ;;  %4664 = vst [vmem:[%s6483_s10 + $0x1b0] sm:$0xff] %v2312_v55  ;;  %v1571_v42 = vmul.f32 %v5536_v34, %v6746_v21  ;;  %v1577_v29 = vmul.f32 %v5536_v34, %v6749_v2  ;;  %v1334_v46 = vrot.slane %v1333_v32, 1  ;;  %v2561_v50 = vmax.f32 %v2559_v26, %v2560_v33  ;;  %v1252_v49 = vpop.f32.mrb[47].mxu0  ;;  %v6938_v51 = vpop.f32.mrb[47].mxu1 }
 0x18e   : > { %4665 = vst [vmem:[%s6483_s10 + $0x1b8] sm:$0xff] %v2314_v36  ;;  %1583 = vst [vmem:[%s6863_s25 + $0x8] sm:$0xff] %v1547_v57  ;;  %v1351_v58 = vrot.slane %v1350_v47, 2  ;;  %v2571_v39 = vmax.f32 %v2569_v62, %v2570_v48  ;;  %v1247_v21 = vadd.f32 %v1246_v44, %v6515_v10  ;;  %v1249_v2 = vadd.f32 %v1248_v19, %v6515_v10 }
 0x18f   : > { %1589 = vst [vmem:[%s6863_s25 + $0x38] sm:$0xff] %v1553_v43  ;;  %1595 = vst [vmem:[%s6863_s25 + $0x68] sm:$0xff] %v1559_v18  ;;  %v1335_v26 = vmax.f32 %v1333_v32, %v1334_v46  ;;  %v2562_v61 = vrot.slane %v2561_v50, 1  ;;  %v1251_v24 = vadd.f32 %v1250_v30, %v6519_v25  ;;  %v1253_v41 = vadd.f32 %v1252_v49, %v6519_v25 }
 0x190   : > { %1601 = vst [vmem:[%s6863_s25 + $0x98] sm:$0xff] %v1565_v0  ;;  %1607 = vst [vmem:[%s6863_s25 + $0xc8] sm:$0xff] %v1571_v42  ;;  %v6944_v40 = vmax.f32 %v1350_v47, %v1351_v58  ;;  %v2572_v62 = vrot.slane %v2571_v39, 2  ;;  %v2318_v9 = vadd.f32 %v2317_v31, %v6515_v10  ;;  %v2320_v33 = vadd.f32 %v2319_v11, %v6515_v10 }
 0x191   : > { %1613 = vst [vmem:[%s6863_s25 + $0xf8] sm:$0xf] %v1577_v29  ;;  %1634 = vst [vmem:[%s6483_s10 + $0x80] sm:$0xff] %v1247_v21  ;;  %v1359_v55 = vsub.f32 %v6741_v59, %v1335_v26  ;;  %v1365_v34 = vsub.f32 %v6755_v53, %v1335_v26  ;;  %v1371_v32 = vsub.f32 %v6800_v56, %v1335_v26  ;;  %v1256_v57 = vpop.f32.mrb[48].mxu0 }
 0x192   : > { %1635 = vst.msk [vmem:[%s6483_s10 + $0x88] sm:$0xff] %vm1336_vm1, %v1249_v2  ;;  %v5538_v14 = vpop.eup %5537  ;;  %v1377_v47 = vsub.f32 %v6815_v1, %v1335_v26  ;;  %1640 = vst [vmem:[%s6483_s10 + $0xb0] sm:$0xff] %v1251_v24  ;;  %v1383_v56 = vsub.f32 %v6841_v35, %v1335_v26  ;;  %v1389_v31 = vsub.f32 %v6855_v63, %v1335_v26  ;;  %v1258_v11 = vpop.f32.mrb[49].mxu0  ;;  %v1353_v49 = vrot.slane %v6944_v40, 1 }
 0x193   : > { %1641 = vst.msk [vmem:[%s6483_s10 + $0xb8] sm:$0xff] %vm1336_vm1, %v1253_v41  ;;  %v1549_v48 = vmul.f32 %v5538_v14, %v6760_v5  ;;  %v1555_v44 = vmul.f32 %v5538_v14, %v6763_v45  ;;  %v1561_v36 = vmul.f32 %v5538_v14, %v6778_v27  ;;  %v1567_v59 = vmul.f32 %v5538_v14, %v6783_v37  ;;  %v6968_v5 = vpop.f32.mrb[48].mxu1  ;;  %v1260_v30 = vpop.f32.mrb[50].mxu0 }
 0x194   : > { %4670 = vst [vmem:[%s6483_s10 + $0x1e0] sm:$0xff] %v2318_v9  ;;  %4671 = vst [vmem:[%s6483_s10 + $0x1e8] sm:$0xff] %v2320_v33  ;;  %v1573_v1 = vmul.f32 %v5538_v14, %v6794_v38  ;;  %v1579_v53 = vmul.f32 %v5538_v14, %v6797_v52  ;;  %v1399_v45 = vmul.f32 1.442695, %v1359_v55  ;;  %v1411_v27 = vmul.f32 1.442695, %v1365_v34 }
 0x195   : > { %1585 = vst [vmem:[%s6863_s25 + $0x18] sm:$0xff] %v1549_v48  ;;  %1591 = vst [vmem:[%s6863_s25 + $0x48] sm:$0xff] %v1555_v44  ;;  %v1423_v37 = vmul.f32 1.442695, %v1371_v32  ;;  %v2563_v43 = vmax.f32 %v2561_v50, %v2562_v61  ;;  %v1435_v38 = vmul.f32 1.442695, %v1377_v47  ;;  %v2573_v0 = vmax.f32 %v2571_v39, %v2572_v62 }
 0x196   : > { %1597 = vst [vmem:[%s6863_s25 + $0x78] sm:$0xff] %v1561_v36  ;;  %1603 = vst [vmem:[%s6863_s25 + $0xa8] sm:$0xff] %v1567_v59  ;;  %v1447_v18 = vmul.f32 1.442695, %v1383_v56  ;;  %v1459_v52 = vmul.f32 1.442695, %v1389_v31  ;;  %5539 = vpow2.f32 %v1399_v45  ;;  %v1259_v61 = vadd.f32 %v1258_v11, %v6594_v3 }
 0x197   : > { %1609 = vst [vmem:[%s6863_s25 + $0xd8] sm:$0xff] %v1573_v1  ;;  %1615 = vst [vmem:[%s6863_s25 + $0x108] sm:$0xf] %v1579_v53  ;;  %v2629_v35 = vsub.f32 %v6744_v28, %v2563_v43  ;;  %v2635_v63 = vsub.f32 %v6758_v8, %v2563_v43  ;;  %v2641_v19 = vsub.f32 %v6805_v22, %v2563_v43  ;;  %v6979_v42 = vpop.f32.mrb[49].mxu1  ;;  %5541 = vpow2.f32 %v1411_v27  ;;  %v1262_v26 = vpop.f32.mrb[51].mxu0  ;;  %v8191_v59 = vld [vmem:[#allocation13_spill] sm:$0xff] }
 0x198   : > { %v2647_v29 = vsub.f32 %v6832_v60, %v2563_v43  ;;  %v2653_v46 = vsub.f32 %v6844_v6, %v2563_v43  ;;  %v2659_v50 = vsub.f32 %v6858_v13, %v2563_v43  ;;  %v6984_v58 = vpop.f32.mrb[50].mxu1  ;;  %5543 = vpow2.f32 %v1423_v37  ;;  %1647 = vst.msk [vmem:[%s6483_s10 + $0xe8] sm:$0xff] %vm1336_vm1, %v1259_v61  ;;  %v8192_v53 = vld [vmem:[#allocation14_spill] sm:$0xff]  ;;  %v8193_v31 = vld [vmem:[#allocation17_spill] sm:$0xff] }
 0x199   : > { %v2665_v39 = vmul.f32 1.442695, %v2629_v35  ;;  %v2677_v28 = vmul.f32 1.442695, %v2635_v63  ;;  %v2689_v21 = vmul.f32 1.442695, %v2641_v19  ;;  %5545 = vpow2.f32 %v1435_v38 }
 0x19a   : > { %v2701_v8 = vmul.f32 1.442695, %v2647_v29  ;;  %v2713_v22 = vmul.f32 1.442695, %v2653_v46  ;;  %v2725_v2 = vmul.f32 1.442695, %v2659_v50  ;;  %5547 = vpow2.f32 %v1447_v18 }
 0x19b   : > { %v2574_v60 = vrot.slane %v2573_v0, 1  ;;  %v1257_v6 = vadd.f32 %v1256_v57, %v6594_v3  ;;  %v6988_v13 = vpop.f32.mrb[51].mxu1  ;;  %5549 = vpow2.f32 %v1459_v52  ;;  %v1261_v24 = vadd.f32 %v1260_v30, %v6592_v54  ;;  %v1266_v62 = vpop.f32.mrb[52].mxu0  ;;  %v8194_v37 = vld [vmem:[#allocation18_spill] sm:$0xff]  ;;  %v8196_v50 = vld [vmem:[#allocation16_spill] sm:$0xff] }
 0x19c   : > { %v1263_v41 = vadd.f32 %v1262_v26, %v6592_v54  ;;  %v6993_v9 = vpop.f32.mrb[52].mxu1  ;;  %5551 = vpow2.f32 %v2665_v39  ;;  %v1354_v33 = vmax.f32 %v6944_v40, %v1353_v49  ;;  %v1267_v55 = vadd.f32 %v1266_v62, %v6618_v20  ;;  %v1268_v34 = vpop.f32.mrb[53].mxu0 }
 0x19d   : > { %v6996_v14 = vmax.f32 %v2573_v0, %v2574_v60  ;;  %1646 = vst [vmem:[%s6483_s10 + $0xe0] sm:$0xff] %v1257_v6  ;;  %v7000_v32 = vpop.f32.mrb[53].mxu1  ;;  %5553 = vpow2.f32 %v2677_v28  ;;  %1652 = vst [vmem:[%s6483_s10 + $0x110] sm:$0xff] %v1261_v24  ;;  %v1269_v47 = vadd.f32 %v1268_v34, %v6618_v20  ;;  %v1270_v48 = vpop.f32.mrb[54].mxu0  ;;  %v2322_v40 = vadd.f32 %v6930_v16, %v6519_v25  ;;  %v8197_v28 = vld [vmem:[#allocation19_spill] sm:$0xff] }
 0x19e   : > { %1653 = vst.msk [vmem:[%s6483_s10 + $0x118] sm:$0xff] %vm1336_vm1, %v1263_v41  ;;  %v2324_v44 = vadd.f32 %v6938_v51, %v6519_v25  ;;  %v7012_v36 = vpop.f32.mrb[54].mxu1  ;;  %5555 = vpow2.f32 %v2689_v21  ;;  %v1360_v1 = vsub.f32 %v8191_v59, %v1354_v33  ;;  %v1366_v56 = vsub.f32 %v8192_v53, %v1354_v33  ;;  %1658 = vst [vmem:[%s6483_s10 + $0x140] sm:$0xff] %v1267_v55  ;;  %v1272_v45 = vpop.f32.mrb[55].mxu0 }
 0x19f   : > { %v1372_v57 = vsub.f32 %v8193_v31, %v1354_v33  ;;  %v7018_v27 = vpop.f32.mrb[55].mxu1  ;;  %5557 = vpow2.f32 %v2701_v8  ;;  %v1378_v16 = vsub.f32 %v8194_v37, %v1354_v33  ;;  %v1384_v43 = vsub.f32 %v6847_v15, %v1354_v33  ;;  %1659 = vst.msk [vmem:[%s6483_s10 + $0x148] sm:$0xff] %vm1336_vm1, %v1269_v47  ;;  %4676 = vst [vmem:[%s6483_s10 + $0x210] sm:$0xff] %v2322_v40  ;;  %v8198_v8 = vld [vmem:[#allocation20_spill] sm:$0xff] }
 0x1a0   : > { %v1390_v51 = vsub.f32 %v6883_v23, %v1354_v33  ;;  %4677 = vst [vmem:[%s6483_s10 + $0x218] sm:$0xff] %v2324_v44  ;;  %v7027_v38 = vpop.eup %5539  ;;  %5559 = vpow2.f32 %v2713_v22  ;;  %v1401_v18 = vmul.f32 1.442695, %v1360_v1  ;;  %v1413_v52 = vmul.f32 1.442695, %v1366_v56  ;;  %v8195_v23 = vld [vmem:[#allocation15_spill] sm:$0xff] }
 0x1a1   : > { %v1425_v0 = vmul.f32 1.442695, %v1372_v57  ;;  %v7029_v35 = vpop.eup %5541  ;;  %5561 = vpow2.f32 %v2725_v2  ;;  %v1437_v63 = vmul.f32 1.442695, %v1378_v16  ;;  %v1449_v19 = vmul.f32 1.442695, %v1384_v43 }
 0x1a2   : > { %v1461_v11 = vmul.f32 1.442695, %v1390_v51  ;;  %v7031_v29 = vpop.eup %5543  ;;  %v1511_v15 = vadd.f32 %v7029_v35, %v7027_v38  ;;  %5563 = vpow2.f32 %v1401_v18  ;;  %v2630_v46 = vsub.f32 %v8195_v23, %v6996_v14 }
 0x1a3   : > { %v2636_v30 = vsub.f32 %v8196_v50, %v6996_v14  ;;  %v7039_v39 = vpop.eup %5545  ;;  %5565 = vpow2.f32 %v1413_v52  ;;  %v2642_v21 = vsub.f32 %v8197_v28, %v6996_v14  ;;  %v2648_v22 = vsub.f32 %v8198_v8, %v6996_v14 }
 0x1a4   : > { %v2654_v2 = vsub.f32 %v6850_v17, %v6996_v14  ;;  %v7047_v49 = vpop.eup %5547  ;;  %v1512_v60 = vadd.f32 %v7031_v29, %v1511_v15  ;;  %5567 = vpow2.f32 %v1425_v0  ;;  %v2660_v6 = vsub.f32 %v6890_v7, %v6996_v14  ;;  %v8199_v14 = vld [vmem:[#allocation11_spill] sm:$0xff]  ;;  %v8200_v15 = vld [vmem:[#allocation2_spill] sm:$0xff] }
 0x1a5   : > { %v2667_v26 = vmul.f32 1.442695, %v2630_v46  ;;  %v7052_v61 = vpop.eup %5549  ;;  %5569 = vpow2.f32 %v1437_v63  ;;  %v2679_v24 = vmul.f32 1.442695, %v2636_v30  ;;  %v2691_v41 = vmul.f32 1.442695, %v2642_v21 }
 0x1a6   : > { %v2703_v62 = vmul.f32 1.442695, %v2648_v22  ;;  %v7054_v33 = vpop.eup %5551  ;;  %v1513_v55 = vadd.f32 %v7039_v39, %v1512_v60  ;;  %v1515_v17 = vsel %vm1279_vm0, %v7052_v61, 0.0  ;;  %5571 = vpow2.f32 %v1449_v19  ;;  %v8201_v22 = vld [vmem:[#allocation3_spill] sm:$0xff] }
 0x1a7   : > { %v2715_v34 = vmul.f32 1.442695, %v2654_v2  ;;  %v7059_v47 = vpop.eup %5553  ;;  %5573 = vpow2.f32 %v1461_v11  ;;  %v2727_v7 = vmul.f32 1.442695, %v2660_v6  ;;  %v1271_v40 = vadd.f32 %v1270_v48, %v8199_v14 }
 0x1a8   : > { %v1273_v44 = vadd.f32 %v1272_v45, %v8199_v14  ;;  %v7063_v59 = vpop.eup %5555  ;;  %v1514_v1 = vadd.f32 %v7047_v49, %v1513_v55  ;;  %v2737_v53 = vadd.f32 %v7059_v47, %v7054_v33  ;;  %5575 = vpow2.f32 %v2667_v26 }
 0x1a9   : > { %v2328_v56 = vadd.f32 %v6968_v5, %v6594_v3  ;;  %v7070_v31 = vpop.eup %5557  ;;  %5577 = vpow2.f32 %v2679_v24  ;;  %1664 = vst [vmem:[%s6483_s10 + $0x170] sm:$0xff] %v1271_v40  ;;  %v2330_v48 = vadd.f32 %v6979_v42, %v6594_v3  ;;  %v2332_v57 = vadd.f32 %v6984_v58, %v6592_v54  ;;  %v2380_v42 = vpop.f32.mrb[56].mxu0 }
 0x1aa   : > { %1665 = vst.msk [vmem:[%s6483_s10 + $0x178] sm:$0xff] %vm1336_vm1, %v1273_v44  ;;  %v2334_v45 = vadd.f32 %v6988_v13, %v6592_v54  ;;  %v7081_v37 = vpop.eup %5559  ;;  %v1516_v5 = vadd.f32 %v1515_v17, %v1514_v1  ;;  %v2738_v16 = vadd.f32 %v7063_v59, %v2737_v53  ;;  %5579 = vpow2.f32 %v2691_v41  ;;  %v2382_v19 = vpop.f32.mrb[57].mxu0 }
 0x1ab   : > { %4682 = vst [vmem:[%s6483_s10 + $0x240] sm:$0xff] %v2328_v56  ;;  %v2338_v43 = vadd.f32 %v6993_v9, %v6618_v20  ;;  %v7087_v51 = vpop.eup %5561  ;;  %5581 = vpow2.f32 %v2703_v62  ;;  %4683 = vst [vmem:[%s6483_s10 + $0x248] sm:$0xff] %v2330_v48  ;;  %v2340_v58 = vadd.f32 %v7000_v32, %v6618_v20  ;;  %v2342_v13 = vadd.f32 %v7012_v36, %v8199_v14  ;;  %v2483_v9 = vpop.f32.mrb[56].mxu1  ;;  %v8208_v20 = vld [vmem:[#allocation5_spill] sm:$0xff] }
 0x1ac   : > { %4688 = vst [vmem:[%s6483_s10 + $0x270] sm:$0xff] %v2332_v57  ;;  %4689 = vst [vmem:[%s6483_s10 + $0x278] sm:$0xff] %v2334_v45  ;;  %v2344_v18 = vadd.f32 %v7018_v27, %v8199_v14  ;;  %v7098_v52 = vpop.eup %5563  ;;  %v1517_v0 = vrot.slane %v1516_v5, 4  ;;  %v2739_v63 = vadd.f32 %v7070_v31, %v2738_v16  ;;  %5583 = vpow2.f32 %v2715_v34  ;;  %v2485_v11 = vpop.f32.mrb[57].mxu1 }
 0x1ad   : > { %4694 = vst [vmem:[%s6483_s10 + $0x2a0] sm:$0xff] %v2338_v43  ;;  %v7102_v32 = vpop.eup %5565  ;;  %v2741_v36 = vsel %vm1279_vm0, %v7087_v51, 0.0  ;;  %v1523_v27 = vsel %vm1336_vm1, %v7098_v52, 0.0  ;;  %5585 = vpow2.f32 %v2727_v7  ;;  %v7109_v23 = vadd.f32 %v2380_v42, %v8200_v15  ;;  %v2384_v46 = vpop.f32.mrb[58].mxu0  ;;  %4695 = vst [vmem:[%s6483_s10 + $0x2a8] sm:$0xff] %v2340_v58 }
 0x1ae   : > { %4700 = vst [vmem:[%s6483_s10 + $0x2d0] sm:$0xff] %v2342_v13  ;;  %4701 = vst [vmem:[%s6483_s10 + $0x2d8] sm:$0xff] %v2344_v18  ;;  %v2487_v50 = vpop.f32.mrb[58].mxu1  ;;  %v7114_v30 = vpop.eup %5567  ;;  %v1518_v28 = vadd.f32 %v1517_v0, %v1516_v5  ;;  %v2740_v21 = vadd.f32 %v7081_v37, %v2739_v63  ;;  %v1524_v8 = vsel %vm1336_vm1, %v7102_v32, 0.0  ;;  %v7120_v2 = vadd.f32 %v2384_v46, %v8201_v22 }
 0x1af   : > { %v2386_v60 = vpop.f32.mrb[59].mxu0  ;;  %v2489_v6 = vpop.f32.mrb[59].mxu1  ;;  %v1525_v24 = vadd.f32 %v1524_v8, %v1523_v27  ;;  %v1526_v41 = vsel %vm1336_vm1, %v7114_v30, 0.0  ;;  %v7127_v62 = vadd.f32 %v2382_v19, %v8200_v15  ;;  %v7137_v44 = vadd.f32 %v2483_v9, %v8200_v15 }
 0x1b0   : > { %v7122_v26 = vpop.eup %5569  ;;  %v7130_v55 = vadd.f32 %v2386_v60, %v8201_v22  ;;  %v1519_v34 = vrot.slane %v1518_v28, 2  ;;  %v2742_v7 = vadd.f32 %v2741_v36, %v2740_v21  ;;  %v2576_v40 = vmax.f32 %v7109_v23, %v7120_v2 }
 0x1b1   : > { %8202 = vst [vmem:[#allocation8_spill] sm:$0xff] %v7127_v62  ;;  %v7132_v17 = vpop.eup %5571  ;;  %v1527_v53 = vadd.f32 %v1526_v41, %v1525_v24  ;;  %v1528_v56 = vsel %vm1336_vm1, %v7122_v26, 0.0  ;;  %v7146_v57 = vadd.f32 %v2485_v11, %v8200_v15  ;;  %v7153_v42 = vadd.f32 %v2487_v50, %v8201_v22  ;;  %v2390_v9 = vpop.f32.mrb[60].mxu0  ;;  %v8206_v50 = vld [vmem:[#allocation4_spill] sm:$0xff] }
 0x1b2   : > { %8203 = vst [vmem:[#allocation13_spill] sm:$0xff] %v7130_v55  ;;  %v7139_v1 = vpop.eup %5573  ;;  %v2588_v48 = vmax.f32 %v7127_v62, %v7130_v55  ;;  %v1520_v5 = vadd.f32 %v1519_v34, %v1518_v28  ;;  %v2743_v16 = vrot.slane %v2742_v7, 4  ;;  %v1530_v43 = vsel %vm1336_vm1, %v7132_v17, 0.0  ;;  %v2493_v19 = vpop.f32.mrb[60].mxu1  ;;  %v8216_v62 = vld [vmem:[#allocation7_spill] sm:$0xff] }
 0x1b3   : > { %8204 = vst [vmem:[#allocation14_spill] sm:$0xff] %v7146_v57  ;;  %v7148_v45 = vpop.eup %5575  ;;  %v1529_v13 = vadd.f32 %v1528_v56, %v1527_v53  ;;  %v1532_v18 = vsel %vm1346_vm2, %v7139_v1, 0.0  ;;  %v2612_v0 = vsel %vm1336_vm1, %v7146_v57, -inf  ;;  %v7162_v63 = vadd.f32 %v2489_v6, %v8201_v22  ;;  %v2392_v21 = vpop.f32.mrb[61].mxu0 }
 0x1b4   : > { %v7155_v58 = vpop.eup %5577  ;;  %v1521_v36 = vrot.slane %v1520_v5, 1  ;;  %v2744_v27 = vadd.f32 %v2743_v16, %v2742_v7  ;;  %v7169_v28 = vadd.f32 %v2390_v9, %v8206_v50  ;;  %v2495_v8 = vpop.f32.mrb[61].mxu1  ;;  %v7174_v41 = vadd.f32 %v2392_v21, %v8206_v50 }
 0x1b5   : > { %8205 = vst [vmem:[#allocation17_spill] sm:$0xff] %v7162_v63  ;;  %v7164_v11 = vpop.eup %5579  ;;  %v2749_v46 = vadd.f32 %v7155_v58, %v7148_v45  ;;  %v1531_v24 = vadd.f32 %v1530_v43, %v1529_v13  ;;  %v2394_v6 = vpop.f32.mrb[62].mxu0  ;;  %v2600_v34 = vmax.f32 %v7137_v44, %v7153_v42  ;;  %v2613_v7 = vsel %vm1336_vm1, %v7162_v63, -inf }
 0x1b6   : > { %v7171_v60 = vpop.eup %5581  ;;  %8207 = vst [vmem:[#allocation18_spill] sm:$0xff] %v7174_v41  ;;  %v2497_v53 = vpop.f32.mrb[62].mxu1  ;;  %v1522_v16 = vadd.f32 %v1521_v36, %v1520_v5  ;;  %v2745_v9 = vrot.slane %v2744_v27, 2  ;;  %v2577_v15 = vmax.f32 %v2576_v40, %v7169_v28  ;;  %v2589_v14 = vmax.f32 %v2588_v48, %v7174_v41 }
 0x1b7   : > { %v7180_v56 = vpop.eup %5583  ;;  %v2750_v22 = vadd.f32 %v7164_v11, %v2749_v46  ;;  %v2396_v43 = vpop.f32.mrb[63].mxu0  ;;  %v1533_v57 = vadd.f32 %v1532_v18, %v1531_v24  ;;  %v7188_v54 = vadd.f32 %v2394_v6, %v8208_v20  ;;  %v2614_v24 = vmax.f32 %v2612_v0, %v2613_v7 }
 0x1b8   : > { %v2499_v13 = vpop.f32.mrb[63].mxu1  ;;  %v7184_v21 = vpop.eup %5585  ;;  %v7191_v63 = vadd.f32 %v2396_v43, %v8208_v20  ;;  %5587 = vrcp.f32 %v1522_v16  ;;  %v2746_v5 = vadd.f32 %v2745_v9, %v2744_v27  ;;  %v7200_v41 = vadd.f32 %v2493_v19, %v8206_v50 }
 0x1b9   : > { %v2751_v36 = vadd.f32 %v7171_v60, %v2750_v22  ;;  %v2753_v40 = vsel %vm1279_vm0, %v7184_v21, 0.0  ;;  %v1534_v46 = vrot.slane %v1533_v57, 4  ;;  %v2578_v3 = vmax.f32 %v2577_v15, %v7188_v54  ;;  %v2400_v15 = vpop.f32.mrb[64].mxu0 }
 0x1ba   : > { %8209 = vst [vmem:[#allocation15_spill] sm:$0xff] %v7191_v63  ;;  %v2590_v18 = vmax.f32 %v2589_v14, %v7191_v63  ;;  %v2747_v48 = vrot.slane %v2746_v5, 1  ;;  %v7203_v16 = vadd.f32 %v2495_v8, %v8206_v50  ;;  %v7206_v22 = vadd.f32 %v2497_v53, %v8208_v20  ;;  %v2503_v43 = vpop.f32.mrb[64].mxu1  ;;  %v8213_v53 = vld [vmem:[#allocation6_spill] sm:$0xff] }
 0x1bb   : > { %v2752_v6 = vadd.f32 %v7180_v56, %v2751_v36  ;;  %v1535_v27 = vadd.f32 %v1534_v46, %v1533_v57  ;;  %v7209_v9 = vadd.f32 %v2499_v13, %v8208_v20  ;;  %v2601_v7 = vmax.f32 %v2600_v34, %v7200_v41  ;;  %v2402_v36 = vpop.f32.mrb[65].mxu0  ;;  %v2505_v63 = vpop.f32.mrb[65].mxu1 }
 0x1bc   : > { %8210 = vst [vmem:[#allocation16_spill] sm:$0xff] %v7203_v16  ;;  %8211 = vst [vmem:[#allocation19_spill] sm:$0xff] %v7206_v22  ;;  %v2748_v14 = vadd.f32 %v2747_v48, %v2746_v5  ;;  %v2615_v19 = vsel %vm1336_vm1, %v7203_v16, -inf  ;;  %v7217_v46 = vadd.f32 %v2400_v15, %v8213_v53  ;;  %v2404_v13 = vpop.f32.mrb[66].mxu0  ;;  %v2507_v20 = vpop.f32.mrb[66].mxu1  ;;  %v7221_v34 = vadd.f32 %v2503_v43, %v8213_v53 }
 0x1bd   : > { %8212 = vst [vmem:[#allocation20_spill] sm:$0xff] %v7209_v9  ;;  %v2754_v0 = vadd.f32 %v2753_v40, %v2752_v6  ;;  %v1536_v8 = vrot.slane %v1535_v27, 2  ;;  %v2616_v50 = vmax.f32 %v2614_v24, %v2615_v19  ;;  %v2617_v57 = vsel %vm1336_vm1, %v7209_v9, -inf  ;;  %v2406_v48 = vpop.f32.mrb[67].mxu0  ;;  %v2509_v6 = vpop.f32.mrb[67].mxu1 }
 0x1be   : > { %5589 = vrcp.f32 %v2748_v14  ;;  %v2602_v40 = vmax.f32 %v2601_v7, %v7206_v22  ;;  %v2579_v24 = vmax.f32 %v2578_v3, %v7217_v46  ;;  %v7225_v19 = vadd.f32 %v2402_v36, %v8213_v53 }
 0x1bf   : > { %v2755_v5 = vrot.slane %v2754_v0, 4  ;;  %v1537_v16 = vadd.f32 %v1536_v8, %v1535_v27  ;;  %v2618_v55 = vmax.f32 %v2616_v50, %v2617_v57  ;;  %v7229_v14 = vadd.f32 %v2505_v63, %v8213_v53 }
 0x1c0   : > { %8214 = vst [vmem:[#allocation21_spill] sm:$0xff] %v7225_v19  ;;  %v2603_v9 = vmax.f32 %v2602_v40, %v7221_v34  ;;  %v7232_v7 = vadd.f32 %v2404_v13, %v8216_v62  ;;  %v2591_v22 = vmax.f32 %v2590_v18, %v7225_v19  ;;  %v7236_v27 = vadd.f32 %v2507_v20, %v8216_v62 }
 0x1c1   : > { %v2756_v15 = vadd.f32 %v2755_v5, %v2754_v0  ;;  %8215 = vst [vmem:[#allocation22_spill] sm:$0xff] %v7229_v14  ;;  %v1538_v43 = vrot.slane %v1537_v16, 1  ;;  %v7239_v3 = vadd.f32 %v2406_v48, %v8216_v62  ;;  %v2619_v0 = vsel %vm1336_vm1, %v7229_v14, -inf  ;;  %v2410_v5 = vpop.f32.mrb[68].mxu0 }
 0x1c2   : > { %v5588_v50 = vpop.eup %5587  ;;  %v2580_v63 = vsel %vm1279_vm0, %v7232_v7, -inf  ;;  %v7246_v8 = vadd.f32 %v2509_v6, %v8216_v62  ;;  %v2513_v40 = vpop.f32.mrb[68].mxu1 }
 0x1c3   : > { %v2757_v36 = vrot.slane %v2756_v15, 2  ;;  %v1550_v20 = vmul.f32 %v5588_v50, %v7027_v38  ;;  %v1556_v18 = vmul.f32 %v5588_v50, %v7029_v35  ;;  %v1562_v57 = vmul.f32 %v5588_v50, %v7031_v29  ;;  %v2412_v62 = vpop.f32.mrb[69].mxu0  ;;  %v7254_v19 = vpop.f32.mrb[69].mxu1 }
 0x1c4   : > { %v1568_v13 = vmul.f32 %v5588_v50, %v7039_v39  ;;  %v1574_v48 = vmul.f32 %v5588_v50, %v7047_v49  ;;  %v1580_v53 = vmul.f32 %v5588_v50, %v7052_v61  ;;  %v1539_v14 = vadd.f32 %v1538_v43, %v1537_v16  ;;  %v2414_v49 = vpop.f32.mrb[70].mxu0  ;;  %v2517_v61 = vpop.f32.mrb[70].mxu1 }
 0x1c5   : > { %v2758_v6 = vadd.f32 %v2757_v36, %v2756_v15  ;;  %1586 = vst [vmem:[%s6863_s25 + $0x20] sm:$0xff] %v1550_v20  ;;  %1592 = vst [vmem:[%s6863_s25 + $0x50] sm:$0xff] %v1556_v18  ;;  %v2620_v38 = vmax.f32 %v2618_v55, %v2619_v0  ;;  %v2581_v35 = vmax.f32 %v2579_v24, %v2580_v63  ;;  %v2604_v29 = vsel %vm1279_vm0, %v7236_v27, -inf  ;;  %v2416_v50 = vpop.f32.mrb[71].mxu0  ;;  %v7266_v36 = vpop.f32.mrb[71].mxu1 }
 0x1c6   : > { %1598 = vst [vmem:[%s6863_s25 + $0x80] sm:$0xff] %v1562_v57  ;;  %1604 = vst [vmem:[%s6863_s25 + $0xb0] sm:$0xff] %v1568_v13  ;;  %v2592_v39 = vsel %vm1279_vm0, %v7239_v3, -inf  ;;  %5591 = vrcp.f32 %v1539_v14  ;;  %v2605_v15 = vmax.f32 %v2603_v9, %v2604_v29  ;;  %v2621_v24 = vsel %vm1346_vm2, %v7246_v8, -inf }
 0x1c7   : > { %1610 = vst [vmem:[%s6863_s25 + $0xe0] sm:$0xff] %v1574_v48  ;;  %1616 = vst [vmem:[%s6863_s25 + $0x110] sm:$0xf] %v1580_v53  ;;  %v2759_v16 = vrot.slane %v2758_v6, 1  ;;  %v2593_v43 = vmax.f32 %v2591_v22, %v2592_v39  ;;  %v2582_v55 = vrot.slane %v2581_v35, 4  ;;  %v2411_v0 = vadd.f32 %v2410_v5, %v8190_v4 }
 0x1c8   : > { %v2413_v63 = vadd.f32 %v2412_v62, %v8190_v4  ;;  %v5590_v20 = vpop.eup %5589  ;;  %v2606_v9 = vrot.slane %v2605_v15, 4  ;;  %v2622_v14 = vmax.f32 %v2620_v38, %v2621_v24 }
 0x1c9   : > { %v2760_v53 = vadd.f32 %v2759_v16, %v2758_v6  ;;  %v2594_v22 = vrot.slane %v2593_v43, 4  ;;  %v2820_v18 = vmul.f32 %v5590_v20, %v7054_v33  ;;  %v2826_v57 = vmul.f32 %v5590_v20, %v7059_v47  ;;  %4660 = vst [vmem:[%s6483_s10 + $0x190] sm:$0xff] %v2411_v0  ;;  %v2420_v38 = vpop.f32.mrb[72].mxu0 }
 0x1ca   : > { %v2832_v13 = vmul.f32 %v5590_v20, %v7063_v59  ;;  %v2838_v48 = vmul.f32 %v5590_v20, %v7070_v31  ;;  %4661 = vst [vmem:[%s6483_s10 + $0x198] sm:$0xff] %v2413_v63  ;;  %v2844_v62 = vmul.f32 %v5590_v20, %v7081_v37  ;;  %v2850_v5 = vmul.f32 %v5590_v20, %v7087_v51  ;;  %v2523_v29 = vpop.f32.mrb[72].mxu1  ;;  %v2422_v39 = vpop.f32.mrb[73].mxu0 }
 0x1cb   : > { %5593 = vrcp.f32 %v2760_v53  ;;  %v2583_v6 = vmax.f32 %v2581_v35, %v2582_v55  ;;  %4622 = vst [vmem:[%s6863_s25 + $0x120] sm:$0xff] %v2820_v18  ;;  %4628 = vst [vmem:[%s6863_s25 + $0x150] sm:$0xff] %v2826_v57  ;;  %v2607_v33 = vmax.f32 %v2605_v15, %v2606_v9  ;;  %v2595_v47 = vmax.f32 %v2593_v43, %v2594_v22  ;;  %v2525_v15 = vpop.f32.mrb[73].mxu1  ;;  %v2424_v0 = vpop.f32.mrb[74].mxu0 }
 0x1cc   : > { %4634 = vst [vmem:[%s6863_s25 + $0x180] sm:$0xff] %v2832_v13  ;;  %4640 = vst [vmem:[%s6863_s25 + $0x1b0] sm:$0xff] %v2838_v48  ;;  %v2623_v59 = vrot.slane %v2622_v14, 4  ;;  %v2415_v31 = vadd.f32 %v2414_v49, %v6478_v12  ;;  %v2417_v51 = vadd.f32 %v2416_v50, %v6478_v12  ;;  %v2421_v35 = vadd.f32 %v2420_v38, %v6515_v10  ;;  %v2527_v63 = vpop.f32.mrb[74].mxu1  ;;  %v2426_v53 = vpop.f32.mrb[75].mxu0 }
 0x1cd   : > { %4646 = vst [vmem:[%s6863_s25 + $0x1e0] sm:$0xff] %v2844_v62  ;;  %4652 = vst [vmem:[%s6863_s25 + $0x210] sm:$0xf] %v2850_v5  ;;  %v2584_v37 = vrot.slane %v2583_v6, 2  ;;  %v2514_v16 = vadd.f32 %v2513_v40, %v8190_v4  ;;  %v2608_v43 = vrot.slane %v2607_v33, 2  ;;  %v2596_v55 = vrot.slane %v2595_v47, 2 }
 0x1ce   : > { %v2624_v24 = vmax.f32 %v2622_v14, %v2623_v59  ;;  %4666 = vst [vmem:[%s6483_s10 + $0x1c0] sm:$0xff] %v2415_v31  ;;  %v2423_v49 = vadd.f32 %v2422_v39, %v6515_v10  ;;  %4667 = vst [vmem:[%s6483_s10 + $0x1c8] sm:$0xff] %v2417_v51  ;;  %v2425_v50 = vadd.f32 %v2424_v0, %v6519_v25  ;;  %v2529_v22 = vpop.f32.mrb[75].mxu1 }
 0x1cf   : > { %v2585_v20 = vmax.f32 %v2583_v6, %v2584_v37  ;;  %4672 = vst [vmem:[%s6483_s10 + $0x1f0] sm:$0xff] %v2421_v35  ;;  %4662 = vst [vmem:[%s6483_s10 + $0x1a0] sm:$0xff] %v2514_v16  ;;  %v2516_v40 = vadd.f32 %v7254_v19, %v8190_v4  ;;  %v2518_v9 = vadd.f32 %v2517_v61, %v6478_v12 }
 0x1d0   : > { %v7299_v14 = vmax.f32 %v2607_v33, %v2608_v43  ;;  %v7301_v18 = vmax.f32 %v2595_v47, %v2596_v55  ;;  %v2625_v57 = vrot.slane %v2624_v24, 2  ;;  %4673 = vst [vmem:[%s6483_s10 + $0x1f8] sm:$0xff] %v2423_v49  ;;  %v2427_v13 = vadd.f32 %v2426_v53, %v6519_v25  ;;  %v5592_v48 = vpop.eup %5591  ;;  %4678 = vst [vmem:[%s6483_s10 + $0x220] sm:$0xff] %v2425_v50 }
 0x1d1   : > { %v2586_v62 = vrot.slane %v2585_v20, 1  ;;  %4663 = vst.msk [vmem:[%s6483_s10 + $0x1a8] sm:$0xff] %vm1336_vm1, %v2516_v40  ;;  %4668 = vst [vmem:[%s6483_s10 + $0x1d0] sm:$0xff] %v2518_v9  ;;  %v2520_v19 = vadd.f32 %v7266_v36, %v6478_v12  ;;  %v2524_v61 = vadd.f32 %v2523_v29, %v6515_v10  ;;  %v2526_v5 = vadd.f32 %v2525_v15, %v6515_v10 }
 0x1d2   : > { %v1551_v6 = vmul.f32 %v5592_v48, %v7098_v52  ;;  %v1557_v33 = vmul.f32 %v5592_v48, %v7102_v32  ;;  %v1563_v47 = vmul.f32 %v5592_v48, %v7114_v30  ;;  %v1569_v59 = vmul.f32 %v5592_v48, %v7122_v26  ;;  %4679 = vst [vmem:[%s6483_s10 + $0x228] sm:$0xff] %v2427_v13  ;;  %v7337_v30 = vpop.f32.mrb[76].mxu0 }
 0x1d3   : > { %v1575_v31 = vmul.f32 %v5592_v48, %v7132_v17  ;;  %v1581_v36 = vmul.f32 %v5592_v48, %v7139_v1  ;;  %v2587_v38 = vmax.f32 %v2585_v20, %v2586_v62  ;;  %v2610_v29 = vrot.slane %v7299_v14, 1  ;;  %4669 = vst.msk [vmem:[%s6483_s10 + $0x1d8] sm:$0xff] %vm1336_vm1, %v2520_v19  ;;  %4674 = vst [vmem:[%s6483_s10 + $0x200] sm:$0xff] %v2524_v61  ;;  %v7341_v1 = vpop.f32.mrb[76].mxu1  ;;  %v7351_v15 = vpop.f32.mrb[77].mxu0 }
 0x1d4   : > { %4675 = vst.msk [vmem:[%s6483_s10 + $0x208] sm:$0xff] %vm1336_vm1, %v2526_v5  ;;  %1587 = vst.msk [vmem:[%s6863_s25 + $0x28] sm:$0xff] %vm1336_vm1, %v1551_v6  ;;  %v2598_v52 = vrot.slane %v7301_v18, 1  ;;  %v7335_v32 = vmax.f32 %v2624_v24, %v2625_v57  ;;  %v2528_v26 = vadd.f32 %v2527_v63, %v6519_v25  ;;  %v2530_v17 = vadd.f32 %v2529_v22, %v6519_v25  ;;  %v7353_v43 = vpop.f32.mrb[77].mxu1  ;;  %v7359_v49 = vpop.f32.mrb[78].mxu0  ;;  %v8217_v57 = vld [vmem:[#allocation19_spill] sm:$0xff] }
 0x1d5   : > { %1593 = vst.msk [vmem:[%s6863_s25 + $0x58] sm:$0xff] %vm1336_vm1, %v1557_v33  ;;  %1599 = vst.msk [vmem:[%s6863_s25 + $0x88] sm:$0xff] %vm1336_vm1, %v1563_v47  ;;  %v5594_v37 = vpop.eup %5593  ;;  %v2631_v51 = vsub.f32 %v7109_v23, %v2587_v38  ;;  %v2637_v35 = vsub.f32 %v7120_v2, %v2587_v38  ;;  %v2643_v39 = vsub.f32 %v7169_v28, %v2587_v38  ;;  %v8219_v33 = vld [vmem:[#allocation13_spill] sm:$0xff]  ;;  %v8220_v47 = vld [vmem:[#allocation18_spill] sm:$0xff] }
 0x1d6   : > { %1605 = vst.msk [vmem:[%s6863_s25 + $0xb8] sm:$0xff] %vm1336_vm1, %v1569_v59  ;;  %1611 = vst.msk [vmem:[%s6863_s25 + $0xe8] sm:$0xff] %vm1336_vm1, %v1575_v31  ;;  %v2649_v16 = vsub.f32 %v7188_v54, %v2587_v38  ;;  %v2821_v55 = vmul.f32 %v5594_v37, %v7148_v45  ;;  %v2827_v24 = vmul.f32 %v5594_v37, %v7155_v58  ;;  %v7364_v54 = vpop.f32.mrb[78].mxu1 }
 0x1d7   : > { %1617 = vst.msk [vmem:[%s6863_s25 + $0x118] sm:$0xf] %vm1346_vm2, %v1581_v36  ;;  %v2833_v23 = vmul.f32 %v5594_v37, %v7164_v11  ;;  %v2839_v2 = vmul.f32 %v5594_v37, %v7171_v60  ;;  %4680 = vst [vmem:[%s6483_s10 + $0x230] sm:$0xff] %v2528_v26  ;;  %v2845_v28 = vmul.f32 %v5594_v37, %v7180_v56  ;;  %v2436_v11 = vpop.f32.mrb[79].mxu0  ;;  %v7370_v63 = vpop.f32.mrb[79].mxu1 }
 0x1d8   : > { %4681 = vst.msk [vmem:[%s6483_s10 + $0x238] sm:$0xff] %vm1336_vm1, %v2530_v17  ;;  %v2851_v45 = vmul.f32 %v5594_v37, %v7184_v21  ;;  %v2655_v58 = vsub.f32 %v7217_v46, %v2587_v38  ;;  %v2661_v0 = vsub.f32 %v7232_v7, %v2587_v38  ;;  %4623 = vst [vmem:[%s6863_s25 + $0x128] sm:$0xff] %v2821_v55  ;;  %v2669_v60 = vmul.f32 1.442695, %v2631_v51  ;;  %v8222_v38 = vld [vmem:[#allocation21_spill] sm:$0xff] }
 0x1d9   : > { %4629 = vst [vmem:[%s6863_s25 + $0x158] sm:$0xff] %v2827_v24  ;;  %4635 = vst [vmem:[%s6863_s25 + $0x188] sm:$0xff] %v2833_v23  ;;  %v2681_v20 = vmul.f32 1.442695, %v2637_v35  ;;  %v2693_v50 = vmul.f32 1.442695, %v2643_v39  ;;  %v2611_v53 = vmax.f32 %v7299_v14, %v2610_v29  ;;  %v2599_v46 = vmax.f32 %v7301_v18, %v2598_v52 }
 0x1da   : > { %4641 = vst [vmem:[%s6863_s25 + $0x1b8] sm:$0xff] %v2839_v2  ;;  %4647 = vst [vmem:[%s6863_s25 + $0x1e8] sm:$0xff] %v2845_v28  ;;  %v2705_v56 = vmul.f32 1.442695, %v2649_v16  ;;  %v2717_v21 = vmul.f32 1.442695, %v2655_v58  ;;  %5595 = vpow2.f32 %v2669_v60 }
 0x1db   : > { %4653 = vst [vmem:[%s6863_s25 + $0x218] sm:$0xf] %v2851_v45  ;;  %v2729_v40 = vmul.f32 1.442695, %v2661_v0  ;;  %v2633_v7 = vsub.f32 %v7137_v44, %v2611_v53  ;;  %v2639_v9 = vsub.f32 %v7153_v42, %v2611_v53  ;;  %v2645_v22 = vsub.f32 %v7200_v41, %v2611_v53  ;;  %v8218_v44 = vld [vmem:[#allocation8_spill] sm:$0xff]  ;;  %v2440_v31 = vpop.f32.mrb[80].mxu0 }
 0x1dc   : > { %5597 = vpow2.f32 %v2681_v20  ;;  %v2651_v13 = vsub.f32 %v8217_v57, %v2611_v53  ;;  %v2657_v48 = vsub.f32 %v7221_v34, %v2611_v53  ;;  %v2663_v14 = vsub.f32 %v7236_v27, %v2611_v53  ;;  %v7389_v36 = vpop.f32.mrb[80].mxu1  ;;  %v8221_v34 = vld [vmem:[#allocation15_spill] sm:$0xff]  ;;  %v2442_v26 = vpop.f32.mrb[81].mxu0  ;;  %v8223_v23 = vld [vmem:[#allocation10_spill] sm:$0xff]  ;;  %v8224_v58 = vld [vmem:[#allocation9_spill] sm:$0xff] }
 0x1dd   : > { %5599 = vpow2.f32 %v2693_v50  ;;  %v2673_v62 = vmul.f32 1.442695, %v2633_v7  ;;  %v2685_v19 = vmul.f32 1.442695, %v2639_v9  ;;  %v2697_v61 = vmul.f32 1.442695, %v2645_v22 }
 0x1de   : > { %5601 = vpow2.f32 %v2705_v56  ;;  %v2709_v18 = vmul.f32 1.442695, %v2651_v13  ;;  %v2721_v5 = vmul.f32 1.442695, %v2657_v48  ;;  %v2733_v6 = vmul.f32 1.442695, %v2663_v14 }
 0x1df   : > { %5603 = vpow2.f32 %v2717_v21  ;;  %v2632_v42 = vsub.f32 %v8218_v44, %v2599_v46  ;;  %v2638_v41 = vsub.f32 %v8219_v33, %v2599_v46  ;;  %v2644_v59 = vsub.f32 %v8220_v47, %v2599_v46  ;;  %v7394_v17 = vpop.f32.mrb[81].mxu1  ;;  %v2444_v28 = vpop.f32.mrb[82].mxu0  ;;  %v8225_v20 = vld [vmem:[#allocation12_spill] sm:$0xff]  ;;  %v8227_v57 = vld [vmem:[#allocation14_spill] sm:$0xff]  ;;  %v8228_v48 = vld [vmem:[#allocation17_spill] sm:$0xff] }
 0x1e0   : > { %5605 = vpow2.f32 %v2729_v40  ;;  %v2650_v27 = vsub.f32 %v8221_v34, %v2599_v46  ;;  %v2656_v29 = vsub.f32 %v8222_v38, %v2599_v46  ;;  %v2662_v52 = vsub.f32 %v7239_v3, %v2599_v46  ;;  %v7401_v45 = vpop.f32.mrb[82].mxu1  ;;  %v2446_v53 = vpop.f32.mrb[83].mxu0  ;;  %v8226_v40 = vld [vmem:[#allocation11_spill] sm:$0xff] }
 0x1e1   : > { %5607 = vpow2.f32 %v2673_v62  ;;  %v2671_v37 = vmul.f32 1.442695, %v2632_v42  ;;  %v2683_v51 = vmul.f32 1.442695, %v2638_v41  ;;  %v2695_v35 = vmul.f32 1.442695, %v2644_v59 }
 0x1e2   : > { %5609 = vpow2.f32 %v2685_v19  ;;  %v2707_v39 = vmul.f32 1.442695, %v2650_v27  ;;  %v2719_v16 = vmul.f32 1.442695, %v2656_v29  ;;  %v2731_v55 = vmul.f32 1.442695, %v2662_v52 }
 0x1e3   : > { %5611 = vpow2.f32 %v2697_v61  ;;  %v2627_v24 = vrot.slane %v7335_v32, 1  ;;  %v2431_v2 = vadd.f32 %v7337_v30, %v8223_v23  ;;  %v2433_v3 = vadd.f32 %v7351_v15, %v8223_v23  ;;  %v7407_v56 = vpop.f32.mrb[83].mxu1  ;;  %v8230_v61 = vld [vmem:[#allocation20_spill] sm:$0xff] }
 0x1e4   : > { %5613 = vpow2.f32 %v2709_v18  ;;  %v2435_v0 = vadd.f32 %v7359_v49, %v8224_v58  ;;  %v2437_v60 = vadd.f32 %v2436_v11, %v8224_v58  ;;  %v2441_v50 = vadd.f32 %v2440_v31, %v8225_v20  ;;  %v7409_v30 = vpop.eup %5595 }
 0x1e5   : > { %5615 = vpow2.f32 %v2721_v5  ;;  %v2628_v15 = vmax.f32 %v7335_v32, %v2627_v24  ;;  %4684 = vst [vmem:[%s6483_s10 + $0x250] sm:$0xff] %v2431_v2  ;;  %4685 = vst [vmem:[%s6483_s10 + $0x258] sm:$0xff] %v2433_v3  ;;  %v2443_v21 = vadd.f32 %v2442_v26, %v8225_v20  ;;  %v2445_v49 = vadd.f32 %v2444_v28, %v8226_v40 }
 0x1e6   : > { %v7416_v46 = vpop.eup %5597  ;;  %5617 = vpow2.f32 %v2733_v6  ;;  %4690 = vst [vmem:[%s6483_s10 + $0x280] sm:$0xff] %v2435_v0  ;;  %4691 = vst [vmem:[%s6483_s10 + $0x288] sm:$0xff] %v2437_v60  ;;  %v2447_v11 = vadd.f32 %v2446_v53, %v8226_v40  ;;  %v2534_v32 = vadd.f32 %v7341_v1, %v8223_v23  ;;  %v2536_v7 = vadd.f32 %v7353_v43, %v8223_v23  ;;  %v8229_v1 = vld [vmem:[#allocation16_spill] sm:$0xff]  ;;  %v8231_v43 = vld [vmem:[#allocation22_spill] sm:$0xff] }
 0x1e7   : > { %4696 = vst [vmem:[%s6483_s10 + $0x2b0] sm:$0xff] %v2441_v50  ;;  %v7426_v9 = vpop.eup %5599  ;;  %v2761_v22 = vadd.f32 %v7416_v46, %v7409_v30  ;;  %5619 = vpow2.f32 %v2671_v37  ;;  %v2634_v13 = vsub.f32 %v8227_v57, %v2628_v15  ;;  %v2640_v14 = vsub.f32 %v8228_v48, %v2628_v15  ;;  %4697 = vst [vmem:[%s6483_s10 + $0x2b8] sm:$0xff] %v2443_v21 }
 0x1e8   : > { %4702 = vst [vmem:[%s6483_s10 + $0x2e0] sm:$0xff] %v2445_v49  ;;  %v7434_v62 = vpop.eup %5601  ;;  %5621 = vpow2.f32 %v2683_v51  ;;  %v2646_v19 = vsub.f32 %v8229_v1, %v2628_v15  ;;  %v2652_v18 = vsub.f32 %v8230_v61, %v2628_v15  ;;  %v2658_v5 = vsub.f32 %v8231_v43, %v2628_v15  ;;  %4703 = vst [vmem:[%s6483_s10 + $0x2e8] sm:$0xff] %v2447_v11 }
 0x1e9   : > { %4686 = vst [vmem:[%s6483_s10 + $0x260] sm:$0xff] %v2534_v32  ;;  %4687 = vst.msk [vmem:[%s6483_s10 + $0x268] sm:$0xff] %vm1336_vm1, %v2536_v7  ;;  %v7443_v6 = vpop.eup %5603  ;;  %v2762_v44 = vadd.f32 %v7426_v9, %v2761_v22  ;;  %5623 = vpow2.f32 %v2695_v35  ;;  %v2664_v42 = vsub.f32 %v7246_v8, %v2628_v15  ;;  %v2675_v33 = vmul.f32 1.442695, %v2634_v13 }
 0x1ea   : > { %v7447_v41 = vpop.eup %5605  ;;  %5625 = vpow2.f32 %v2707_v39  ;;  %v2687_v47 = vmul.f32 1.442695, %v2640_v14  ;;  %v2699_v59 = vmul.f32 1.442695, %v2646_v19  ;;  %v2711_v31 = vmul.f32 1.442695, %v2652_v18 }
 0x1eb   : > { %v7449_v34 = vpop.eup %5607  ;;  %v2763_v27 = vadd.f32 %v7434_v62, %v2762_v44  ;;  %v2765_v38 = vsel %vm1279_vm0, %v7447_v41, 0.0  ;;  %5627 = vpow2.f32 %v2719_v16  ;;  %v2723_v29 = vmul.f32 1.442695, %v2658_v5  ;;  %v3553_v16 = vpop.f32.mrb[84].mxu0 }
 0x1ec   : > { %v7454_v52 = vpop.eup %5609  ;;  %5629 = vpow2.f32 %v2731_v55  ;;  %v2735_v8 = vmul.f32 1.442695, %v2664_v42  ;;  %v2538_v26 = vadd.f32 %v7364_v54, %v8224_v58  ;;  %v2540_v37 = vadd.f32 %v7370_v63, %v8224_v58  ;;  %v3656_v24 = vpop.f32.mrb[84].mxu1  ;;  %v8232_v54 = vld [vmem:[#allocation2_spill] sm:$0xff] }
 0x1ed   : > { %v7460_v51 = vpop.eup %5611  ;;  %v2764_v35 = vadd.f32 %v7443_v6, %v2763_v27  ;;  %v2785_v39 = vadd.f32 %v7454_v52, %v7449_v34  ;;  %5631 = vpow2.f32 %v2675_v33  ;;  %v2544_v55 = vadd.f32 %v7389_v36, %v8225_v20  ;;  %v3555_v63 = vpop.f32.mrb[85].mxu0 }
 0x1ee   : > { %v7467_v2 = vpop.eup %5613  ;;  %5633 = vpow2.f32 %v2687_v47  ;;  %v7470_v3 = vadd.f32 %v3553_v16, %v8232_v54  ;;  %4692 = vst [vmem:[%s6483_s10 + $0x290] sm:$0xff] %v2538_v26  ;;  %4693 = vst.msk [vmem:[%s6483_s10 + $0x298] sm:$0xff] %vm1336_vm1, %v2540_v37  ;;  %v2546_v28 = vadd.f32 %v7394_v17, %v8225_v20  ;;  %v2548_v36 = vadd.f32 %v7401_v45, %v8226_v40  ;;  %v3658_v0 = vpop.f32.mrb[85].mxu1  ;;  %v8234_v17 = vld [vmem:[#allocation3_spill] sm:$0xff]  ;;  %v8238_v16 = vld [vmem:[#allocation4_spill] sm:$0xff] }
 0x1ef   : > { %v7479_v60 = vpop.eup %5615  ;;  %v2766_v50 = vadd.f32 %v2765_v38, %v2764_v35  ;;  %v2786_v53 = vadd.f32 %v7460_v51, %v2785_v39  ;;  %5635 = vpow2.f32 %v2699_v59  ;;  %v7483_v15 = vadd.f32 %v3555_v63, %v8232_v54  ;;  %v3557_v21 = vpop.f32.mrb[86].mxu0  ;;  %4698 = vst [vmem:[%s6483_s10 + $0x2c0] sm:$0xff] %v2544_v55 }
 0x1f0   : > { %v3660_v49 = vpop.f32.mrb[86].mxu1  ;;  %v7486_v11 = vpop.eup %5617  ;;  %5637 = vpow2.f32 %v2711_v31  ;;  %v7489_v32 = vadd.f32 %v3557_v21, %v8234_v17  ;;  %4699 = vst.msk [vmem:[%s6483_s10 + $0x2c8] sm:$0xff] %vm1336_vm1, %v2546_v28  ;;  %4704 = vst [vmem:[%s6483_s10 + $0x2f0] sm:$0xff] %v2548_v36  ;;  %v2550_v7 = vadd.f32 %v7407_v56, %v8226_v40  ;;  %v7497_v22 = vadd.f32 %v3656_v24, %v8232_v54 }
 0x1f1   : > { %8233 = vst [vmem:[#allocation19_spill] sm:$0xff] %v7483_v15  ;;  %v3559_v45 = vpop.f32.mrb[87].mxu0  ;;  %v3662_v57 = vpop.f32.mrb[87].mxu1  ;;  %v2767_v48 = vrot.slane %v2766_v50, 4  ;;  %v2787_v14 = vadd.f32 %v7467_v2, %v2786_v53  ;;  %v2789_v1 = vsel %vm1279_vm0, %v7486_v11, 0.0  ;;  %5639 = vpow2.f32 %v2723_v29 }
 0x1f2   : > { %v7499_v13 = vpop.eup %5619  ;;  %5641 = vpow2.f32 %v2735_v8  ;;  %v3828_v61 = vmax.f32 %v7470_v3, %v7489_v32  ;;  %v7509_v56 = vadd.f32 %v3559_v45, %v8234_v17  ;;  %4705 = vst.msk [vmem:[%s6483_s10 + $0x2f8] sm:$0xff] %vm1336_vm1, %v2550_v7  ;;  %v7514_v18 = vadd.f32 %v3658_v0, %v8232_v54  ;;  %v3563_v26 = vpop.f32.mrb[88].mxu0 }
 0x1f3   : > { %v7504_v19 = vpop.eup %5621  ;;  %v2768_v5 = vadd.f32 %v2767_v48, %v2766_v50  ;;  %v2788_v44 = vadd.f32 %v7479_v60, %v2787_v14  ;;  %v7522_v33 = vadd.f32 %v3660_v49, %v8234_v17  ;;  %v7529_v31 = vadd.f32 %v3662_v57, %v8234_v17  ;;  %v3666_v35 = vpop.f32.mrb[88].mxu1 }
 0x1f4   : > { %8235 = vst [vmem:[#allocation8_spill] sm:$0xff] %v7509_v56  ;;  %8236 = vst [vmem:[#allocation13_spill] sm:$0xff] %v7514_v18  ;;  %v7516_v43 = vpop.eup %5623  ;;  %v2773_v42 = vadd.f32 %v7504_v19, %v7499_v13  ;;  %v3840_v59 = vmax.f32 %v7483_v15, %v7509_v56  ;;  %v7539_v55 = vadd.f32 %v3563_v26, %v8238_v16  ;;  %v3565_v24 = vpop.f32.mrb[89].mxu0 }
 0x1f5   : > { %v7524_v47 = vpop.eup %5625  ;;  %8237 = vst [vmem:[#allocation18_spill] sm:$0xff] %v7529_v31  ;;  %v2769_v38 = vrot.slane %v2768_v5, 2  ;;  %v2790_v29 = vadd.f32 %v2789_v1, %v2788_v44  ;;  %v3852_v37 = vmax.f32 %v7497_v22, %v7522_v33  ;;  %v3864_v63 = vmax.f32 %v7514_v18, %v7529_v31  ;;  %v3668_v36 = vpop.f32.mrb[89].mxu1  ;;  %v8240_v44 = vld [vmem:[#allocation5_spill] sm:$0xff] }
 0x1f6   : > { %v7531_v27 = vpop.eup %5627  ;;  %v2774_v8 = vadd.f32 %v7516_v43, %v2773_v42  ;;  %v7544_v28 = vadd.f32 %v3666_v35, %v8238_v16  ;;  %v3567_v45 = vpop.f32.mrb[90].mxu0  ;;  %v3829_v14 = vmax.f32 %v3828_v61, %v7539_v55  ;;  %v7557_v1 = vadd.f32 %v3565_v24, %v8238_v16 }
 0x1f7   : > { %v7536_v39 = vpop.eup %5629  ;;  %v2770_v50 = vadd.f32 %v2769_v38, %v2768_v5  ;;  %v2791_v53 = vrot.slane %v2790_v29, 4  ;;  %v3670_v7 = vpop.f32.mrb[90].mxu1  ;;  %v7560_v5 = vadd.f32 %v3567_v45, %v8240_v44 }
 0x1f8   : > { %v7546_v0 = vpop.eup %5631  ;;  %v2775_v21 = vadd.f32 %v7524_v47, %v2774_v8  ;;  %v2777_v49 = vsel %vm1279_vm0, %v7536_v39, 0.0  ;;  %8239 = vst [vmem:[#allocation15_spill] sm:$0xff] %v7557_v1  ;;  %v3569_v42 = vpop.f32.mrb[91].mxu0  ;;  %v3841_v45 = vmax.f32 %v3840_v59, %v7557_v1  ;;  %v3853_v59 = vmax.f32 %v3852_v37, %v7544_v28 }
 0x1f9   : > { %v7551_v57 = vpop.eup %5633  ;;  %v2797_v48 = vsel %vm1336_vm1, %v7546_v0, 0.0  ;;  %v3672_v38 = vpop.f32.mrb[91].mxu1  ;;  %v2771_v26 = vrot.slane %v2770_v50, 1  ;;  %v2792_v35 = vadd.f32 %v2791_v53, %v2790_v29  ;;  %v3830_v18 = vmax.f32 %v3829_v14, %v7560_v5 }
 0x1fa   : > { %v7562_v8 = vpop.eup %5635  ;;  %v2776_v17 = vadd.f32 %v7531_v27, %v2775_v21  ;;  %v2798_v54 = vsel %vm1336_vm1, %v7551_v57, 0.0 }
 0x1fb   : > { %8241 = vst [vmem:[#allocation21_spill] sm:$0xff] %v7562_v8  ;;  %v7567_v31 = vpop.eup %5637  ;;  %v2799_v61 = vadd.f32 %v2798_v54, %v2797_v48  ;;  %v2800_v24 = vsel %vm1336_vm1, %v7562_v8, 0.0  ;;  %v2772_v20 = vadd.f32 %v2771_v26, %v2770_v50  ;;  %v2793_v58 = vrot.slane %v2792_v35, 2  ;;  %v3573_v50 = vpop.f32.mrb[92].mxu0 }
 0x1fc   : > { %8242 = vst [vmem:[#allocation10_spill] sm:$0xff] %v7567_v31  ;;  %v7573_v40 = vpop.eup %5639  ;;  %v2778_v29 = vadd.f32 %v2777_v49, %v2776_v17  ;;  %v2802_v53 = vsel %vm1336_vm1, %v7567_v31, 0.0  ;;  %v7582_v48 = vadd.f32 %v3569_v42, %v8240_v44  ;;  %v3676_v49 = vpop.f32.mrb[92].mxu1 }
 0x1fd   : > { %8243 = vst [vmem:[#allocation14_spill] sm:$0xff] %v7573_v40  ;;  %v7577_v21 = vpop.eup %5641  ;;  %v2801_v56 = vadd.f32 %v2800_v24, %v2799_v61  ;;  %v2804_v54 = vsel %vm1336_vm1, %v7573_v40, 0.0  ;;  %5643 = vrcp.f32 %v2772_v20  ;;  %v2794_v14 = vadd.f32 %v2793_v58, %v2792_v35  ;;  %v3575_v42 = vpop.f32.mrb[93].mxu0  ;;  %v8248_v35 = vld [vmem:[#allocation6_spill] sm:$0xff] }
 0x1fe   : > { %8244 = vst [vmem:[#allocation17_spill] sm:$0xff] %v7577_v21  ;;  %8245 = vst [vmem:[#allocation16_spill] sm:$0xff] %v7582_v48  ;;  %v2779_v1 = vrot.slane %v2778_v29, 4  ;;  %v2806_v17 = vsel %vm1346_vm2, %v7577_v21, 0.0  ;;  %v3842_v15 = vmax.f32 %v3841_v45, %v7582_v48  ;;  %v7589_v61 = vadd.f32 %v3668_v36, %v8238_v16  ;;  %v3678_v40 = vpop.f32.mrb[93].mxu1  ;;  %v3577_v31 = vpop.f32.mrb[94].mxu0 }
 0x1ff   : > { %v2803_v26 = vadd.f32 %v2802_v53, %v2801_v56  ;;  %v7592_v24 = vadd.f32 %v3670_v7, %v8240_v44  ;;  %v2795_v37 = vrot.slane %v2794_v14, 1  ;;  %v7595_v58 = vadd.f32 %v3672_v38, %v8240_v44  ;;  %v3680_v56 = vpop.f32.mrb[94].mxu1  ;;  %v3579_v16 = vpop.f32.mrb[95].mxu0 }
 0x200   : > { %8246 = vst [vmem:[#allocation20_spill] sm:$0xff] %v7589_v61  ;;  %v2780_v20 = vadd.f32 %v2779_v1, %v2778_v29  ;;  %v7598_v21 = vadd.f32 %v3573_v50, %v8248_v35  ;;  %v3865_v45 = vmax.f32 %v3864_v63, %v7589_v61  ;;  %v7603_v7 = vadd.f32 %v3676_v49, %v8248_v35  ;;  %v3682_v48 = vpop.f32.mrb[95].mxu1 }
 0x201   : > { %8247 = vst [vmem:[#allocation22_spill] sm:$0xff] %v7595_v58  ;;  %v2805_v53 = vadd.f32 %v2804_v54, %v2803_v26  ;;  %v3854_v36 = vmax.f32 %v3853_v59, %v7592_v24  ;;  %v2796_v8 = vadd.f32 %v2795_v37, %v2794_v14  ;;  %v7607_v29 = vadd.f32 %v3575_v42, %v8248_v35  ;;  %v8250_v26 = vld [vmem:[#allocation7_spill] sm:$0xff] }
 0x202   : > { %v2781_v1 = vrot.slane %v2780_v20, 2  ;;  %v3831_v38 = vmax.f32 %v3830_v18, %v7598_v21  ;;  %v3866_v44 = vmax.f32 %v3865_v45, %v7595_v58  ;;  %v7612_v63 = vadd.f32 %v3678_v40, %v8248_v35 }
 0x203   : > { %v2807_v50 = vadd.f32 %v2806_v17, %v2805_v53  ;;  %v3855_v54 = vmax.f32 %v3854_v36, %v7603_v7  ;;  %5645 = vrcp.f32 %v2796_v8  ;;  %v3843_v49 = vmax.f32 %v3842_v15, %v7607_v29  ;;  %v3583_v15 = vpop.f32.mrb[96].mxu0 }
 0x204   : > { %8249 = vst [vmem:[#allocation23_spill] sm:$0xff] %v7612_v63  ;;  %v2782_v59 = vadd.f32 %v2781_v1, %v2780_v20  ;;  %v7616_v14 = vadd.f32 %v3577_v31, %v8250_v26  ;;  %v3867_v18 = vmax.f32 %v3866_v44, %v7612_v63  ;;  %v7620_v42 = vadd.f32 %v3680_v56, %v8250_v26  ;;  %v3686_v20 = vpop.f32.mrb[96].mxu1  ;;  %v3585_v36 = vpop.f32.mrb[97].mxu0 }
 0x205   : > { %v2808_v37 = vrot.slane %v2807_v50, 4  ;;  %v7623_v17 = vadd.f32 %v3579_v16, %v8250_v26  ;;  %v7628_v8 = vadd.f32 %v3682_v48, %v8250_v26  ;;  %v3688_v16 = vpop.f32.mrb[97].mxu1 }
 0x206   : > { %v2783_v53 = vrot.slane %v2782_v59, 1  ;;  %v3832_v40 = vsel %vm1279_vm0, %v7616_v14, -inf  ;;  %v3856_v44 = vsel %vm1279_vm0, %v7620_v42, -inf }
 0x207   : > { %8251 = vst [vmem:[#allocation24_spill] sm:$0xff] %v7628_v8  ;;  %v2809_v31 = vadd.f32 %v2808_v37, %v2807_v50  ;;  %v3833_v45 = vmax.f32 %v3831_v38, %v3832_v40  ;;  %v3844_v56 = vsel %vm1279_vm0, %v7623_v17, -inf  ;;  %v5644_v1 = vpop.eup %5643  ;;  %v3857_v63 = vmax.f32 %v3855_v54, %v3856_v44  ;;  %v3587_v38 = vpop.f32.mrb[98].mxu0 }
 0x208   : > { %v2784_v35 = vadd.f32 %v2783_v53, %v2782_v59  ;;  %v3845_v58 = vmax.f32 %v3843_v49, %v3844_v56  ;;  %v3868_v48 = vsel %vm1279_vm0, %v7628_v8, -inf  ;;  %v7636_v50 = vpop.f32.mrb[98].mxu1  ;;  %v2822_v37 = vmul.f32 %v5644_v1, %v7409_v30  ;;  %v3589_v54 = vpop.f32.mrb[99].mxu0 }
 0x209   : > { %v2828_v40 = vmul.f32 %v5644_v1, %v7416_v46  ;;  %v2834_v26 = vmul.f32 %v5644_v1, %v7426_v9  ;;  %v2840_v59 = vmul.f32 %v5644_v1, %v7434_v62  ;;  %v7642_v49 = vpop.f32.mrb[99].mxu1  ;;  %v2846_v53 = vmul.f32 %v5644_v1, %v7443_v6 }
 0x20a   : > { %v2852_v44 = vmul.f32 %v5644_v1, %v7447_v41  ;;  %5647 = vrcp.f32 %v2784_v35  ;;  %v2810_v56 = vrot.slane %v2809_v31, 2  ;;  %4624 = vst [vmem:[%s6863_s25 + $0x130] sm:$0xff] %v2822_v37  ;;  %v3834_v30 = vrot.slane %v3833_v45, 4 }
 0x20b   : > { %4630 = vst [vmem:[%s6863_s25 + $0x160] sm:$0xff] %v2828_v40  ;;  %4636 = vst [vmem:[%s6863_s25 + $0x190] sm:$0xff] %v2834_v26  ;;  %v3858_v46 = vrot.slane %v3857_v63, 4  ;;  %v3846_v9 = vrot.slane %v3845_v58, 4  ;;  %v3869_v62 = vmax.f32 %v3867_v18, %v3868_v48  ;;  %v3584_v6 = vadd.f32 %v3583_v15, %v8190_v4  ;;  %v3593_v48 = vpop.f32.mrb[100].mxu0 }
 0x20c   : > { %4642 = vst [vmem:[%s6863_s25 + $0x1c0] sm:$0xff] %v2840_v59  ;;  %4648 = vst [vmem:[%s6863_s25 + $0x1f0] sm:$0xff] %v2846_v53  ;;  %v2811_v8 = vadd.f32 %v2810_v56, %v2809_v31  ;;  %v3586_v41 = vadd.f32 %v3585_v36, %v8190_v4  ;;  %v3588_v35 = vadd.f32 %v3587_v38, %v6478_v12  ;;  %v3696_v36 = vpop.f32.mrb[100].mxu1 }
 0x20d   : > { %4654 = vst [vmem:[%s6863_s25 + $0x220] sm:$0xf] %v2852_v44  ;;  %v3835_v1 = vmax.f32 %v3833_v45, %v3834_v30  ;;  %v3859_v37 = vmax.f32 %v3857_v63, %v3858_v46  ;;  %v3847_v26 = vmax.f32 %v3845_v58, %v3846_v9  ;;  %v3870_v40 = vrot.slane %v3869_v62, 4  ;;  %v5646_v59 = vpop.eup %5645  ;;  %4934 = vst [vmem:[%s6483_s10 + $0x300] sm:$0xff] %v3584_v6  ;;  %v3698_v53 = vpop.f32.mrb[101].mxu1 }
 0x20e   : > { %v2812_v61 = vrot.slane %v2811_v8, 1  ;;  %4935 = vst [vmem:[%s6483_s10 + $0x308] sm:$0xff] %v3586_v41  ;;  %4940 = vst [vmem:[%s6483_s10 + $0x330] sm:$0xff] %v3588_v35  ;;  %v3590_v18 = vadd.f32 %v3589_v54, %v6478_v12  ;;  %v3687_v15 = vadd.f32 %v3686_v20, %v8190_v4  ;;  %v3689_v31 = vadd.f32 %v3688_v16, %v8190_v4  ;;  %v3595_v54 = vpop.f32.mrb[101].mxu0 }
 0x20f   : > { %v2824_v58 = vmul.f32 %v5646_v59, %v7449_v34  ;;  %v2830_v63 = vmul.f32 %v5646_v59, %v7454_v52  ;;  %v2836_v45 = vmul.f32 %v5646_v59, %v7460_v51  ;;  %v2842_v38 = vmul.f32 %v5646_v59, %v7467_v2  ;;  %v3597_v34 = vpop.f32.mrb[102].mxu0  ;;  %v7670_v52 = vpop.f32.mrb[102].mxu1 }
 0x210   : > { %v2848_v20 = vmul.f32 %v5646_v59, %v7479_v60  ;;  %v2854_v44 = vmul.f32 %v5646_v59, %v7486_v11  ;;  %v2813_v16 = vadd.f32 %v2812_v61, %v2811_v8  ;;  %v3836_v56 = vrot.slane %v3835_v1, 2  ;;  %4941 = vst [vmem:[%s6483_s10 + $0x338] sm:$0xff] %v3590_v18  ;;  %4936 = vst [vmem:[%s6483_s10 + $0x310] sm:$0xff] %v3687_v15  ;;  %v3599_v61 = vpop.f32.mrb[103].mxu0  ;;  %v7677_v8 = vpop.f32.mrb[103].mxu1 }
 0x211   : > { %4937 = vst [vmem:[%s6483_s10 + $0x318] sm:$0xff] %v3689_v31  ;;  %4626 = vst [vmem:[%s6863_s25 + $0x140] sm:$0xff] %v2824_v58  ;;  %v3860_v51 = vrot.slane %v3859_v37, 2  ;;  %v3848_v2 = vrot.slane %v3847_v26, 2  ;;  %v3871_v60 = vmax.f32 %v3869_v62, %v3870_v40  ;;  %v3594_v11 = vadd.f32 %v3593_v48, %v6515_v10 }
 0x212   : > { %4632 = vst [vmem:[%s6863_s25 + $0x170] sm:$0xff] %v2830_v63  ;;  %4638 = vst [vmem:[%s6863_s25 + $0x1a0] sm:$0xff] %v2836_v45  ;;  %5649 = vrcp.f32 %v2813_v16  ;;  %v3837_v30 = vmax.f32 %v3835_v1, %v3836_v56  ;;  %v3596_v46 = vadd.f32 %v3595_v54, %v6515_v10  ;;  %v3598_v9 = vadd.f32 %v3597_v34, %v6519_v25 }
 0x213   : > { %4644 = vst [vmem:[%s6863_s25 + $0x1d0] sm:$0xff] %v2842_v38  ;;  %4650 = vst [vmem:[%s6863_s25 + $0x200] sm:$0xff] %v2848_v20  ;;  %v3861_v6 = vmax.f32 %v3859_v37, %v3860_v51  ;;  %v3849_v41 = vmax.f32 %v3847_v26, %v3848_v2  ;;  %v3872_v35 = vrot.slane %v3871_v60, 2  ;;  %v3600_v62 = vadd.f32 %v3599_v61, %v6519_v25 }
 0x214   : > { %4656 = vst [vmem:[%s6863_s25 + $0x230] sm:$0xf] %v2854_v44  ;;  %4946 = vst [vmem:[%s6483_s10 + $0x360] sm:$0xff] %v3594_v11  ;;  %v5648_v40 = vpop.eup %5647  ;;  %v3838_v59 = vrot.slane %v3837_v30, 1  ;;  %v3691_v1 = vadd.f32 %v7636_v50, %v6478_v12  ;;  %v3693_v18 = vadd.f32 %v7642_v49, %v6478_v12  ;;  %v3697_v37 = vadd.f32 %v3696_v36, %v6515_v10  ;;  %v3603_v36 = vpop.f32.mrb[104].mxu0 }
 0x215   : > { %4947 = vst [vmem:[%s6483_s10 + $0x368] sm:$0xff] %v3596_v46  ;;  %4952 = vst [vmem:[%s6483_s10 + $0x390] sm:$0xff] %v3598_v9  ;;  %v2823_v26 = vmul.f32 %v5648_v40, %v7499_v13  ;;  %v2829_v48 = vmul.f32 %v5648_v40, %v7504_v19  ;;  %v2835_v15 = vmul.f32 %v5648_v40, %v7516_v43  ;;  %v3862_v63 = vrot.slane %v3861_v6, 1  ;;  %v7702_v13 = vpop.f32.mrb[104].mxu1 }
 0x216   : > { %v2841_v31 = vmul.f32 %v5648_v40, %v7524_v47  ;;  %4953 = vst [vmem:[%s6483_s10 + $0x398] sm:$0xff] %v3600_v62  ;;  %v2847_v50 = vmul.f32 %v5648_v40, %v7531_v27  ;;  %v2853_v58 = vmul.f32 %v5648_v40, %v7536_v39  ;;  %v3839_v49 = vmax.f32 %v3837_v30, %v3838_v59  ;;  %v3605_v27 = vpop.f32.mrb[105].mxu0  ;;  %v7712_v45 = vpop.f32.mrb[105].mxu1  ;;  %v8252_v40 = vld [vmem:[#allocation21_spill] sm:$0xff] }
 0x217   : > { %4942 = vst [vmem:[%s6483_s10 + $0x340] sm:$0xff] %v3691_v1  ;;  %4943 = vst [vmem:[%s6483_s10 + $0x348] sm:$0xff] %v3693_v18  ;;  %v3850_v19 = vrot.slane %v3849_v41, 1  ;;  %v7708_v43 = vmax.f32 %v3871_v60, %v3872_v35  ;;  %v3604_v47 = vadd.f32 %v3603_v36, %v8223_v23  ;;  %v3699_v39 = vadd.f32 %v3698_v53, %v6515_v10  ;;  %v7720_v16 = vpop.f32.mrb[106].mxu0  ;;  %v7722_v56 = vpop.f32.mrb[106].mxu1  ;;  %v8254_v18 = vld [vmem:[#allocation14_spill] sm:$0xff] }
 0x218   : > { %4948 = vst [vmem:[%s6483_s10 + $0x370] sm:$0xff] %v3697_v37  ;;  %4625 = vst [vmem:[%s6863_s25 + $0x138] sm:$0xff] %v2823_v26  ;;  %v3905_v38 = vsub.f32 %v7470_v3, %v3839_v49  ;;  %v3911_v54 = vsub.f32 %v7489_v32, %v3839_v49  ;;  %v3917_v20 = vsub.f32 %v7539_v55, %v3839_v49  ;;  %v7729_v60 = vpop.f32.mrb[107].mxu0  ;;  %v7732_v3 = vpop.f32.mrb[107].mxu1  ;;  %v8255_v26 = vld [vmem:[#allocation17_spill] sm:$0xff]  ;;  %v8256_v36 = vld [vmem:[#allocation19_spill] sm:$0xff] }
 0x219   : > { %4631 = vst [vmem:[%s6863_s25 + $0x168] sm:$0xff] %v2829_v48  ;;  %4637 = vst [vmem:[%s6863_s25 + $0x198] sm:$0xff] %v2835_v15  ;;  %v3923_v44 = vsub.f32 %v7560_v5, %v3839_v49  ;;  %v3929_v34 = vsub.f32 %v7598_v21, %v3839_v49  ;;  %v3935_v53 = vsub.f32 %v7616_v14, %v3839_v49  ;;  %v3613_v48 = vpop.f32.mrb[108].mxu0 }
 0x21a   : > { %4643 = vst [vmem:[%s6863_s25 + $0x1c8] sm:$0xff] %v2841_v31  ;;  %4649 = vst [vmem:[%s6863_s25 + $0x1f8] sm:$0xff] %v2847_v50  ;;  %v3863_v51 = vmax.f32 %v3861_v6, %v3862_v63  ;;  %v7726_v2 = vmax.f32 %v3849_v41, %v3850_v19  ;;  %v3941_v32 = vmul.f32 1.442695, %v3905_v38  ;;  %v3953_v55 = vmul.f32 1.442695, %v3911_v54 }
 0x21b   : > { %4655 = vst [vmem:[%s6863_s25 + $0x228] sm:$0xf] %v2853_v58  ;;  %4958 = vst [vmem:[%s6483_s10 + $0x3c0] sm:$0xff] %v3604_v47  ;;  %v3965_v5 = vmul.f32 1.442695, %v3917_v20  ;;  %v3606_v11 = vadd.f32 %v3605_v27, %v8223_v23  ;;  %v3615_v31 = vpop.f32.mrb[109].mxu0 }
 0x21c   : > { %4949 = vst [vmem:[%s6483_s10 + $0x378] sm:$0xff] %v3699_v39  ;;  %v3977_v61 = vmul.f32 1.442695, %v3923_v44  ;;  %v3989_v30 = vmul.f32 1.442695, %v3929_v34  ;;  %v3907_v14 = vsub.f32 %v7497_v22, %v3863_v51  ;;  %v5650_v46 = vpop.eup %5649  ;;  %5651 = vpow2.f32 %v3941_v32  ;;  %v8253_v22 = vld [vmem:[#allocation10_spill] sm:$0xff] }
 0x21d   : > { %v4001_v21 = vmul.f32 1.442695, %v3935_v53  ;;  %v3913_v9 = vsub.f32 %v7522_v33, %v3863_v51  ;;  %v3919_v6 = vsub.f32 %v7544_v28, %v3863_v51  ;;  %v3925_v41 = vsub.f32 %v7592_v24, %v3863_v51  ;;  %4959 = vst [vmem:[%s6483_s10 + $0x3c8] sm:$0xff] %v3606_v11  ;;  %v7747_v24 = vpop.f32.mrb[108].mxu1  ;;  %v3617_v27 = vpop.f32.mrb[110].mxu0  ;;  %v8258_v38 = vld [vmem:[#allocation15_spill] sm:$0xff] }
 0x21e   : > { %v2825_v35 = vmul.f32 %v5650_v46, %v7546_v0  ;;  %v2831_v62 = vmul.f32 %v5650_v46, %v7551_v57  ;;  %v2837_v59 = vmul.f32 %v5650_v46, %v8252_v40  ;;  %v2843_v1 = vmul.f32 %v5650_v46, %v8253_v22  ;;  %v7758_v50 = vpop.f32.mrb[109].mxu1  ;;  %v8259_v20 = vld [vmem:[#allocation16_spill] sm:$0xff]  ;;  %v3619_v53 = vpop.f32.mrb[111].mxu0 }
 0x21f   : > { %v2849_v37 = vmul.f32 %v5650_v46, %v8254_v18  ;;  %v2855_v33 = vmul.f32 %v5650_v46, %v8255_v26  ;;  %5653 = vpow2.f32 %v3953_v55  ;;  %v3931_v28 = vsub.f32 %v7603_v7, %v3863_v51  ;;  %v7768_v39 = vpop.f32.mrb[110].mxu1 }
 0x220   : > { %4627 = vst.msk [vmem:[%s6863_s25 + $0x148] sm:$0xff] %vm1336_vm1, %v2825_v35  ;;  %4633 = vst.msk [vmem:[%s6863_s25 + $0x178] sm:$0xff] %vm1336_vm1, %v2831_v62  ;;  %5655 = vpow2.f32 %v3965_v5  ;;  %v3937_v0 = vsub.f32 %v7620_v42, %v3863_v51  ;;  %v3945_v57 = vmul.f32 1.442695, %v3907_v14  ;;  %v3957_v15 = vmul.f32 1.442695, %v3913_v9 }
 0x221   : > { %4639 = vst.msk [vmem:[%s6863_s25 + $0x1a8] sm:$0xff] %vm1336_vm1, %v2837_v59  ;;  %4645 = vst.msk [vmem:[%s6863_s25 + $0x1d8] sm:$0xff] %vm1336_vm1, %v2843_v1  ;;  %5657 = vpow2.f32 %v3977_v61  ;;  %v3969_v7 = vmul.f32 1.442695, %v3919_v6  ;;  %v3981_v58 = vmul.f32 1.442695, %v3925_v41  ;;  %v3906_v19 = vsub.f32 %v8256_v36, %v7726_v2 }
 0x222   : > { %4651 = vst.msk [vmem:[%s6863_s25 + $0x208] sm:$0xff] %vm1336_vm1, %v2849_v37  ;;  %v3993_v49 = vmul.f32 1.442695, %v3931_v28  ;;  %5659 = vpow2.f32 %v3989_v30  ;;  %v4005_v63 = vmul.f32 1.442695, %v3937_v0  ;;  %v8257_v42 = vld [vmem:[#allocation8_spill] sm:$0xff]  ;;  %v3918_v54 = vsub.f32 %v8258_v38, %v7726_v2 }
 0x223   : > { %4657 = vst.msk [vmem:[%s6863_s25 + $0x238] sm:$0xf] %vm1346_vm2, %v2855_v33  ;;  %v3912_v47 = vsub.f32 %v8257_v42, %v7726_v2  ;;  %5661 = vpow2.f32 %v4001_v21  ;;  %v3924_v44 = vsub.f32 %v8259_v20, %v7726_v2  ;;  %v3930_v34 = vsub.f32 %v7607_v29, %v7726_v2  ;;  %v7776_v51 = vpop.f32.mrb[111].mxu1  ;;  %v8260_v14 = vld [vmem:[#allocation9_spill] sm:$0xff]  ;;  %v8262_v62 = vld [vmem:[#allocation11_spill] sm:$0xff]  ;;  %v8264_v33 = vld [vmem:[#allocation18_spill] sm:$0xff] }
 0x224   : > { %5663 = vpow2.f32 %v3945_v57  ;;  %v3936_v32 = vsub.f32 %v7623_v17, %v7726_v2  ;;  %v3943_v55 = vmul.f32 1.442695, %v3906_v19  ;;  %v3967_v11 = vmul.f32 1.442695, %v3918_v54  ;;  %v8261_v2 = vld [vmem:[#allocation12_spill] sm:$0xff]  ;;  %v8263_v37 = vld [vmem:[#allocation13_spill] sm:$0xff] }
 0x225   : > { %v3955_v5 = vmul.f32 1.442695, %v3912_v47  ;;  %5665 = vpow2.f32 %v3957_v15  ;;  %v3979_v61 = vmul.f32 1.442695, %v3924_v44  ;;  %v3991_v30 = vmul.f32 1.442695, %v3930_v34 }
 0x226   : > { %5667 = vpow2.f32 %v3969_v7  ;;  %v4003_v21 = vmul.f32 1.442695, %v3936_v32  ;;  %v3874_v29 = vrot.slane %v7708_v43, 1  ;;  %v3608_v46 = vadd.f32 %v7720_v16, %v8260_v14  ;;  %v7783_v9 = vpop.eup %5651  ;;  %v8266_v0 = vld [vmem:[#allocation22_spill] sm:$0xff] }
 0x227   : > { %5669 = vpow2.f32 %v3981_v58  ;;  %v3610_v17 = vadd.f32 %v7729_v60, %v8260_v14  ;;  %v3614_v6 = vadd.f32 %v3613_v48, %v8261_v2  ;;  %v3616_v41 = vadd.f32 %v3615_v31, %v8261_v2  ;;  %v8268_v58 = vld [vmem:[#allocation24_spill] sm:$0xff] }
 0x228   : > { %5671 = vpow2.f32 %v3993_v49  ;;  %v3875_v35 = vmax.f32 %v7708_v43, %v3874_v29  ;;  %4964 = vst [vmem:[%s6483_s10 + $0x3f0] sm:$0xff] %v3608_v46  ;;  %v3618_v40 = vadd.f32 %v3617_v27, %v8262_v62  ;;  %v3620_v16 = vadd.f32 %v3619_v53, %v8262_v62 }
 0x229   : > { %v7793_v59 = vpop.eup %5653  ;;  %5673 = vpow2.f32 %v4005_v63  ;;  %4965 = vst [vmem:[%s6483_s10 + $0x3f8] sm:$0xff] %v3610_v17  ;;  %4970 = vst [vmem:[%s6483_s10 + $0x420] sm:$0xff] %v3614_v6  ;;  %v3701_v60 = vadd.f32 %v7670_v52, %v6519_v25  ;;  %v3703_v43 = vadd.f32 %v7677_v8, %v6519_v25  ;;  %v3707_v22 = vadd.f32 %v7702_v13, %v8223_v23  ;;  %v8265_v8 = vld [vmem:[#allocation20_spill] sm:$0xff]  ;;  %v8267_v13 = vld [vmem:[#allocation23_spill] sm:$0xff] }
 0x22a   : > { %4971 = vst [vmem:[%s6483_s10 + $0x428] sm:$0xff] %v3616_v41  ;;  %v7804_v1 = vpop.eup %5655  ;;  %v4013_v18 = vadd.f32 %v7793_v59, %v7783_v9  ;;  %5675 = vpow2.f32 %v3943_v55  ;;  %v3908_v26 = vsub.f32 %v8263_v37, %v3875_v35  ;;  %v3914_v28 = vsub.f32 %v8264_v33, %v3875_v35  ;;  %4976 = vst [vmem:[%s6483_s10 + $0x450] sm:$0xff] %v3618_v40  ;;  %v3759_v55 = vpop.f32.mrb[112].mxu0  ;;  %v8269_v17 = vld [vmem:[#allocation2_spill] sm:$0xff]  ;;  %v8270_v37 = vld [vmem:[#allocation3_spill] sm:$0xff] }
 0x22b   : > { %4977 = vst [vmem:[%s6483_s10 + $0x458] sm:$0xff] %v3620_v16  ;;  %v7812_v52 = vpop.eup %5657  ;;  %5677 = vpow2.f32 %v3955_v5  ;;  %v3920_v48 = vsub.f32 %v8265_v8, %v3875_v35  ;;  %v3926_v57 = vsub.f32 %v8266_v0, %v3875_v35  ;;  %v3932_v15 = vsub.f32 %v8267_v13, %v3875_v35  ;;  %4954 = vst [vmem:[%s6483_s10 + $0x3a0] sm:$0xff] %v3701_v60  ;;  %v3799_v5 = vpop.f32.mrb[112].mxu1 }
 0x22c   : > { %4955 = vst [vmem:[%s6483_s10 + $0x3a8] sm:$0xff] %v3703_v43  ;;  %4960 = vst [vmem:[%s6483_s10 + $0x3d0] sm:$0xff] %v3707_v22  ;;  %v7820_v31 = vpop.eup %5659  ;;  %v4014_v7 = vadd.f32 %v7804_v1, %v4013_v18  ;;  %5679 = vpow2.f32 %v3967_v11  ;;  %v3938_v49 = vsub.f32 %v8268_v58, %v3875_v35  ;;  %v3947_v63 = vmul.f32 1.442695, %v3908_v26  ;;  %v3761_v29 = vpop.f32.mrb[113].mxu0 }
 0x22d   : > { %v7824_v36 = vpop.eup %5661  ;;  %5681 = vpow2.f32 %v3979_v61  ;;  %v3959_v19 = vmul.f32 1.442695, %v3914_v28  ;;  %v3971_v42 = vmul.f32 1.442695, %v3920_v48  ;;  %v3983_v47 = vmul.f32 1.442695, %v3926_v57 }
 0x22e   : > { %v7826_v27 = vpop.eup %5663  ;;  %v4015_v38 = vadd.f32 %v7812_v52, %v4014_v7  ;;  %v4017_v54 = vsel %vm1279_vm0, %v7824_v36, 0.0  ;;  %5683 = vpow2.f32 %v3991_v30  ;;  %v3995_v20 = vmul.f32 1.442695, %v3932_v15  ;;  %v3801_v46 = vpop.f32.mrb[113].mxu1 }
 0x22f   : > { %v7831_v44 = vpop.eup %5665  ;;  %5685 = vpow2.f32 %v4003_v21  ;;  %v4007_v34 = vmul.f32 1.442695, %v3938_v49  ;;  %v3709_v53 = vadd.f32 %v7712_v45, %v8223_v23  ;;  %v3711_v32 = vadd.f32 %v7722_v56, %v8260_v14  ;;  %v3803_v35 = vpop.f32.mrb[114].mxu1 }
 0x230   : > { %v7837_v11 = vpop.eup %5667  ;;  %v4016_v61 = vadd.f32 %v7820_v31, %v4015_v38  ;;  %v4037_v30 = vadd.f32 %v7831_v44, %v7826_v27  ;;  %5687 = vpow2.f32 %v3947_v63  ;;  %v3713_v21 = vadd.f32 %v7732_v3, %v8260_v14  ;;  %v3763_v3 = vpop.f32.mrb[114].mxu0 }
 0x231   : > { %v7844_v45 = vpop.eup %5669  ;;  %5689 = vpow2.f32 %v3959_v19  ;;  %4961 = vst [vmem:[%s6483_s10 + $0x3d8] sm:$0xff] %v3709_v53  ;;  %4966 = vst [vmem:[%s6483_s10 + $0x400] sm:$0xff] %v3711_v32  ;;  %v3717_v56 = vadd.f32 %v7747_v24, %v8261_v2  ;;  %v7851_v6 = vadd.f32 %v3759_v55, %v8269_v17  ;;  %v3719_v41 = vadd.f32 %v7758_v50, %v8261_v2  ;;  %v3765_v24 = vpop.f32.mrb[115].mxu0 }
 0x232   : > { %v7855_v40 = vpop.eup %5671  ;;  %v4018_v16 = vadd.f32 %v4017_v54, %v4016_v61  ;;  %v4038_v60 = vadd.f32 %v7837_v11, %v4037_v30  ;;  %5691 = vpow2.f32 %v3971_v42  ;;  %4967 = vst [vmem:[%s6483_s10 + $0x408] sm:$0xff] %v3713_v21  ;;  %v7860_v43 = vadd.f32 %v3761_v29, %v8269_v17  ;;  %v3805_v22 = vpop.f32.mrb[115].mxu1 }
 0x233   : > { %v7862_v18 = vpop.eup %5673  ;;  %5693 = vpow2.f32 %v3983_v47  ;;  %4972 = vst [vmem:[%s6483_s10 + $0x430] sm:$0xff] %v3717_v56  ;;  %4973 = vst [vmem:[%s6483_s10 + $0x438] sm:$0xff] %v3719_v41  ;;  %v3721_v50 = vadd.f32 %v7768_v39, %v8262_v62  ;;  %v7869_v26 = vadd.f32 %v3763_v3, %v8270_v37  ;;  %v3723_v33 = vadd.f32 %v7776_v51, %v8262_v62 }
 0x234   : > { %v7873_v28 = vpop.eup %5675  ;;  %v4019_v8 = vrot.slane %v4018_v16, 4  ;;  %v4039_v48 = vadd.f32 %v7844_v45, %v4038_v60  ;;  %v4041_v0 = vsel %vm1279_vm0, %v7862_v18, 0.0  ;;  %5695 = vpow2.f32 %v3995_v20  ;;  %v3769_v20 = vpop.f32.mrb[116].mxu0 }
 0x235   : > { %v7878_v57 = vpop.eup %5677  ;;  %5697 = vpow2.f32 %v4007_v34  ;;  %v3888_v39 = vsel %vm1336_vm1, %v7860_v43, -inf  ;;  %4978 = vst [vmem:[%s6483_s10 + $0x460] sm:$0xff] %v3721_v50  ;;  %v3876_v13 = vmax.f32 %v7851_v6, %v7869_v26  ;;  %4979 = vst [vmem:[%s6483_s10 + $0x468] sm:$0xff] %v3723_v33  ;;  %v7887_v51 = vadd.f32 %v3765_v24, %v8270_v37  ;;  %v3809_v34 = vpop.f32.mrb[116].mxu1 }
 0x236   : > { %v7889_v15 = vpop.eup %5679  ;;  %v4020_v7 = vadd.f32 %v4019_v8, %v4018_v16  ;;  %v4040_v58 = vadd.f32 %v7855_v40, %v4039_v48  ;;  %v4025_v49 = vadd.f32 %v7878_v57, %v7873_v28  ;;  %v3800_v63 = vadd.f32 %v3799_v5, %v6515_v10  ;;  %v3771_v30 = vpop.f32.mrb[117].mxu0  ;;  %v8272_v48 = vld [vmem:[#allocation5_spill] sm:$0xff] }
 0x237   : > { %v7895_v19 = vpop.eup %5681  ;;  %v3889_v42 = vsel %vm1336_vm1, %v7887_v51, -inf  ;;  %v3802_v47 = vadd.f32 %v3801_v46, %v6515_v10  ;;  %v3804_v38 = vadd.f32 %v3803_v35, %v6519_v25  ;;  %v3806_v54 = vadd.f32 %v3805_v22, %v6519_v25  ;;  %v3811_v21 = vpop.f32.mrb[117].mxu1  ;;  %v8271_v25 = vld [vmem:[#allocation4_spill] sm:$0xff] }
 0x238   : > { %v7902_v53 = vpop.eup %5683  ;;  %v4021_v32 = vrot.slane %v4020_v7, 2  ;;  %v4042_v55 = vadd.f32 %v4041_v0, %v4040_v58  ;;  %v4026_v5 = vadd.f32 %v7889_v15, %v4025_v49  ;;  %v3890_v61 = vmax.f32 %v3888_v39, %v3889_v42  ;;  %4950 = vst [vmem:[%s6483_s10 + $0x380] sm:$0xff] %v3800_v63  ;;  %v3773_v41 = vpop.f32.mrb[118].mxu0 }
 0x239   : > { %v7906_v29 = vpop.eup %5685  ;;  %4951 = vst.msk [vmem:[%s6483_s10 + $0x388] sm:$0xff] %vm1336_vm1, %v3802_v47  ;;  %4956 = vst [vmem:[%s6483_s10 + $0x3b0] sm:$0xff] %v3804_v38  ;;  %v7914_v10 = vadd.f32 %v3769_v20, %v8271_v25  ;;  %v3810_v46 = vadd.f32 %v3809_v34, %v8223_v23  ;;  %v7918_v56 = vadd.f32 %v3771_v30, %v8271_v25  ;;  %v3813_v3 = vpop.f32.mrb[118].mxu1 }
 0x23a   : > { %4957 = vst.msk [vmem:[%s6483_s10 + $0x3b8] sm:$0xff] %vm1336_vm1, %v3806_v54  ;;  %v3812_v17 = vadd.f32 %v3811_v21, %v8223_v23  ;;  %v7921_v35 = vpop.eup %5687  ;;  %v4022_v16 = vadd.f32 %v4021_v32, %v4020_v7  ;;  %v4043_v60 = vrot.slane %v4042_v55, 4  ;;  %v4027_v24 = vadd.f32 %v7895_v19, %v4026_v5  ;;  %v3775_v50 = vpop.f32.mrb[119].mxu0 }
 0x23b   : > { %v4029_v22 = vsel %vm1279_vm0, %v7906_v29, 0.0  ;;  %v3815_v37 = vpop.f32.mrb[119].mxu1  ;;  %v7926_v33 = vpop.eup %5689  ;;  %v3877_v8 = vmax.f32 %v3876_v13, %v7914_v10  ;;  %4962 = vst [vmem:[%s6483_s10 + $0x3e0] sm:$0xff] %v3810_v46  ;;  %v3891_v23 = vsel %vm1336_vm1, %v7918_v56, -inf  ;;  %v7935_v0 = vadd.f32 %v3773_v41, %v8272_v48 }
 0x23c   : > { %4963 = vst.msk [vmem:[%s6483_s10 + $0x3e8] sm:$0xff] %vm1336_vm1, %v3812_v17  ;;  %v3814_v39 = vadd.f32 %v3813_v3, %v8260_v14  ;;  %v7938_v7 = vpop.eup %5691  ;;  %v4023_v58 = vrot.slane %v4022_v16, 1  ;;  %v4044_v49 = vadd.f32 %v4043_v60, %v4042_v55  ;;  %v4028_v63 = vadd.f32 %v7902_v53, %v4027_v24  ;;  %v3779_v25 = vpop.f32.mrb[120].mxu0 }
 0x23d   : > { %v4049_v13 = vadd.f32 %v7926_v33, %v7921_v35  ;;  %v7943_v42 = vpop.eup %5693  ;;  %v3892_v47 = vmax.f32 %v3890_v61, %v3891_v23  ;;  %v3878_v38 = vmax.f32 %v3877_v8, %v7935_v0  ;;  %v7948_v54 = vadd.f32 %v3775_v50, %v8272_v48  ;;  %v3819_v46 = vpop.f32.mrb[120].mxu1 }
 0x23e   : > { %4968 = vst [vmem:[%s6483_s10 + $0x410] sm:$0xff] %v3814_v39  ;;  %v3816_v20 = vadd.f32 %v3815_v37, %v8260_v14  ;;  %v7951_v34 = vpop.eup %5695  ;;  %v4024_v32 = vadd.f32 %v4023_v58, %v4022_v16  ;;  %v4045_v55 = vrot.slane %v4044_v49, 2  ;;  %v4030_v5 = vadd.f32 %v4029_v22, %v4028_v63  ;;  %v3781_v3 = vpop.f32.mrb[121].mxu0  ;;  %v8273_v22 = vld [vmem:[#allocation6_spill] sm:$0xff] }
 0x23f   : > { %v4050_v30 = vadd.f32 %v7938_v7, %v4049_v13  ;;  %v7954_v21 = vpop.eup %5697  ;;  %v3893_v61 = vsel %vm1336_vm1, %v7948_v54, -inf  ;;  %v3821_v16 = vpop.f32.mrb[121].mxu1  ;;  %v7964_v50 = vadd.f32 %v3779_v25, %v8273_v22  ;;  %v3820_v37 = vadd.f32 %v3819_v46, %v8261_v2 }
 0x240   : > { %4969 = vst.msk [vmem:[%s6483_s10 + $0x418] sm:$0xff] %vm1336_vm1, %v3816_v20  ;;  %5699 = vrcp.f32 %v4024_v32  ;;  %v4046_v17 = vadd.f32 %v4045_v55, %v4044_v49  ;;  %v4031_v41 = vrot.slane %v4030_v5, 4  ;;  %v4053_v60 = vsel %vm1279_vm0, %v7954_v21, 0.0  ;;  %v3783_v8 = vpop.f32.mrb[122].mxu0  ;;  %v3823_v23 = vpop.f32.mrb[122].mxu1  ;;  %v8274_v32 = vld [vmem:[#allocation7_spill] sm:$0xff] }
 0x241   : > { %v4051_v14 = vadd.f32 %v7943_v42, %v4050_v30  ;;  %v3894_v24 = vmax.f32 %v3892_v47, %v3893_v61  ;;  %v7969_v49 = vadd.f32 %v3781_v3, %v8273_v22  ;;  %v3785_v63 = vpop.f32.mrb[123].mxu0  ;;  %v3825_v13 = vpop.f32.mrb[123].mxu1  ;;  %v3879_v47 = vmax.f32 %v3878_v38, %v7964_v50  ;;  %4974 = vst [vmem:[%s6483_s10 + $0x440] sm:$0xff] %v3820_v37 }
 0x242   : > { %v4047_v48 = vrot.slane %v4046_v17, 1  ;;  %v4032_v39 = vadd.f32 %v4031_v41, %v4030_v5  ;;  %v3822_v20 = vadd.f32 %v3821_v16, %v8261_v2  ;;  %v7975_v55 = vadd.f32 %v3783_v8, %v8274_v32 }
 0x243   : > { %v4052_v58 = vadd.f32 %v7951_v34, %v4051_v14  ;;  %v3824_v30 = vadd.f32 %v3823_v23, %v8262_v62  ;;  %v3895_v46 = vsel %vm1336_vm1, %v7969_v49, -inf  ;;  %v7986_v2 = vadd.f32 %v3785_v63, %v8274_v32 }
 0x244   : > { %v4048_v5 = vadd.f32 %v4047_v48, %v4046_v17  ;;  %v4033_v61 = vrot.slane %v4032_v39, 2  ;;  %v3896_v41 = vmax.f32 %v3894_v24, %v3895_v46  ;;  %4975 = vst.msk [vmem:[%s6483_s10 + $0x448] sm:$0xff] %vm1336_vm1, %v3822_v20  ;;  %v3880_v38 = vsel %vm1279_vm0, %v7975_v55, -inf  ;;  %v3789_v24 = vpop.f32.mrb[124].mxu0 }
 0x245   : > { %v4054_v25 = vadd.f32 %v4053_v60, %v4052_v58  ;;  %4980 = vst [vmem:[%s6483_s10 + $0x470] sm:$0xff] %v3824_v30  ;;  %v3826_v14 = vadd.f32 %v3825_v13, %v8262_v62  ;;  %v3881_v16 = vmax.f32 %v3879_v47, %v3880_v38  ;;  %v3897_v60 = vsel %vm1346_vm2, %v7986_v2, -inf  ;;  %v3791_v48 = vpop.f32.mrb[125].mxu0 }
 0x246   : > { %5701 = vrcp.f32 %v4048_v5  ;;  %v4034_v3 = vadd.f32 %v4033_v61, %v4032_v39  ;;  %v3898_v23 = vmax.f32 %v3896_v41, %v3897_v60  ;;  %v3790_v58 = vadd.f32 %v3789_v24, %v8190_v4  ;;  %v3793_v39 = vpop.f32.mrb[126].mxu0 }
 0x247   : > { %v4055_v17 = vrot.slane %v4054_v25, 4  ;;  %4981 = vst.msk [vmem:[%s6483_s10 + $0x478] sm:$0xff] %vm1336_vm1, %v3826_v14  ;;  %v3882_v8 = vrot.slane %v3881_v16, 4  ;;  %v3792_v62 = vadd.f32 %v3791_v48, %v8190_v4  ;;  %v3795_v30 = vpop.f32.mrb[127].mxu0 }
 0x248   : > { %v4035_v22 = vrot.slane %v4034_v3, 1  ;;  %v3899_v32 = vrot.slane %v3898_v23, 4  ;;  %4938 = vst [vmem:[%s6483_s10 + $0x320] sm:$0xff] %v3790_v58 }
 0x249   : > { %v4056_v37 = vadd.f32 %v4055_v17, %v4054_v25  ;;  %v3883_v20 = vmax.f32 %v3881_v16, %v3882_v8  ;;  %4939 = vst.msk [vmem:[%s6483_s10 + $0x328] sm:$0xff] %vm1336_vm1, %v3792_v62 }
 0x24a   : > { %v5700_v63 = vpop.eup %5699  ;;  %v4036_v13 = vadd.f32 %v4035_v22, %v4034_v3 }
 0x24b   : > { %v4057_v47 = vrot.slane %v4056_v37, 2  ;;  %v4096_v5 = vmul.f32 %v5700_v63, %v7783_v9  ;;  %v4102_v61 = vmul.f32 %v5700_v63, %v7793_v59  ;;  %v4108_v25 = vmul.f32 %v5700_v63, %v7804_v1 }
 0x24c   : > { %v4114_v4 = vmul.f32 %v5700_v63, %v7812_v52  ;;  %v4120_v46 = vmul.f32 %v5700_v63, %v7820_v31  ;;  %v4126_v41 = vmul.f32 %v5700_v63, %v7824_v36  ;;  %5703 = vrcp.f32 %v4036_v13 }
 0x24d   : > { %v4058_v38 = vadd.f32 %v4057_v47, %v4056_v37  ;;  %4898 = vst [vmem:[%s6863_s25 + $0x240] sm:$0xff] %v4096_v5  ;;  %4904 = vst [vmem:[%s6863_s25 + $0x270] sm:$0xff] %v4102_v61  ;;  %v3884_v9 = vrot.slane %v3883_v20, 2  ;;  %v3900_v59 = vmax.f32 %v3898_v23, %v3899_v32  ;;  %v3794_v1 = vadd.f32 %v3793_v39, %v6478_v12 }
 0x24e   : > { %4910 = vst [vmem:[%s6863_s25 + $0x2a0] sm:$0xff] %v4108_v25  ;;  %4916 = vst [vmem:[%s6863_s25 + $0x2d0] sm:$0xff] %v4114_v4  ;;  %v3796_v52 = vadd.f32 %v3795_v30, %v6478_v12 }
 0x24f   : > { %4922 = vst [vmem:[%s6863_s25 + $0x300] sm:$0xff] %v4120_v46  ;;  %4928 = vst [vmem:[%s6863_s25 + $0x330] sm:$0xf] %v4126_v41  ;;  %v4059_v31 = vrot.slane %v4058_v38, 1  ;;  %v3885_v36 = vmax.f32 %v3883_v20, %v3884_v9  ;;  %v3901_v14 = vrot.slane %v3900_v59, 2 }
 0x250   : > { %4944 = vst [vmem:[%s6483_s10 + $0x350] sm:$0xff] %v3794_v1  ;;  %4945 = vst.msk [vmem:[%s6483_s10 + $0x358] sm:$0xff] %vm1336_vm1, %v3796_v52  ;;  %v5702_v3 = vpop.eup %5701 }
 0x251   : > { %v4060_v17 = vadd.f32 %v4059_v31, %v4058_v38  ;;  %v4098_v16 = vmul.f32 %v5702_v3, %v7826_v27  ;;  %v4104_v12 = vmul.f32 %v5702_v3, %v7831_v44  ;;  %v4110_v60 = vmul.f32 %v5702_v3, %v7837_v11 }
 0x252   : > { %v4116_v24 = vmul.f32 %v5702_v3, %v7844_v45  ;;  %v4122_v22 = vmul.f32 %v5702_v3, %v7855_v40  ;;  %v4128_v37 = vmul.f32 %v5702_v3, %v7862_v18  ;;  %v3886_v8 = vrot.slane %v3885_v36, 1 }
 0x253   : > { %5705 = vrcp.f32 %v4060_v17  ;;  %4900 = vst [vmem:[%s6863_s25 + $0x250] sm:$0xff] %v4098_v16  ;;  %4906 = vst [vmem:[%s6863_s25 + $0x280] sm:$0xff] %v4104_v12  ;;  %v3902_v23 = vmax.f32 %v3900_v59, %v3901_v14 }
 0x254   : > { %4912 = vst [vmem:[%s6863_s25 + $0x2b0] sm:$0xff] %v4110_v60  ;;  %4918 = vst [vmem:[%s6863_s25 + $0x2e0] sm:$0xff] %v4116_v24  ;;  %v3887_v27 = vmax.f32 %v3885_v36, %v3886_v8 }
 0x255   : > { %4924 = vst [vmem:[%s6863_s25 + $0x310] sm:$0xff] %v4122_v22  ;;  %4930 = vst [vmem:[%s6863_s25 + $0x340] sm:$0xf] %v4128_v37  ;;  %v3903_v44 = vrot.slane %v3902_v23, 1 }
 0x256   : > { %v5704_v11 = vpop.eup %5703  ;;  %v3909_v45 = vsub.f32 %v7851_v6, %v3887_v27  ;;  %v3915_v40 = vsub.f32 %v7869_v26, %v3887_v27  ;;  %v3921_v18 = vsub.f32 %v7914_v10, %v3887_v27  ;;  %v3927_v48 = vsub.f32 %v7935_v0, %v3887_v27 }
 0x257   : > { %v4097_v58 = vmul.f32 %v5704_v11, %v7873_v28  ;;  %v4103_v62 = vmul.f32 %v5704_v11, %v7878_v57  ;;  %v4109_v39 = vmul.f32 %v5704_v11, %v7889_v15  ;;  %v4115_v63 = vmul.f32 %v5704_v11, %v7895_v19 }
 0x258   : > { %v4121_v13 = vmul.f32 %v5704_v11, %v7902_v53  ;;  %v4127_v6 = vmul.f32 %v5704_v11, %v7906_v29  ;;  %v3933_v26 = vsub.f32 %v7964_v50, %v3887_v27  ;;  %v3939_v10 = vsub.f32 %v7975_v55, %v3887_v27 }
 0x259   : > { %4899 = vst [vmem:[%s6863_s25 + $0x248] sm:$0xff] %v4097_v58  ;;  %4905 = vst [vmem:[%s6863_s25 + $0x278] sm:$0xff] %v4103_v62  ;;  %v3949_v28 = vmul.f32 1.442695, %v3909_v45  ;;  %v3961_v0 = vmul.f32 1.442695, %v3915_v40  ;;  %v3904_v47 = vmax.f32 %v3902_v23, %v3903_v44 }
 0x25a   : > { %4911 = vst [vmem:[%s6863_s25 + $0x2a8] sm:$0xff] %v4109_v39  ;;  %4917 = vst [vmem:[%s6863_s25 + $0x2d8] sm:$0xff] %v4115_v63  ;;  %v3973_v57 = vmul.f32 1.442695, %v3921_v18  ;;  %v3985_v15 = vmul.f32 1.442695, %v3927_v48 }
 0x25b   : > { %4923 = vst [vmem:[%s6863_s25 + $0x308] sm:$0xff] %v4121_v13  ;;  %4929 = vst [vmem:[%s6863_s25 + $0x338] sm:$0xf] %v4127_v6  ;;  %v3997_v19 = vmul.f32 1.442695, %v3933_v26  ;;  %5707 = vpow2.f32 %v3949_v28  ;;  %v3910_v53 = vsub.f32 %v7860_v43, %v3904_v47  ;;  %v3916_v29 = vsub.f32 %v7887_v51, %v3904_v47 }
 0x25c   : > { %v4009_v20 = vmul.f32 1.442695, %v3939_v10  ;;  %v3922_v50 = vsub.f32 %v7918_v56, %v3904_v47  ;;  %5709 = vpow2.f32 %v3961_v0  ;;  %v3928_v32 = vsub.f32 %v7948_v54, %v3904_v47 }
 0x25d   : > { %v5706_v55 = vpop.eup %5705  ;;  %v3934_v30 = vsub.f32 %v7969_v49, %v3904_v47  ;;  %v3940_v5 = vsub.f32 %v7986_v2, %v3904_v47  ;;  %5711 = vpow2.f32 %v3973_v57  ;;  %v3951_v54 = vmul.f32 1.442695, %v3910_v53 }
 0x25e   : > { %v4099_v43 = vmul.f32 %v5706_v55, %v7921_v35  ;;  %v4105_v61 = vmul.f32 %v5706_v55, %v7926_v33  ;;  %v4111_v51 = vmul.f32 %v5706_v55, %v7938_v7  ;;  %v4117_v56 = vmul.f32 %v5706_v55, %v7943_v42 }
 0x25f   : > { %v4123_v25 = vmul.f32 %v5706_v55, %v7951_v34  ;;  %v4129_v4 = vmul.f32 %v5706_v55, %v7954_v21  ;;  %5713 = vpow2.f32 %v3985_v15  ;;  %v3963_v49 = vmul.f32 1.442695, %v3916_v29 }
 0x260   : > { %4901 = vst [vmem:[%s6863_s25 + $0x258] sm:$0xff] %v4099_v43  ;;  %4907 = vst [vmem:[%s6863_s25 + $0x288] sm:$0xff] %v4105_v61  ;;  %5715 = vpow2.f32 %v3997_v19  ;;  %v3975_v35 = vmul.f32 1.442695, %v3922_v50  ;;  %v3987_v33 = vmul.f32 1.442695, %v3928_v32 }
 0x261   : > { %4913 = vst [vmem:[%s6863_s25 + $0x2b8] sm:$0xff] %v4111_v51  ;;  %4919 = vst [vmem:[%s6863_s25 + $0x2e8] sm:$0xff] %v4117_v56  ;;  %5717 = vpow2.f32 %v4009_v20  ;;  %v3999_v7 = vmul.f32 1.442695, %v3934_v30  ;;  %v4011_v34 = vmul.f32 1.442695, %v3940_v5 }
 0x262   : > { %4925 = vst [vmem:[%s6863_s25 + $0x318] sm:$0xff] %v4123_v25  ;;  %4931 = vst [vmem:[%s6863_s25 + $0x348] sm:$0xf] %v4129_v4  ;;  %5719 = vpow2.f32 %v3951_v54 }
 0x263   : > { %5721 = vpow2.f32 %v3963_v49 }
 0x264   : > { %5723 = vpow2.f32 %v3975_v35 }
 0x265   : > { %v5708_v42 = vpop.eup %5707  ;;  %5725 = vpow2.f32 %v3987_v33 }
 0x266   : > { %v5710_v21 = vpop.eup %5709  ;;  %5727 = vpow2.f32 %v3999_v7 }
 0x267   : > { %v4061_v2 = vadd.f32 %v5710_v21, %v5708_v42  ;;  %v5712_v46 = vpop.eup %5711  ;;  %5729 = vpow2.f32 %v4011_v34 }
 0x269   : > { %v5714_v41 = vpop.eup %5713  ;;  %v4062_v38 = vadd.f32 %v5712_v46, %v4061_v2 }
 0x26a   : > { %v5716_v9 = vpop.eup %5715 }
 0x26b   : > { %v5718_v59 = vpop.eup %5717  ;;  %v4063_v1 = vadd.f32 %v5714_v41, %v4062_v38 }
 0x26c   : > { %v5720_v52 = vpop.eup %5719  ;;  %v4065_v17 = vsel %vm1279_vm0, %v5718_v59, 0.0 }
 0x26d   : > { %v5722_v31 = vpop.eup %5721  ;;  %v4064_v36 = vadd.f32 %v5716_v9, %v4063_v1  ;;  %v4073_v14 = vsel %vm1336_vm1, %v5720_v52, 0.0 }
 0x26e   : > { %v5724_v3 = vpop.eup %5723  ;;  %v4074_v16 = vsel %vm1336_vm1, %v5722_v31, 0.0 }
 0x26f   : > { %v5726_v12 = vpop.eup %5725  ;;  %v4066_v60 = vadd.f32 %v4065_v17, %v4064_v36  ;;  %v4075_v24 = vadd.f32 %v4074_v16, %v4073_v14  ;;  %v4076_v22 = vsel %vm1336_vm1, %v5724_v3, 0.0 }
 0x270   : > { %v5728_v37 = vpop.eup %5727  ;;  %v4078_v27 = vsel %vm1336_vm1, %v5726_v12, 0.0 }
 0x271   : > { %v4067_v8 = vrot.slane %v4066_v60, 4  ;;  %v4077_v23 = vadd.f32 %v4076_v22, %v4075_v24  ;;  %v5730_v44 = vpop.eup %5729  ;;  %v4080_v40 = vsel %vm1336_vm1, %v5728_v37, 0.0 }
 0x272   : > { %v4082_v58 = vsel %vm1346_vm2, %v5730_v44, 0.0 }
 0x273   : > { %v4068_v11 = vadd.f32 %v4067_v8, %v4066_v60  ;;  %v4079_v45 = vadd.f32 %v4078_v27, %v4077_v23 }
 0x275   : > { %v4069_v18 = vrot.slane %v4068_v11, 2  ;;  %v4081_v48 = vadd.f32 %v4080_v40, %v4079_v45 }
 0x277   : > { %v4070_v62 = vadd.f32 %v4069_v18, %v4068_v11  ;;  %v4083_v39 = vadd.f32 %v4082_v58, %v4081_v48 }
 0x279   : > { %v4071_v63 = vrot.slane %v4070_v62, 1  ;;  %v4084_v13 = vrot.slane %v4083_v39, 4 }
 0x27b   : > { %v4072_v6 = vadd.f32 %v4071_v63, %v4070_v62  ;;  %v4085_v26 = vadd.f32 %v4084_v13, %v4083_v39 }
 0x27d   : > { %5731 = vrcp.f32 %v4072_v6  ;;  %v4086_v10 = vrot.slane %v4085_v26, 2 }
 0x27f   : > { %v4087_v28 = vadd.f32 %v4086_v10, %v4085_v26 }
 0x281   : > { %v4088_v0 = vrot.slane %v4087_v28, 1 }
 0x283   : > { %v4089_v57 = vadd.f32 %v4088_v0, %v4087_v28 }
 0x285   : > { %5733 = vrcp.f32 %v4089_v57 }
 0x287   : > { %v5732_v47 = vpop.eup %5731 }
 0x288   : > { %v4100_v15 = vmul.f32 %v5732_v47, %v5708_v42  ;;  %v4106_v19 = vmul.f32 %v5732_v47, %v5710_v21  ;;  %v4112_v20 = vmul.f32 %v5732_v47, %v5712_v46  ;;  %v4118_v53 = vmul.f32 %v5732_v47, %v5714_v41 }
 0x289   : > { %v4124_v29 = vmul.f32 %v5732_v47, %v5716_v9  ;;  %v4130_v50 = vmul.f32 %v5732_v47, %v5718_v59 }
 0x28a   : > { %4902 = vst [vmem:[%s6863_s25 + $0x260] sm:$0xff] %v4100_v15  ;;  %4908 = vst [vmem:[%s6863_s25 + $0x290] sm:$0xff] %v4106_v19 }
 0x28b   : > { %4914 = vst [vmem:[%s6863_s25 + $0x2c0] sm:$0xff] %v4112_v20  ;;  %4920 = vst [vmem:[%s6863_s25 + $0x2f0] sm:$0xff] %v4118_v53 }
 0x28c   : > { %4926 = vst [vmem:[%s6863_s25 + $0x320] sm:$0xff] %v4124_v29  ;;  %4932 = vst [vmem:[%s6863_s25 + $0x350] sm:$0xf] %v4130_v50 }
 0x28f   : > { %v5734_v55 = vpop.eup %5733 }
 0x290   : > { %v4101_v32 = vmul.f32 %v5734_v55, %v5720_v52  ;;  %v4107_v30 = vmul.f32 %v5734_v55, %v5722_v31  ;;  %v4113_v5 = vmul.f32 %v5734_v55, %v5724_v3  ;;  %v4119_v43 = vmul.f32 %v5734_v55, %v5726_v12 }
 0x291   : > { %v4125_v61 = vmul.f32 %v5734_v55, %v5728_v37  ;;  %v4131_v51 = vmul.f32 %v5734_v55, %v5730_v44 }
 0x292   : > { %4903 = vst.msk [vmem:[%s6863_s25 + $0x268] sm:$0xff] %vm1336_vm1, %v4101_v32  ;;  %4909 = vst.msk [vmem:[%s6863_s25 + $0x298] sm:$0xff] %vm1336_vm1, %v4107_v30 }
 0x293   : > { %4915 = vst.msk [vmem:[%s6863_s25 + $0x2c8] sm:$0xff] %vm1336_vm1, %v4113_v5  ;;  %4921 = vst.msk [vmem:[%s6863_s25 + $0x2f8] sm:$0xff] %vm1336_vm1, %v4119_v43 }
 0x294   : > { %4927 = vst.msk [vmem:[%s6863_s25 + $0x328] sm:$0xff] %vm1336_vm1, %v4125_v61 }
 0x295   : > { %4933 = vst.msk [vmem:[%s6863_s25 + $0x358] sm:$0xf] %vm1346_vm2, %v4131_v51 }
 0x296 PF: > { %s15_s15 = sadd.s32 1, %s5758_s15  }
 0x297   : > { %p12_p4 = scmp.ge.s32.totalorder %s15_s15, 4  }
 0x299   :  { %14 = sbr.rel (!%p12_p4) target bundleno = 1 (0x1), region = 80 }

</bundles_post_ra>
